<compile_context>
chip_gen: v6e
topology: v6e:2x2x1
jax: 0.10.0
libtpu: 0.0.40
codegen_flags: <defaults>
</compile_context>

<pallas_src>
import functools

import jax
import jax.numpy as jnp
from jax.experimental import pallas as pl
from jax.experimental.pallas import tpu as pltpu


def _round_up(x, m):
    return (x + m - 1) // m * m


# ---------------------------------------------------------------------------
# Kernel 1: direct convolution (single wide MXU dot per block) + masked
# BatchNorm partial statistics.  Grid = (row_tiles, channel_tiles), both
# parallel.  The activation slab arrives as one pipelined BlockSpec DMA.
# ---------------------------------------------------------------------------
def _conv_stats_kernel(x_ref, w_ref, m_ref, y_ref, s_ref, *, offs, tm, fill):
    # Assemble the lane-dense LHS: one sublane-shifted (tm, cin_p) slice of the
    # slab per kernel tap, concatenated along lanes, zero-padded to K_p lanes.
    parts = [x_ref[pl.ds(o, tm), :] for o in offs]
    if fill:
        parts.append(jnp.zeros((tm, fill), jnp.bfloat16))
    lhs = jnp.concatenate(parts, axis=-1)                       # (tm, K_p) bf16

    y = jnp.dot(lhs, w_ref[...], preferred_element_type=jnp.float32)
    y_ref[...] = y.astype(y_ref.dtype)                          # single bf16 store

    # Masked per-channel partial sums for training-mode BN statistics (mask is
    # precomputed on the host: 1.0 for real strided output rows, else 0.0).
    m = m_ref[...]                                              # (tm, 1) f32
    ym = y * m
    ssum = jnp.sum(ym, axis=0, keepdims=True)                   # (1, tn)
    ssq = jnp.sum(ym * y, axis=0, keepdims=True)                # (1, tn)
    s_ref[0] = jnp.concatenate([ssum, ssq], axis=0)


# ---------------------------------------------------------------------------
# Kernel 2: tiled BatchNorm apply (y * scale + shift) + optional ReLU.
# ---------------------------------------------------------------------------
def _bn_apply_kernel(y_ref, scale_ref, shift_ref, o_ref, *, relu):
    y = y_ref[...].astype(jnp.float32) * scale_ref[...] + shift_ref[...]
    if relu:
        y = jnp.maximum(y, 0.0)
    o_ref[...] = y


# ---------------------------------------------------------------------------
# conv_block forward (Conv2d -> BatchNorm2d(training stats) -> optional ReLU).
# Input/weights in PyTorch layouts (NCHW / OIHW).
# ---------------------------------------------------------------------------
def conv_block_fwd(params, x_nchw, *, stride=1, activation=True, eps=1e-5):
    wt = params["w"]
    gamma, beta = params["gamma"], params["beta"]
    # NOTE: the conv bias cancels exactly through training-mode BatchNorm
    # (BN(z + b) == BN(z) for a per-channel constant b), so it is not applied
    # anywhere; the forward output is unchanged.
    cout, cin, kh, kw = wt.shape
    assert kh == kw, "square kernels only"
    k = kh
    pad = k // 2
    n, cin_x, h, w = x_nchw.shape
    assert cin_x == cin
    s = stride
    ho = (h + 2 * pad - k) // s + 1
    wo = (w + 2 * pad - k) // s + 1
    hx, wx = h + 2 * pad, w + 2 * pad

    cin_p = _round_up(cin, 8)
    cout_p = _round_up(cout, 128)

    tm = 512
    tn = 256 if cout_p % 256 == 0 else 128

    m_valid = n * hx * wx
    mp = _round_up(m_valid, tm)
    ni = mp // tm
    nj = cout_p // tn
    halo = (k - 1) * wx + (k - 1)                 # max tap offset (flat rows)
    slab_rows = _round_up(tm + halo, 16)
    x_rows = mp - tm + slab_rows

    # NCHW -> padded NHWC -> flat (rows, cin_p) bf16 with tail-guard rows.
    x_nhwc = jnp.transpose(x_nchw, (0, 2, 3, 1)).astype(jnp.float32)
    xp = jnp.pad(x_nhwc, ((0, 0), (pad, pad), (pad, pad), (0, cin_p - cin)))
    xflat = jnp.pad(xp.reshape(m_valid, cin_p),
                    ((0, x_rows - m_valid), (0, 0))).astype(jnp.bfloat16)

    # Pre-haloed per-tile slabs: one contiguous DMA per row tile in the kernel.
    row_idx = (jnp.arange(ni, dtype=jnp.int32) * tm)[:, None] + \
        jnp.arange(slab_rows, dtype=jnp.int32)[None, :]
    xslab = jnp.take(xflat, row_idx, axis=0)      # (ni, slab_rows, cin_p)

    # Weights: one (K_p, cout_p) RHS with K = k*k*cin_p padded to 128-multiple.
    kk_cin = k * k * cin_p
    k_p = _round_up(kk_cin, 128)
    w_taps = jnp.transpose(wt, (2, 3, 1, 0))                     # (kh,kw,cin,cout)
    w_taps = jnp.pad(w_taps, ((0, 0), (0, 0),
                              (0, cin_p - cin), (0, cout_p - cout)))
    wmat = jnp.pad(w_taps.reshape(kk_cin, cout_p),
                   ((0, k_p - kk_cin), (0, 0))).astype(jnp.bfloat16)

    # Precomputed row-validity mask (only real strided output rows feed stats).
    q = jnp.arange(mp, dtype=jnp.int32)
    rem = q % (hx * wx)
    a = rem // wx
    c = rem % wx
    valid = ((q < m_valid) & (a % s == 0) & (a < ho * s)
             & (c % s == 0) & (c < wo * s))
    mask = valid.astype(jnp.float32).reshape(mp, 1)

    offs = tuple(dy * wx + dx for dy in range(k) for dx in range(k))

    ygrid, stats = pl.pallas_call(
        functools.partial(_conv_stats_kernel, offs=offs, tm=tm,
                          fill=k_p - kk_cin),
        out_shape=(jax.ShapeDtypeStruct((mp, cout_p), jnp.bfloat16),
                   jax.ShapeDtypeStruct((ni, 2, cout_p), jnp.float32)),
        grid_spec=pltpu.PrefetchScalarGridSpec(
            num_scalar_prefetch=0,
            grid=(ni, nj),                  # large row axis leads (v7x cores)
            in_specs=[
                pl.BlockSpec((None, slab_rows, cin_p), lambda i, j: (i, 0, 0)),
                pl.BlockSpec((k_p, tn), lambda i, j: (0, j)),
                pl.BlockSpec((tm, 1), lambda i, j: (i, 0)),
            ],
            out_specs=[
                pl.BlockSpec((tm, tn), lambda i, j: (i, j)),
                pl.BlockSpec((1, 2, tn), lambda i, j: (i, 0, j)),
            ],
        ),
        compiler_params=pltpu.CompilerParams(
            dimension_semantics=("parallel", "parallel")),
    )(xslab, wmat, mask)

    # Tiny O(C) BatchNorm finalization (training-mode, biased variance).
    # NOTE: E[x^2]-E[x]^2 in f32 is cancellation-prone for very large N*H*W
    # with large means; acceptable at these scales.
    count = float(n * ho * wo)
    ssum = jnp.sum(stats[:, 0, :], axis=0)
    ssq = jnp.sum(stats[:, 1, :], axis=0)
    mean = ssum / count
    var = jnp.maximum(ssq / count - mean * mean, 0.0)
    inv = jax.lax.rsqrt(var + eps)
    gamma_p = jnp.pad(gamma, (0, cout_p - cout))
    beta_p = jnp.pad(beta, (0, cout_p - cout))
    scale = (gamma_p * inv).reshape(1, cout_p)
    shift = (beta_p - mean * gamma_p * inv).reshape(1, cout_p)

    tm2 = 512
    tn2 = next(t for t in (512, 256, 128) if cout_p % t == 0)
    ybn = pl.pallas_call(
        functools.partial(_bn_apply_kernel, relu=activation),
        out_shape=jax.ShapeDtypeStruct((mp, cout_p), jnp.float32),
        grid_spec=pltpu.PrefetchScalarGridSpec(
            num_scalar_prefetch=0,
            grid=(mp // tm2, cout_p // tn2),
            in_specs=[
                pl.BlockSpec((tm2, tn2), lambda i, j: (i, j)),
                pl.BlockSpec((1, tn2), lambda i, j: (0, j)),
                pl.BlockSpec((1, tn2), lambda i, j: (0, j)),
            ],
            out_specs=pl.BlockSpec((tm2, tn2), lambda i, j: (i, j)),
        ),
        compiler_params=pltpu.CompilerParams(
            dimension_semantics=("parallel", "parallel")),
    )(ygrid, scale, shift)

    # Final valid-row compaction + NHWC -> NCHW (see TODOs at top of file).
    y4 = ybn[:m_valid].reshape(n, hx, wx, cout_p)
    out = y4[:, 0:(ho - 1) * s + 1:s, 0:(wo - 1) * s + 1:s, :cout]
    return jnp.transpose(out, (0, 3, 1, 2))


# ---------------------------------------------------------------------------
# Plain-JAX reference (f32, HIGHEST precision) for the correctness check.
# ---------------------------------------------------------------------------
def conv_block_ref(params, x, stride, activation, eps=1e-5):
    k = params["w"].shape[2]
    p = k // 2
    y = jax.lax.conv_general_dilated(
        x, params["w"], (stride, stride), [(p, p), (p, p)],
        dimension_numbers=("NCHW", "OIHW", "NCHW"),
        precision=jax.lax.Precision.HIGHEST)
    y = y + params["b"][None, :, None, None]
    mean = jnp.mean(y, axis=(0, 2, 3), keepdims=True)
    var = jnp.mean(jnp.square(y - mean), axis=(0, 2, 3), keepdims=True)
    y = (y - mean) * jax.lax.rsqrt(var + eps)
    y = y * params["gamma"][None, :, None, None] + params["beta"][None, :, None, None]
    if activation:
        y = jnp.maximum(y, 0.0)
    return y


# ---------------------------------------------------------------------------
if __name__ == "__main__":
    key = jax.random.PRNGKey(0)
    kx, kw_, kb_ = jax.random.split(key, 3)

    N, Cin, H, W = 2, 4, 16, 16
    Cout, K = 32, 3
    x = jax.random.normal(kx, (N, Cin, H, W), jnp.float32)
    params = {
        "w": 0.05 * jax.random.normal(kw_, (Cout, Cin, K, K), jnp.float32),
        "b": 0.05 * jax.random.normal(kb_, (Cout,), jnp.float32),
        "gamma": jnp.ones((Cout,), jnp.float32),
        "beta": jnp.zeros((Cout,), jnp.float32),
    }

    # Config 1: default conv_block (kernel=3, stride=1, ReLU).
    fwd1 = jax.jit(functools.partial(conv_block_fwd, stride=1, activation=True))
    out1 = fwd1(params, x)
    jax.block_until_ready(out1)
    assert out1.shape == (N, Cout, H, W), out1.shape
    assert bool(jnp.all(jnp.isfinite(out1)))
    ref1 = conv_block_ref(params, x, 1, True)
    err1 = float(jnp.max(jnp.abs(out1 - ref1)))
    assert err1 < 3e-2, f"stride-1 max abs err {err1}"

    # Config 2: stride-2, no activation (exercises strided masking / no-ReLU).
    fwd2 = jax.jit(functools.partial(conv_block_fwd, stride=2, activation=False))
    out2 = fwd2(params, x)
    jax.block_until_ready(out2)
    assert out2.shape == (N, Cout, H // 2, W // 2), out2.shape
    assert bool(jnp.all(jnp.isfinite(out2)))
    ref2 = conv_block_ref(params, x, 2, False)
    err2 = float(jnp.max(jnp.abs(out2 - ref2)))
    assert err2 < 3e-2, f"stride-2 max abs err {err2}"

    print("KERNEL_OK")
</pallas_src>

<mosaic_0001>
module attributes {stable_mosaic.version = 11 : i64} {
  func.func @_conv_stats_kernel(%arg0: i32, %arg1: i32, %arg2: memref<1x560x8xbf16, #tpu.memory_space<vmem>>, %arg3: memref<128x128xbf16, #tpu.memory_space<vmem>>, %arg4: memref<512x1xf32, #tpu.memory_space<vmem>>, %arg5: memref<512x128xbf16, #tpu.memory_space<vmem>>, %arg6: memref<1x2x128xf32, #tpu.memory_space<vmem>>) attributes {dimension_semantics = [#tpu.dimension_semantics<parallel>, #tpu.dimension_semantics<parallel>], iteration_bounds = array<i64: 2, 1>, scalar_prefetch = 0 : i64, scratch_operands = 0 : i64, tpu.core_type = #tpu.core_type<tc>, window_params = [{transform_indices = @transform_0, window_bounds = array<i64: 1, 560, 8>}, {transform_indices = @transform_1, window_bounds = array<i64: 128, 128>}, {transform_indices = @transform_2, window_bounds = array<i64: 512, 1>}, {transform_indices = @transform_3, window_bounds = array<i64: 512, 128>}, {transform_indices = @transform_4, window_bounds = array<i64: 1, 2, 128>}]} {
    %c0 = arith.constant 0 : index
    %c0_0 = arith.constant 0 : index
    %c0_1 = arith.constant 0 : index
    %0 = vector.load %arg2[%c0, %c0_0, %c0_1] : memref<1x560x8xbf16, #tpu.memory_space<vmem>>, vector<1x512x8xbf16>
    %1 = vector.shape_cast %0 : vector<1x512x8xbf16> to vector<512x8xbf16>
    %c0_2 = arith.constant 0 : index
    %c1 = arith.constant 1 : index
    %c0_3 = arith.constant 0 : index
    %2 = vector.load %arg2[%c0_2, %c1, %c0_3] : memref<1x560x8xbf16, #tpu.memory_space<vmem>>, vector<1x512x8xbf16>
    %3 = vector.shape_cast %2 : vector<1x512x8xbf16> to vector<512x8xbf16>
    %c0_4 = arith.constant 0 : index
    %c2 = arith.constant 2 : index
    %c0_5 = arith.constant 0 : index
    %4 = vector.load %arg2[%c0_4, %c2, %c0_5] : memref<1x560x8xbf16, #tpu.memory_space<vmem>>, vector<1x512x8xbf16>
    %5 = vector.shape_cast %4 : vector<1x512x8xbf16> to vector<512x8xbf16>
    %c0_6 = arith.constant 0 : index
    %c18 = arith.constant 18 : index
    %c0_7 = arith.constant 0 : index
    %6 = vector.load %arg2[%c0_6, %c18, %c0_7] : memref<1x560x8xbf16, #tpu.memory_space<vmem>>, vector<1x512x8xbf16>
    %7 = vector.shape_cast %6 : vector<1x512x8xbf16> to vector<512x8xbf16>
    %c0_8 = arith.constant 0 : index
    %c19 = arith.constant 19 : index
    %c0_9 = arith.constant 0 : index
    %8 = vector.load %arg2[%c0_8, %c19, %c0_9] : memref<1x560x8xbf16, #tpu.memory_space<vmem>>, vector<1x512x8xbf16>
    %9 = vector.shape_cast %8 : vector<1x512x8xbf16> to vector<512x8xbf16>
    %c0_10 = arith.constant 0 : index
    %c20 = arith.constant 20 : index
    %c0_11 = arith.constant 0 : index
    %10 = vector.load %arg2[%c0_10, %c20, %c0_11] : memref<1x560x8xbf16, #tpu.memory_space<vmem>>, vector<1x512x8xbf16>
    %11 = vector.shape_cast %10 : vector<1x512x8xbf16> to vector<512x8xbf16>
    %c0_12 = arith.constant 0 : index
    %c36 = arith.constant 36 : index
    %c0_13 = arith.constant 0 : index
    %12 = vector.load %arg2[%c0_12, %c36, %c0_13] : memref<1x560x8xbf16, #tpu.memory_space<vmem>>, vector<1x512x8xbf16>
    %13 = vector.shape_cast %12 : vector<1x512x8xbf16> to vector<512x8xbf16>
    %c0_14 = arith.constant 0 : index
    %c37 = arith.constant 37 : index
    %c0_15 = arith.constant 0 : index
    %14 = vector.load %arg2[%c0_14, %c37, %c0_15] : memref<1x560x8xbf16, #tpu.memory_space<vmem>>, vector<1x512x8xbf16>
    %15 = vector.shape_cast %14 : vector<1x512x8xbf16> to vector<512x8xbf16>
    %c0_16 = arith.constant 0 : index
    %c38 = arith.constant 38 : index
    %c0_17 = arith.constant 0 : index
    %16 = vector.load %arg2[%c0_16, %c38, %c0_17] : memref<1x560x8xbf16, #tpu.memory_space<vmem>>, vector<1x512x8xbf16>
    %17 = vector.shape_cast %16 : vector<1x512x8xbf16> to vector<512x8xbf16>
    %cst = arith.constant 0.000000e+00 : bf16
    %18 = vector.broadcast %cst : bf16 to vector<512x56xbf16>
    %19 = tpu.concatenate %1, %3, %5, %7, %9, %11, %13, %15, %17, %18 in 1 : vector<512x8xbf16>, vector<512x8xbf16>, vector<512x8xbf16>, vector<512x8xbf16>, vector<512x8xbf16>, vector<512x8xbf16>, vector<512x8xbf16>, vector<512x8xbf16>, vector<512x8xbf16>, vector<512x56xbf16> -> vector<512x128xbf16>
    %c0_18 = arith.constant 0 : index
    %c0_19 = arith.constant 0 : index
    %20 = vector.load %arg3[%c0_18, %c0_19] : memref<128x128xbf16, #tpu.memory_space<vmem>>, vector<128x128xbf16>
    %cst_20 = arith.constant dense<0.000000e+00> : vector<512x128xf32>
    %21 = tpu.matmul %19, %20, %cst_20 {dimension_numbers = #tpu.dot_dimension_numbers<[1], [0], [0], [1], [0, 0, 1, 1], [], []>} : vector<512x128xbf16>, vector<128x128xbf16>, vector<512x128xf32> -> vector<512x128xf32>
    %22 = arith.truncf %21 : vector<512x128xf32> to vector<512x128xbf16>
    %c0_21 = arith.constant 0 : index
    %c0_22 = arith.constant 0 : index
    %23 = vector.load %arg5[%c0_21, %c0_22] : memref<512x128xbf16, #tpu.memory_space<vmem>>, vector<512x128xbf16>
    tpu.vector_store %arg5[%c0_21, %c0_22], %22 {strides = array<i32>} : memref<512x128xbf16, #tpu.memory_space<vmem>>, vector<512x128xbf16>,
    %c0_23 = arith.constant 0 : index
    %c0_24 = arith.constant 0 : index
    %24 = vector.load %arg4[%c0_23, %c0_24] : memref<512x1xf32, #tpu.memory_space<vmem>>, vector<512x1xf32>
    %25 = vector.broadcast %24 : vector<512x1xf32> to vector<512x128xf32>
    %26 = arith.mulf %21, %25 : vector<512x128xf32>
    %cst_25 = arith.constant dense<0.000000e+00> : vector<128xf32>
    %27 = vector.multi_reduction <add>, %26, %cst_25 [0] : vector<512x128xf32> to vector<128xf32>
    %28 = vector.shape_cast %27 : vector<128xf32> to vector<1x128xf32>
    %29 = arith.mulf %26, %21 : vector<512x128xf32>
    %cst_26 = arith.constant dense<0.000000e+00> : vector<128xf32>
    %30 = vector.multi_reduction <add>, %29, %cst_26 [0] : vector<512x128xf32> to vector<128xf32>
    %31 = vector.shape_cast %30 : vector<128xf32> to vector<1x128xf32>
    %32 = tpu.concatenate %28, %31 in 0 : vector<1x128xf32>, vector<1x128xf32> -> vector<2x128xf32>
    %c0_27 = arith.constant 0 : index
    %c0_28 = arith.constant 0 : index
    %c0_29 = arith.constant 0 : index
    %33 = vector.load %arg6[%c0_27, %c0_28, %c0_29] : memref<1x2x128xf32, #tpu.memory_space<vmem>>, vector<1x2x128xf32>
    %34 = vector.shape_cast %33 : vector<1x2x128xf32> to vector<2x128xf32>
    %35 = vector.shape_cast %32 : vector<2x128xf32> to vector<1x2x128xf32>
    tpu.vector_store %arg6[%c0_27, %c0_28, %c0_29], %35 {strides = array<i32>} : memref<1x2x128xf32, #tpu.memory_space<vmem>>, vector<1x2x128xf32>,
    return
  }
  func.func @transform_0(%arg0: i32, %arg1: i32) -> (i32, i32, i32) {
    %c0_i32 = arith.constant 0 : i32
    %c0_i32_0 = arith.constant 0 : i32
    %c0_i32_1 = arith.constant 0 : i32
    return %arg0, %c0_i32, %c0_i32_0 : i32, i32, i32
  }
  func.func @transform_1(%arg0: i32, %arg1: i32) -> (i32, i32) {
    %c0_i32 = arith.constant 0 : i32
    %c0_i32_0 = arith.constant 0 : i32
    return %c0_i32, %arg1 : i32, i32
  }
  func.func @transform_2(%arg0: i32, %arg1: i32) -> (i32, i32) {
    %c0_i32 = arith.constant 0 : i32
    %c0_i32_0 = arith.constant 0 : i32
    return %arg0, %c0_i32 : i32, i32
  }
  func.func @transform_3(%arg0: i32, %arg1: i32) -> (i32, i32) {
    %c0_i32 = arith.constant 0 : i32
    return %arg0, %arg1 : i32, i32
  }
  func.func @transform_4(%arg0: i32, %arg1: i32) -> (i32, i32, i32) {
    %c0_i32 = arith.constant 0 : i32
    %c0_i32_0 = arith.constant 0 : i32
    return %arg0, %c0_i32, %arg1 : i32, i32, i32
  }
}

module attributes {stable_mosaic.version = 11 : i64} {
  func.func @_bn_apply_kernel(%arg0: i32, %arg1: i32, %arg2: memref<512x128xbf16, #tpu.memory_space<vmem>>, %arg3: memref<1x128xf32, #tpu.memory_space<vmem>>, %arg4: memref<1x128xf32, #tpu.memory_space<vmem>>, %arg5: memref<512x128xf32, #tpu.memory_space<vmem>>) attributes {dimension_semantics = [#tpu.dimension_semantics<parallel>, #tpu.dimension_semantics<parallel>], iteration_bounds = array<i64: 2, 1>, scalar_prefetch = 0 : i64, scratch_operands = 0 : i64, tpu.core_type = #tpu.core_type<tc>, window_params = [{transform_indices = @transform_0, window_bounds = array<i64: 512, 128>}, {transform_indices = @transform_1, window_bounds = array<i64: 1, 128>}, {transform_indices = @transform_2, window_bounds = array<i64: 1, 128>}, {transform_indices = @transform_3, window_bounds = array<i64: 512, 128>}]} {
    %c0 = arith.constant 0 : index
    %c0_0 = arith.constant 0 : index
    %0 = vector.load %arg2[%c0, %c0_0] : memref<512x128xbf16, #tpu.memory_space<vmem>>, vector<512x128xbf16>
    %1 = arith.extf %0 : vector<512x128xbf16> to vector<512x128xf32>
    %c0_1 = arith.constant 0 : index
    %c0_2 = arith.constant 0 : index
    %2 = vector.load %arg3[%c0_1, %c0_2] : memref<1x128xf32, #tpu.memory_space<vmem>>, vector<1x128xf32>
    %3 = vector.broadcast %2 : vector<1x128xf32> to vector<512x128xf32>
    %4 = arith.mulf %1, %3 : vector<512x128xf32>
    %c0_3 = arith.constant 0 : index
    %c0_4 = arith.constant 0 : index
    %5 = vector.load %arg4[%c0_3, %c0_4] : memref<1x128xf32, #tpu.memory_space<vmem>>, vector<1x128xf32>
    %6 = vector.broadcast %5 : vector<1x128xf32> to vector<512x128xf32>
    %7 = arith.addf %4, %6 : vector<512x128xf32>
    %cst = arith.constant 0.000000e+00 : f32
    %8 = vector.broadcast %cst : f32 to vector<512x128xf32>
    %9 = arith.maximumf %7, %8 : vector<512x128xf32>
    %c0_5 = arith.constant 0 : index
    %c0_6 = arith.constant 0 : index
    %10 = vector.load %arg5[%c0_5, %c0_6] : memref<512x128xf32, #tpu.memory_space<vmem>>, vector<512x128xf32>
    tpu.vector_store %arg5[%c0_5, %c0_6], %9 {strides = array<i32>} : memref<512x128xf32, #tpu.memory_space<vmem>>, vector<512x128xf32>,
    return
  }
  func.func @transform_0(%arg0: i32, %arg1: i32) -> (i32, i32) {
    %c0_i32 = arith.constant 0 : i32
    return %arg0, %arg1 : i32, i32
  }
  func.func @transform_1(%arg0: i32, %arg1: i32) -> (i32, i32) {
    %c0_i32 = arith.constant 0 : i32
    %c0_i32_0 = arith.constant 0 : i32
    return %c0_i32, %arg1 : i32, i32
  }
  func.func @transform_2(%arg0: i32, %arg1: i32) -> (i32, i32) {
    %c0_i32 = arith.constant 0 : i32
    %c0_i32_0 = arith.constant 0 : i32
    return %c0_i32, %arg1 : i32, i32
  }
  func.func @transform_3(%arg0: i32, %arg1: i32) -> (i32, i32) {
    %c0_i32 = arith.constant 0 : i32
    return %arg0, %arg1 : i32, i32
  }
}

</mosaic_0001>

<bundles_post_ra>
// kernel: conv_block_fwd.3
= control target key start
LH: loop header
LB: loop body
LE: loop exit
PB: predicated region body
PF: predicated region fallthrough
CT: control target
= control target key end

     0   :  { %s975_s12 = smov 0   ;;  %s977_s13 = smov 0   ;;  %s1250_s0 = inlined_call_operand.vmem [shape: bf16[1024,128], index: 0, kind: input, shape index: {}]   ;;  %s1251_s1 = inlined_call_operand.vmem [shape: f32[1,128], index: 1, kind: input, shape index: {}]   ;;  %s1252_s2 = inlined_call_operand.vmem [shape: f32[1,128], index: 2, kind: input, shape index: {}]   ;;  %s1253_s3 = inlined_call_operand.vmem [shape: f32[1024,128], index: 3, kind: output, shape index: {}]  }
   0x1   :  { %s979_s14 = smov 0  }
   0x2 LB: > { %s25_s15 = sadd.s32 1, %s949_s13  ;;  %p739_p0 = scmp.ge.s32.totalorder %s953_s14, 1  ;;  %s953_s14 = sphi %s979_s14, %s13_s14   ;;  %s949_s13 = sphi %s977_s13, %s1255_s13   ;;  %s945_s12 = sphi %s975_s12, %s1254_s12  }
   0x3   : > { %p27_p1 = scmp.ge.s32.totalorder %s25_s15, 2  ;;  %p173_p2 = scmp.lt.s32.totalorder %s953_s14, 3 }
   0x5   : > { %s1257_s15 = smov (%p27_p1, %s25_s15), 0  ;;  %p174_p3 = pnand %p739_p0, %p173_p2 }
   0x6   : > { %s740_s16 = sshll.u32 (!%p174_p3), %s945_s12, 6 }
   0x7   : > { %177 = sbr.rel (%p174_p3) target bundleno = 84 (0x54), region = 32  ;;  %p210_p4 = scmp.lt.s32.totalorder (!%p174_p3), %s740_s16, 127 }
   0xc   : > { %s1259_s16 = smov (!%p210_p4, %s740_s16), 127  ;;  %v1004_v0 = vld [vmem:[%s1251_s1] ss:$0 sm:$0xff] }
   0xd   : > { %s741_s17 = sshll.u32 %s1259_s16, 2  ;;  %v1013_v9 = vld [vmem:[%s1252_s2] ss:$0 sm:$0xff]  ;;  %s743_s25 = sshll.u32 %s1259_s16, 3 }
   0xe   : > { %s999_s20 = scalar_lea.vmem %s1250_s0, %s741_s17  ;;  %s1031_s28 = scalar_lea.vmem %s1253_s3, %s743_s25 }
   0xf   : > { %v749_v1 = vld [vmem:[%s999_s20] sm:$0xff]   ;;  %v876_v2 = vld [vmem:[%s999_s20 + $0x8] sm:$0xff]   ;;  %v877_v3 = vld [vmem:[%s999_s20 + $0x10] sm:$0xff]  }
  0x10   : > { %v750_v4 = vunpack.c.l.bf16 %v749_v1  ;;  %v751_v5 = vunpack.c.h.bf16 %v749_v1  ;;  %v754_v6 = vunpack.c.l.bf16 %v876_v2  ;;  %v755_v7 = vunpack.c.h.bf16 %v876_v2  ;;  %v878_v8 = vld [vmem:[%s999_s20 + $0x18] sm:$0xff]   ;;  %v879_v30 = vld [vmem:[%s999_s20 + $0x20] sm:$0xff]   ;;  %v880_v31 = vld [vmem:[%s999_s20 + $0x28] sm:$0xff]  }
  0x11   : > { %v758_v10 = vunpack.c.l.bf16 %v877_v3  ;;  %v759_v11 = vunpack.c.h.bf16 %v877_v3  ;;  %v762_v12 = vunpack.c.l.bf16 %v878_v8  ;;  %v763_v13 = vunpack.c.h.bf16 %v878_v8  ;;  %v881_v36 = vld [vmem:[%s999_s20 + $0x30] sm:$0xff]   ;;  %v882_v37 = vld [vmem:[%s999_s20 + $0x38] sm:$0xff]   ;;  %v883_v3 = vld [vmem:[%s999_s20 + $0x40] sm:$0xff]  }
  0x12   : > { %v368_v14 = vmul.f32 %v750_v4, %v1004_v0  ;;  %v369_v15 = vmul.f32 %v751_v5, %v1004_v0  ;;  %v370_v16 = vmul.f32 %v754_v6, %v1004_v0  ;;  %v371_v17 = vmul.f32 %v755_v7, %v1004_v0  ;;  %v884_v4 = vld [vmem:[%s999_s20 + $0x48] sm:$0xff]  }
  0x13   : > { %v372_v18 = vmul.f32 %v758_v10, %v1004_v0  ;;  %v373_v19 = vmul.f32 %v759_v11, %v1004_v0  ;;  %v374_v20 = vmul.f32 %v762_v12, %v1004_v0  ;;  %v375_v21 = vmul.f32 %v763_v13, %v1004_v0  ;;  %v885_v10 = vld [vmem:[%s999_s20 + $0x50] sm:$0xff]   ;;  %v886_v11 = vld [vmem:[%s999_s20 + $0x58] sm:$0xff]  }
  0x14   : > { %v439_v22 = vadd.f32 %v1013_v9, %v368_v14  ;;  %v440_v23 = vadd.f32 %v1013_v9, %v369_v15  ;;  %v441_v24 = vadd.f32 %v1013_v9, %v370_v16  ;;  %v442_v25 = vadd.f32 %v1013_v9, %v371_v17 }
  0x15   : > { %v443_v26 = vadd.f32 %v1013_v9, %v372_v18  ;;  %v444_v27 = vadd.f32 %v1013_v9, %v373_v19  ;;  %v445_v28 = vadd.f32 %v1013_v9, %v374_v20  ;;  %v446_v29 = vadd.f32 %v1013_v9, %v375_v21 }
  0x16   : > { %v503_v32 = vmax.f32 %v439_v22, 0.0  ;;  %v504_v33 = vmax.f32 %v440_v23, 0.0  ;;  %v505_v34 = vmax.f32 %v441_v24, 0.0  ;;  %v506_v35 = vmax.f32 %v442_v25, 0.0 }
  0x17   : > { %v507_v38 = vmax.f32 %v443_v26, 0.0  ;;  %v508_v39 = vmax.f32 %v444_v27, 0.0  ;;  %v509_v40 = vmax.f32 %v445_v28, 0.0  ;;  %v510_v41 = vmax.f32 %v446_v29, 0.0 }
  0x18   : > { %567 = vst [vmem:[%s1031_s28] sm:$0xff] %v503_v32  ;;  %568 = vst [vmem:[%s1031_s28 + $0x8] sm:$0xff] %v504_v33  ;;  %v766_v42 = vunpack.c.l.bf16 %v879_v30  ;;  %v767_v43 = vunpack.c.h.bf16 %v879_v30  ;;  %v770_v44 = vunpack.c.l.bf16 %v880_v31  ;;  %v771_v45 = vunpack.c.h.bf16 %v880_v31 }
  0x19   : > { %569 = vst [vmem:[%s1031_s28 + $0x10] sm:$0xff] %v505_v34  ;;  %570 = vst [vmem:[%s1031_s28 + $0x18] sm:$0xff] %v506_v35  ;;  %v774_v46 = vunpack.c.l.bf16 %v881_v36  ;;  %v775_v47 = vunpack.c.h.bf16 %v881_v36  ;;  %v778_v48 = vunpack.c.l.bf16 %v882_v37  ;;  %v779_v49 = vunpack.c.h.bf16 %v882_v37 }
  0x1a   : > { %571 = vst [vmem:[%s1031_s28 + $0x20] sm:$0xff] %v507_v38  ;;  %572 = vst [vmem:[%s1031_s28 + $0x28] sm:$0xff] %v508_v39  ;;  %v376_v50 = vmul.f32 %v766_v42, %v1004_v0  ;;  %v377_v51 = vmul.f32 %v767_v43, %v1004_v0  ;;  %v378_v52 = vmul.f32 %v770_v44, %v1004_v0  ;;  %v782_v16 = vunpack.c.l.bf16 %v883_v3 }
  0x1b   : > { %573 = vst [vmem:[%s1031_s28 + $0x30] sm:$0xff] %v509_v40  ;;  %574 = vst [vmem:[%s1031_s28 + $0x38] sm:$0xff] %v510_v41  ;;  %v379_v53 = vmul.f32 %v771_v45, %v1004_v0  ;;  %v380_v54 = vmul.f32 %v774_v46, %v1004_v0  ;;  %v381_v55 = vmul.f32 %v775_v47, %v1004_v0  ;;  %v783_v17 = vunpack.c.h.bf16 %v883_v3  ;;  %v887_v40 = vld [vmem:[%s999_s20 + $0x60] sm:$0xff]   ;;  %v888_v41 = vld [vmem:[%s999_s20 + $0x68] sm:$0xff]  }
  0x1c   : > { %v382_v56 = vmul.f32 %v778_v48, %v1004_v0  ;;  %v383_v57 = vmul.f32 %v779_v49, %v1004_v0  ;;  %v447_v58 = vadd.f32 %v1013_v9, %v376_v50  ;;  %v448_v59 = vadd.f32 %v1013_v9, %v377_v51  ;;  %v889_v46 = vld [vmem:[%s999_s20 + $0x70] sm:$0xff]   ;;  %v890_v47 = vld [vmem:[%s999_s20 + $0x78] sm:$0xff]  }
  0x1d   : > { %v449_v60 = vadd.f32 %v1013_v9, %v378_v52  ;;  %v450_v61 = vadd.f32 %v1013_v9, %v379_v53  ;;  %v451_v62 = vadd.f32 %v1013_v9, %v380_v54  ;;  %v452_v63 = vadd.f32 %v1013_v9, %v381_v55 }
  0x1e   : > { %v453_v1 = vadd.f32 %v1013_v9, %v382_v56  ;;  %v454_v2 = vadd.f32 %v1013_v9, %v383_v57  ;;  %v511_v5 = vmax.f32 %v447_v58, 0.0  ;;  %v512_v6 = vmax.f32 %v448_v59, 0.0 }
  0x1f   : > { %v513_v7 = vmax.f32 %v449_v60, 0.0  ;;  %v514_v8 = vmax.f32 %v450_v61, 0.0  ;;  %v515_v12 = vmax.f32 %v451_v62, 0.0  ;;  %v516_v13 = vmax.f32 %v452_v63, 0.0 }
  0x20   : > { %v517_v14 = vmax.f32 %v453_v1, 0.0  ;;  %v518_v15 = vmax.f32 %v454_v2, 0.0  ;;  %575 = vst [vmem:[%s1031_s28 + $0x40] sm:$0xff] %v511_v5  ;;  %576 = vst [vmem:[%s1031_s28 + $0x48] sm:$0xff] %v512_v6  ;;  %v786_v18 = vunpack.c.l.bf16 %v884_v4  ;;  %v787_v19 = vunpack.c.h.bf16 %v884_v4 }
  0x21   : > { %577 = vst [vmem:[%s1031_s28 + $0x50] sm:$0xff] %v513_v7  ;;  %578 = vst [vmem:[%s1031_s28 + $0x58] sm:$0xff] %v514_v8  ;;  %v790_v20 = vunpack.c.l.bf16 %v885_v10  ;;  %v791_v21 = vunpack.c.h.bf16 %v885_v10  ;;  %v794_v22 = vunpack.c.l.bf16 %v886_v11  ;;  %v795_v23 = vunpack.c.h.bf16 %v886_v11 }
  0x22   : > { %579 = vst [vmem:[%s1031_s28 + $0x60] sm:$0xff] %v515_v12  ;;  %580 = vst [vmem:[%s1031_s28 + $0x68] sm:$0xff] %v516_v13  ;;  %v384_v24 = vmul.f32 %v782_v16, %v1004_v0  ;;  %v385_v25 = vmul.f32 %v783_v17, %v1004_v0  ;;  %v386_v26 = vmul.f32 %v786_v18, %v1004_v0  ;;  %v798_v52 = vunpack.c.l.bf16 %v887_v40 }
  0x23   : > { %581 = vst [vmem:[%s1031_s28 + $0x70] sm:$0xff] %v517_v14  ;;  %582 = vst [vmem:[%s1031_s28 + $0x78] sm:$0xff] %v518_v15  ;;  %v387_v27 = vmul.f32 %v787_v19, %v1004_v0  ;;  %v388_v28 = vmul.f32 %v790_v20, %v1004_v0  ;;  %v389_v29 = vmul.f32 %v791_v21, %v1004_v0  ;;  %v799_v53 = vunpack.c.h.bf16 %v887_v40  ;;  %v891_v14 = vld [vmem:[%s999_s20 + $0x80] sm:$0xff]   ;;  %v892_v15 = vld [vmem:[%s999_s20 + $0x88] sm:$0xff]  }
  0x24   : > { %v390_v30 = vmul.f32 %v794_v22, %v1004_v0  ;;  %v391_v31 = vmul.f32 %v795_v23, %v1004_v0  ;;  %v455_v32 = vadd.f32 %v1013_v9, %v384_v24  ;;  %v456_v33 = vadd.f32 %v1013_v9, %v385_v25  ;;  %v893_v20 = vld [vmem:[%s999_s20 + $0x90] sm:$0xff]   ;;  %v894_v21 = vld [vmem:[%s999_s20 + $0x98] sm:$0xff]  }
  0x25   : > { %v457_v34 = vadd.f32 %v1013_v9, %v386_v26  ;;  %v458_v35 = vadd.f32 %v1013_v9, %v387_v27  ;;  %v459_v36 = vadd.f32 %v1013_v9, %v388_v28  ;;  %v460_v37 = vadd.f32 %v1013_v9, %v389_v29 }
  0x26   : > { %v461_v38 = vadd.f32 %v1013_v9, %v390_v30  ;;  %v462_v39 = vadd.f32 %v1013_v9, %v391_v31  ;;  %v519_v42 = vmax.f32 %v455_v32, 0.0  ;;  %v520_v43 = vmax.f32 %v456_v33, 0.0 }
  0x27   : > { %v521_v44 = vmax.f32 %v457_v34, 0.0  ;;  %v522_v45 = vmax.f32 %v458_v35, 0.0  ;;  %v523_v48 = vmax.f32 %v459_v36, 0.0  ;;  %v524_v49 = vmax.f32 %v460_v37, 0.0 }
  0x28   : > { %v525_v50 = vmax.f32 %v461_v38, 0.0  ;;  %v526_v51 = vmax.f32 %v462_v39, 0.0  ;;  %583 = vst [vmem:[%s1031_s28 + $0x80] sm:$0xff] %v519_v42  ;;  %584 = vst [vmem:[%s1031_s28 + $0x88] sm:$0xff] %v520_v43  ;;  %v802_v54 = vunpack.c.l.bf16 %v888_v41  ;;  %v803_v55 = vunpack.c.h.bf16 %v888_v41 }
  0x29   : > { %585 = vst [vmem:[%s1031_s28 + $0x90] sm:$0xff] %v521_v44  ;;  %586 = vst [vmem:[%s1031_s28 + $0x98] sm:$0xff] %v522_v45  ;;  %v806_v56 = vunpack.c.l.bf16 %v889_v46  ;;  %v807_v57 = vunpack.c.h.bf16 %v889_v46  ;;  %v810_v58 = vunpack.c.l.bf16 %v890_v47  ;;  %v811_v59 = vunpack.c.h.bf16 %v890_v47 }
  0x2a   : > { %587 = vst [vmem:[%s1031_s28 + $0xa0] sm:$0xff] %v523_v48  ;;  %588 = vst [vmem:[%s1031_s28 + $0xa8] sm:$0xff] %v524_v49  ;;  %v392_v60 = vmul.f32 %v798_v52, %v1004_v0  ;;  %v393_v61 = vmul.f32 %v799_v53, %v1004_v0  ;;  %v394_v62 = vmul.f32 %v802_v54, %v1004_v0  ;;  %v814_v26 = vunpack.c.l.bf16 %v891_v14 }
  0x2b   : > { %589 = vst [vmem:[%s1031_s28 + $0xb0] sm:$0xff] %v525_v50  ;;  %590 = vst [vmem:[%s1031_s28 + $0xb8] sm:$0xff] %v526_v51  ;;  %v395_v63 = vmul.f32 %v803_v55, %v1004_v0  ;;  %v396_v1 = vmul.f32 %v806_v56, %v1004_v0  ;;  %v397_v2 = vmul.f32 %v807_v57, %v1004_v0  ;;  %v815_v27 = vunpack.c.h.bf16 %v891_v14  ;;  %v895_v50 = vld [vmem:[%s999_s20 + $0xa0] sm:$0xff]   ;;  %v896_v51 = vld [vmem:[%s999_s20 + $0xa8] sm:$0xff]  }
  0x2c   : > { %v398_v3 = vmul.f32 %v810_v58, %v1004_v0  ;;  %v399_v4 = vmul.f32 %v811_v59, %v1004_v0  ;;  %v463_v5 = vadd.f32 %v1013_v9, %v392_v60  ;;  %v464_v6 = vadd.f32 %v1013_v9, %v393_v61  ;;  %v897_v56 = vld [vmem:[%s999_s20 + $0xb0] sm:$0xff]   ;;  %v898_v57 = vld [vmem:[%s999_s20 + $0xb8] sm:$0xff]  }
  0x2d   : > { %v465_v7 = vadd.f32 %v1013_v9, %v394_v62  ;;  %v466_v8 = vadd.f32 %v1013_v9, %v395_v63  ;;  %v467_v10 = vadd.f32 %v1013_v9, %v396_v1  ;;  %v468_v11 = vadd.f32 %v1013_v9, %v397_v2 }
  0x2e   : > { %v469_v12 = vadd.f32 %v1013_v9, %v398_v3  ;;  %v470_v13 = vadd.f32 %v1013_v9, %v399_v4  ;;  %v527_v16 = vmax.f32 %v463_v5, 0.0  ;;  %v528_v17 = vmax.f32 %v464_v6, 0.0 }
  0x2f   : > { %v529_v18 = vmax.f32 %v465_v7, 0.0  ;;  %v530_v19 = vmax.f32 %v466_v8, 0.0  ;;  %v531_v22 = vmax.f32 %v467_v10, 0.0  ;;  %v532_v23 = vmax.f32 %v468_v11, 0.0 }
  0x30   : > { %v533_v24 = vmax.f32 %v469_v12, 0.0  ;;  %v534_v25 = vmax.f32 %v470_v13, 0.0  ;;  %591 = vst [vmem:[%s1031_s28 + $0xc0] sm:$0xff] %v527_v16  ;;  %592 = vst [vmem:[%s1031_s28 + $0xc8] sm:$0xff] %v528_v17  ;;  %v818_v28 = vunpack.c.l.bf16 %v892_v15  ;;  %v819_v29 = vunpack.c.h.bf16 %v892_v15 }
  0x31   : > { %593 = vst [vmem:[%s1031_s28 + $0xd0] sm:$0xff] %v529_v18  ;;  %594 = vst [vmem:[%s1031_s28 + $0xd8] sm:$0xff] %v530_v19  ;;  %v822_v30 = vunpack.c.l.bf16 %v893_v20  ;;  %v823_v31 = vunpack.c.h.bf16 %v893_v20  ;;  %v826_v32 = vunpack.c.l.bf16 %v894_v21  ;;  %v827_v33 = vunpack.c.h.bf16 %v894_v21 }
  0x32   : > { %595 = vst [vmem:[%s1031_s28 + $0xe0] sm:$0xff] %v531_v22  ;;  %596 = vst [vmem:[%s1031_s28 + $0xe8] sm:$0xff] %v532_v23  ;;  %v400_v34 = vmul.f32 %v814_v26, %v1004_v0  ;;  %v401_v35 = vmul.f32 %v815_v27, %v1004_v0  ;;  %v402_v36 = vmul.f32 %v818_v28, %v1004_v0  ;;  %v830_v62 = vunpack.c.l.bf16 %v895_v50 }
  0x33   : > { %597 = vst [vmem:[%s1031_s28 + $0xf0] sm:$0xff] %v533_v24  ;;  %598 = vst [vmem:[%s1031_s28 + $0xf8] sm:$0xff] %v534_v25  ;;  %v403_v37 = vmul.f32 %v819_v29, %v1004_v0  ;;  %v404_v38 = vmul.f32 %v822_v30, %v1004_v0  ;;  %v405_v39 = vmul.f32 %v823_v31, %v1004_v0  ;;  %v831_v63 = vunpack.c.h.bf16 %v895_v50  ;;  %v899_v24 = vld [vmem:[%s999_s20 + $0xc0] sm:$0xff]   ;;  %v900_v25 = vld [vmem:[%s999_s20 + $0xc8] sm:$0xff]  }
  0x34   : > { %v406_v40 = vmul.f32 %v826_v32, %v1004_v0  ;;  %v407_v41 = vmul.f32 %v827_v33, %v1004_v0  ;;  %v471_v42 = vadd.f32 %v1013_v9, %v400_v34  ;;  %v472_v43 = vadd.f32 %v1013_v9, %v401_v35  ;;  %v901_v30 = vld [vmem:[%s999_s20 + $0xd0] sm:$0xff]   ;;  %v902_v31 = vld [vmem:[%s999_s20 + $0xd8] sm:$0xff]  }
  0x35   : > { %v473_v44 = vadd.f32 %v1013_v9, %v402_v36  ;;  %v474_v45 = vadd.f32 %v1013_v9, %v403_v37  ;;  %v475_v46 = vadd.f32 %v1013_v9, %v404_v38  ;;  %v476_v47 = vadd.f32 %v1013_v9, %v405_v39 }
  0x36   : > { %v477_v48 = vadd.f32 %v1013_v9, %v406_v40  ;;  %v478_v49 = vadd.f32 %v1013_v9, %v407_v41  ;;  %v535_v52 = vmax.f32 %v471_v42, 0.0  ;;  %v536_v53 = vmax.f32 %v472_v43, 0.0 }
  0x37   : > { %v537_v54 = vmax.f32 %v473_v44, 0.0  ;;  %v538_v55 = vmax.f32 %v474_v45, 0.0  ;;  %v539_v58 = vmax.f32 %v475_v46, 0.0  ;;  %v540_v59 = vmax.f32 %v476_v47, 0.0 }
  0x38   : > { %v541_v60 = vmax.f32 %v477_v48, 0.0  ;;  %v542_v61 = vmax.f32 %v478_v49, 0.0  ;;  %599 = vst [vmem:[%s1031_s28 + $0x100] sm:$0xff] %v535_v52  ;;  %600 = vst [vmem:[%s1031_s28 + $0x108] sm:$0xff] %v536_v53  ;;  %v834_v1 = vunpack.c.l.bf16 %v896_v51  ;;  %v835_v2 = vunpack.c.h.bf16 %v896_v51 }
  0x39   : > { %601 = vst [vmem:[%s1031_s28 + $0x110] sm:$0xff] %v537_v54  ;;  %602 = vst [vmem:[%s1031_s28 + $0x118] sm:$0xff] %v538_v55  ;;  %v838_v3 = vunpack.c.l.bf16 %v897_v56  ;;  %v839_v4 = vunpack.c.h.bf16 %v897_v56  ;;  %v842_v5 = vunpack.c.l.bf16 %v898_v57  ;;  %v843_v6 = vunpack.c.h.bf16 %v898_v57 }
  0x3a   : > { %603 = vst [vmem:[%s1031_s28 + $0x120] sm:$0xff] %v539_v58  ;;  %604 = vst [vmem:[%s1031_s28 + $0x128] sm:$0xff] %v540_v59  ;;  %v408_v7 = vmul.f32 %v830_v62, %v1004_v0  ;;  %v409_v8 = vmul.f32 %v831_v63, %v1004_v0  ;;  %v410_v10 = vmul.f32 %v834_v1, %v1004_v0  ;;  %v846_v36 = vunpack.c.l.bf16 %v899_v24 }
  0x3b   : > { %605 = vst [vmem:[%s1031_s28 + $0x130] sm:$0xff] %v541_v60  ;;  %606 = vst [vmem:[%s1031_s28 + $0x138] sm:$0xff] %v542_v61  ;;  %v411_v11 = vmul.f32 %v835_v2, %v1004_v0  ;;  %v412_v12 = vmul.f32 %v838_v3, %v1004_v0  ;;  %v413_v13 = vmul.f32 %v839_v4, %v1004_v0  ;;  %v847_v37 = vunpack.c.h.bf16 %v899_v24  ;;  %v903_v60 = vld [vmem:[%s999_s20 + $0xe0] sm:$0xff]   ;;  %v904_v61 = vld [vmem:[%s999_s20 + $0xe8] sm:$0xff]  }
  0x3c   : > { %v414_v14 = vmul.f32 %v842_v5, %v1004_v0  ;;  %v415_v15 = vmul.f32 %v843_v6, %v1004_v0  ;;  %v479_v16 = vadd.f32 %v1013_v9, %v408_v7  ;;  %v480_v17 = vadd.f32 %v1013_v9, %v409_v8  ;;  %v905_v3 = vld [vmem:[%s999_s20 + $0xf0] sm:$0xff]   ;;  %v906_v4 = vld [vmem:[%s999_s20 + $0xf8] sm:$0xff]  }
  0x3d   : > { %v481_v18 = vadd.f32 %v1013_v9, %v410_v10  ;;  %v482_v19 = vadd.f32 %v1013_v9, %v411_v11  ;;  %v483_v20 = vadd.f32 %v1013_v9, %v412_v12  ;;  %v484_v21 = vadd.f32 %v1013_v9, %v413_v13 }
  0x3e   : > { %v485_v22 = vadd.f32 %v1013_v9, %v414_v14  ;;  %v486_v23 = vadd.f32 %v1013_v9, %v415_v15  ;;  %v543_v26 = vmax.f32 %v479_v16, 0.0  ;;  %v544_v27 = vmax.f32 %v480_v17, 0.0 }
  0x3f   : > { %v545_v28 = vmax.f32 %v481_v18, 0.0  ;;  %v546_v29 = vmax.f32 %v482_v19, 0.0  ;;  %v547_v32 = vmax.f32 %v483_v20, 0.0  ;;  %v548_v33 = vmax.f32 %v484_v21, 0.0 }
  0x40   : > { %v549_v34 = vmax.f32 %v485_v22, 0.0  ;;  %v550_v35 = vmax.f32 %v486_v23, 0.0  ;;  %607 = vst [vmem:[%s1031_s28 + $0x140] sm:$0xff] %v543_v26  ;;  %608 = vst [vmem:[%s1031_s28 + $0x148] sm:$0xff] %v544_v27  ;;  %v850_v38 = vunpack.c.l.bf16 %v900_v25  ;;  %v851_v39 = vunpack.c.h.bf16 %v900_v25 }
  0x41   : > { %609 = vst [vmem:[%s1031_s28 + $0x150] sm:$0xff] %v545_v28  ;;  %610 = vst [vmem:[%s1031_s28 + $0x158] sm:$0xff] %v546_v29  ;;  %v854_v40 = vunpack.c.l.bf16 %v901_v30  ;;  %v855_v41 = vunpack.c.h.bf16 %v901_v30  ;;  %v858_v42 = vunpack.c.l.bf16 %v902_v31  ;;  %v859_v43 = vunpack.c.h.bf16 %v902_v31 }
  0x42   : > { %611 = vst [vmem:[%s1031_s28 + $0x160] sm:$0xff] %v547_v32  ;;  %612 = vst [vmem:[%s1031_s28 + $0x168] sm:$0xff] %v548_v33  ;;  %v416_v44 = vmul.f32 %v846_v36, %v1004_v0  ;;  %v417_v45 = vmul.f32 %v847_v37, %v1004_v0  ;;  %v418_v46 = vmul.f32 %v850_v38, %v1004_v0  ;;  %v862_v10 = vunpack.c.l.bf16 %v903_v60 }
  0x43   : > { %613 = vst [vmem:[%s1031_s28 + $0x170] sm:$0xff] %v549_v34  ;;  %614 = vst [vmem:[%s1031_s28 + $0x178] sm:$0xff] %v550_v35  ;;  %v419_v47 = vmul.f32 %v851_v39, %v1004_v0  ;;  %v420_v48 = vmul.f32 %v854_v40, %v1004_v0  ;;  %v421_v49 = vmul.f32 %v855_v41, %v1004_v0  ;;  %v863_v11 = vunpack.c.h.bf16 %v903_v60 }
  0x44   : > { %v422_v50 = vmul.f32 %v858_v42, %v1004_v0  ;;  %v423_v51 = vmul.f32 %v859_v43, %v1004_v0  ;;  %v487_v52 = vadd.f32 %v1013_v9, %v416_v44  ;;  %v488_v53 = vadd.f32 %v1013_v9, %v417_v45 }
  0x45   : > { %v489_v54 = vadd.f32 %v1013_v9, %v418_v46  ;;  %v490_v55 = vadd.f32 %v1013_v9, %v419_v47  ;;  %v491_v56 = vadd.f32 %v1013_v9, %v420_v48  ;;  %v492_v57 = vadd.f32 %v1013_v9, %v421_v49 }
  0x46   : > { %v493_v58 = vadd.f32 %v1013_v9, %v422_v50  ;;  %v494_v59 = vadd.f32 %v1013_v9, %v423_v51  ;;  %v551_v62 = vmax.f32 %v487_v52, 0.0  ;;  %v552_v63 = vmax.f32 %v488_v53, 0.0 }
  0x47   : > { %v553_v1 = vmax.f32 %v489_v54, 0.0  ;;  %v554_v2 = vmax.f32 %v490_v55, 0.0  ;;  %v555_v5 = vmax.f32 %v491_v56, 0.0  ;;  %v556_v6 = vmax.f32 %v492_v57, 0.0 }
  0x48   : > { %v557_v7 = vmax.f32 %v493_v58, 0.0  ;;  %v558_v8 = vmax.f32 %v494_v59, 0.0  ;;  %615 = vst [vmem:[%s1031_s28 + $0x180] sm:$0xff] %v551_v62  ;;  %616 = vst [vmem:[%s1031_s28 + $0x188] sm:$0xff] %v552_v63  ;;  %v866_v12 = vunpack.c.l.bf16 %v904_v61  ;;  %v867_v13 = vunpack.c.h.bf16 %v904_v61 }
  0x49   : > { %617 = vst [vmem:[%s1031_s28 + $0x190] sm:$0xff] %v553_v1  ;;  %618 = vst [vmem:[%s1031_s28 + $0x198] sm:$0xff] %v554_v2  ;;  %v870_v14 = vunpack.c.l.bf16 %v905_v3  ;;  %v871_v15 = vunpack.c.h.bf16 %v905_v3  ;;  %v874_v16 = vunpack.c.l.bf16 %v906_v4  ;;  %v875_v17 = vunpack.c.h.bf16 %v906_v4 }
  0x4a   : > { %619 = vst [vmem:[%s1031_s28 + $0x1a0] sm:$0xff] %v555_v5  ;;  %620 = vst [vmem:[%s1031_s28 + $0x1a8] sm:$0xff] %v556_v6  ;;  %v424_v18 = vmul.f32 %v862_v10, %v1004_v0  ;;  %v425_v19 = vmul.f32 %v863_v11, %v1004_v0  ;;  %v426_v20 = vmul.f32 %v866_v12, %v1004_v0 }
  0x4b   : > { %621 = vst [vmem:[%s1031_s28 + $0x1b0] sm:$0xff] %v557_v7  ;;  %622 = vst [vmem:[%s1031_s28 + $0x1b8] sm:$0xff] %v558_v8  ;;  %v427_v21 = vmul.f32 %v867_v13, %v1004_v0  ;;  %v428_v22 = vmul.f32 %v870_v14, %v1004_v0  ;;  %v429_v23 = vmul.f32 %v871_v15, %v1004_v0 }
  0x4c   : > { %v430_v24 = vmul.f32 %v874_v16, %v1004_v0  ;;  %v431_v25 = vmul.f32 %v875_v17, %v1004_v0  ;;  %v495_v26 = vadd.f32 %v1013_v9, %v424_v18  ;;  %v496_v27 = vadd.f32 %v1013_v9, %v425_v19 }
  0x4d   : > { %v497_v28 = vadd.f32 %v1013_v9, %v426_v20  ;;  %v498_v29 = vadd.f32 %v1013_v9, %v427_v21  ;;  %v499_v30 = vadd.f32 %v1013_v9, %v428_v22  ;;  %v500_v31 = vadd.f32 %v1013_v9, %v429_v23 }
  0x4e   : > { %v501_v0 = vadd.f32 %v1013_v9, %v430_v24  ;;  %v502_v32 = vadd.f32 %v1013_v9, %v431_v25  ;;  %v559_v33 = vmax.f32 %v495_v26, 0.0  ;;  %v560_v34 = vmax.f32 %v496_v27, 0.0 }
  0x4f   : > { %v561_v35 = vmax.f32 %v497_v28, 0.0  ;;  %v562_v36 = vmax.f32 %v498_v29, 0.0  ;;  %v563_v37 = vmax.f32 %v499_v30, 0.0  ;;  %v564_v38 = vmax.f32 %v500_v31, 0.0 }
  0x50   : > { %v565_v39 = vmax.f32 %v501_v0, 0.0  ;;  %v566_v40 = vmax.f32 %v502_v32, 0.0  ;;  %623 = vst [vmem:[%s1031_s28 + $0x1c0] sm:$0xff] %v559_v33  ;;  %624 = vst [vmem:[%s1031_s28 + $0x1c8] sm:$0xff] %v560_v34 }
  0x51   : > { %625 = vst [vmem:[%s1031_s28 + $0x1d0] sm:$0xff] %v561_v35  ;;  %626 = vst [vmem:[%s1031_s28 + $0x1d8] sm:$0xff] %v562_v36 }
  0x52   : > { %627 = vst [vmem:[%s1031_s28 + $0x1e0] sm:$0xff] %v563_v37  ;;  %628 = vst [vmem:[%s1031_s28 + $0x1e8] sm:$0xff] %v564_v38 }
  0x53   : > { %629 = vst [vmem:[%s1031_s28 + $0x1f0] sm:$0xff] %v565_v39  ;;  %630 = vst [vmem:[%s1031_s28 + $0x1f8] sm:$0xff] %v566_v40 }
  0x54 PF: > { %s13_s14 = sadd.s32 1, %s953_s14   ;;  %s1254_s12 = smov %s949_s13 }
  0x55   : > { %p10_p5 = scmp.ge.s32.totalorder %s13_s14, 4   ;;  %s1255_s13 = smov %s1257_s15 }
  0x57   :  { %12 = sbr.rel (!%p10_p5) target bundleno = 2 (0x2), region = 68 }

// kernel: conv_block_fwd.2
= control target key start
LH: loop header
LB: loop body
LE: loop exit
PB: predicated region body
PF: predicated region fallthrough
CT: control target
= control target key end

     0   :  { %s4632_s15 = smov 0   ;;  %s4634_s16 = smov 0   ;;  %s7191_s0 = inlined_call_operand.vmem [shape: bf16[2,560,8], index: 0, kind: input, shape index: {}]   ;;  %s7192_s1 = inlined_call_operand.vmem [shape: bf16[128,128], index: 1, kind: input, shape index: {}]   ;;  %s7193_s2 = inlined_call_operand.vmem [shape: f32[1024,1], index: 2, kind: input, shape index: {}]   ;;  %s7194_s3 = inlined_call_operand.vmem [shape: bf16[1024,128], index: 3, kind: output, shape index: {0}]   ;;  %s7195_s4 = inlined_call_operand.vmem [shape: f32[2,2,128], index: 4, kind: output, shape index: {1}]  }
   0x1   :  { %s4636_s17 = smov 0  }
   0x2 LB: > { %s27_s18 = sadd.s32 1, %s4592_s16  ;;  %p3893_p0 = scmp.ge.s32.totalorder %s4596_s17, 1  ;;  %s4596_s17 = sphi %s4636_s17, %s15_s17   ;;  %s4592_s16 = sphi %s4634_s16, %s7742_s16   ;;  %s4588_s15 = sphi %s4632_s15, %s7741_s15  }
   0x3   : > { %p29_p1 = scmp.ge.s32.totalorder %s27_s18, 2  ;;  %p201_p2 = scmp.lt.s32.totalorder %s4596_s17, 3 }
   0x5   : > { %s7744_s18 = smov (%p29_p1, %s27_s18), 0  ;;  %p202_p3 = pnand %p3893_p0, %p201_p2 }
   0x7   : > { %205 = sbr.rel (%p202_p3) target bundleno = 878 (0x36e), region = 32 }
   0xc   : > { %p246_p4 = scmp.lt.s32.totalorder %s4588_s15, 1  ;;  %vm519_vm0 = vsmask.f32 7424  ;;  %s4598_s24 = smov 8   ;;  %vm847_vm1 = vcmask 1046528   ;;  %vm1833_vm3 = vcmask 64512  }
   0xd   : > { %s4599_s25 = smov 16   ;;  %s4600_s26 = smov 24   ;;  %vm1061_vm2 = vsmask.f32 6400  ;;  %vm1898_vm4 = vcmask 130048   ;;  %vm1275_vm5 = vcmask 1045504  }
   0xe   : > { %s4654_s19 = scalar_select %p246_p4, %s4588_s15, 1  ;;  %vm1963_vm6 = vcmask 195584   ;;  %vm2028_vm7 = vcmask 261120   ;;  %vm1489_vm8 = vsmask.f32 5376  ;;  %vm1703_vm9 = vcmask 1044480  }
   0xf   : > { %s4601_s27 = smov 32   ;;  %s4602_s28 = smov 40   ;;  %vm2093_vm10 = vcmask 326656   ;;  %vm2158_vm11 = vcmask 392192   ;;  %vm2223_vm12 = vcmask 457728   ;;  %vm2288_vm13 = vcmask 523264  }
  0x10   : > { %s4441_s20 = smul.u32 280, %s4654_s19  ;;  %s4603_s29 = smov 48   ;;  %vm2353_vm14 = vcmask 588800   ;;  %vm3742_vm15 = vcmask 1040384  }
  0x11   : > { %s3899_s10 = sshll.u32 %s4654_s19, 1 }
  0x12   : > { %s4660_s23 = scalar_lea.vmem %s7191_s0, %s4441_s20  ;;  %s276_s13 = scalar_lea.vmem %s7195_s4, %s3899_s10 }
  0x13   : > { %v282_v0 = vld [vmem:[%s4660_s23 + $0x10] sm:$0xf]  ;;  %v283_v1 = vld [vmem:[%s4660_s23 + $0x14] sm:$0xf]  ;;  %v4667_v3 = vld [vmem:[%s4660_s23 + $0x18] sm:$0xff]  }
  0x14   : > { %v4664_v2 = vcombine.low %v282_v0, %v283_v1  ;;  %v278_v4 = vld [vmem:[%s4660_s23] sm:$0xf]  ;;  %v4671_v5 = vld [vmem:[%s4660_s23 + $0x4] sm:$0xf]  ;;  %v280_v6 = vld [vmem:[%s4660_s23 + $0x8] sm:$0xf] }
  0x15   : > { %v4675_v7 = vld [vmem:[%s4660_s23 + $0xc] sm:$0xf]  ;;  %v4680_v10 = vshll.u32 %v4667_v3, 16  ;;  %v4683_v11 = vcombine.low %v278_v4, %v4671_v5  ;;  %v4686_v12 = vld [vmem:[%s4660_s23 + $0x20] sm:$0xff]   ;;  %v4692_v14 = vshrl.u32 %v4667_v3, 16  ;;  %v4708_v23 = vld [vmem:[%s4660_s23 + $0x30] sm:$0xff]  }
  0x16   : > { %7341 = vst [vmem:[#allocation2_spill] sm:$0xff] %v4664_v2  ;;  %v7196_v8 = vshll.u32 %v4664_v2, 16  ;;  %v7197_v9 = vshrl.u32 %v4664_v2, 16  ;;  %v4689_v13 = vcombine.low %v280_v6, %v4675_v7  ;;  %v4695_v15 = vld [vmem:[%s4660_s23 + $0x28] sm:$0xff]   ;;  %v4704_v21 = vshll.u32 %v4686_v12, 16  ;;  %v4731_v38 = vld [vmem:[%s4660_s23 + $0x38] sm:$0xff]  }
  0x17   : > { %7342 = vst [vmem:[#allocation3_spill] sm:$0xff] %v4683_v11  ;;  %v546_v17 = vrot.slane %v4680_v10, 1  ;;  %v521_v18 = vshrl.u32 %v4683_v11, 16  ;;  %v523_v19 = vshll.u32 %v4683_v11, 16  ;;  %v4714_v27 = vshll.u32 %v4695_v15, 16  ;;  %v4734_v39 = vld [vmem:[%s4660_s23 + $0x40] sm:$0xff]  }
  0x18   : > { %7343 = vst [vmem:[#allocation4_spill] sm:$0xff] %v4689_v13  ;;  %v538_v16 = vrot.slane %v7196_v8, 1  ;;  %v528_v20 = vshll.u32 %v4689_v13, 16  ;;  %v532_v22 = vshrl.u32 %v4689_v13, 16  ;;  %v554_v29 = vrot.slane %v4704_v21, 1  ;;  %v4750_v46 = vld [vmem:[%s4660_s23 + $0x48] sm:$0xff]  }
  0x19   : > { %v525_v25 = vrot.slane %v523_v19, 1  ;;  %v550_v26 = vor.u32 %v4692_v14, %v546_v17  ;;  %v4718_v30 = vshrl.u32 %v4695_v15, 16  ;;  %v4721_v31 = vshll.u32 %v4708_v23, 16  ;;  %v4753_v47 = vld [vmem:[%s4660_s23 + $0x50] sm:$0xff]   ;;  %v4756_v48 = vld [vmem:[%s4660_s23 + $0x58] sm:$0xff]   ;;  %v4764_v52 = vld [vmem:[%s4660_s23 + $0x60] sm:$0xff]  }
  0x1a   : > { %v542_v24 = vor.u32 %v7197_v9, %v538_v16  ;;  %v530_v28 = vrot.slane %v528_v20, 1  ;;  %v562_v34 = vrot.slane %v4714_v27, 1  ;;  %v4726_v35 = vshrl.u32 %v4686_v12, 16  ;;  %v4789_v63 = vld [vmem:[%s4660_s23 + $0x68] sm:$0xff]   ;;  %v4877_v9 = vld [vmem:[%s4660_s23 + $0xa0] sm:$0xff]  }
  0x1b   : > { %v526_v33 = vor.u32 %v525_v25, %v521_v18  ;;  %v570_v37 = vrot.slane %v4721_v31, 1  ;;  %v555_v41 = vsel %vm519_vm0, %v550_v26, %v554_v29  ;;  %v4741_v43 = vshll.u32 %v4731_v38, 16  ;;  %v4813_v25 = vld [vmem:[%s4660_s23 + $0x78] sm:$0xff]  }
  0x1c   : > { %v547_v32 = vsel %vm519_vm0, %v542_v24, %v546_v17  ;;  %v534_v36 = vor.u32 %v532_v22, %v530_v28  ;;  %v566_v42 = vor.u32 %v4718_v30, %v562_v34  ;;  %v4744_v44 = vshrl.u32 %v4731_v38, 16 }
  0x1d   : > { %784 = vrot.lane.b32.xlu1 %v547_v32, %s4598_s24  ;;  %v531_v40 = vsel %vm519_vm0, %v526_v33, %v530_v28  ;;  %7344 = vst [vmem:[#allocation5_spill] sm:$0xff] %v4741_v43  ;;  %v4747_v45 = vshll.u32 %v4734_v39, 16  ;;  %v558_v50 = vor.u32 %v4726_v35, %v554_v29  ;;  %v4761_v51 = vshrl.u32 %v4708_v23, 16 }
  0x1e   : > { %780 = vrot.lane.b32.xlu0 %v531_v40, %s4598_s24  ;;  %7345 = vst [vmem:[#allocation6_spill] sm:$0xff] %v4744_v44  ;;  %v539_v49 = vsel %vm519_vm0, %v534_v36, %v538_v16  ;;  %v571_v53 = vsel %vm519_vm0, %v566_v42, %v570_v37  ;;  %v578_v54 = vrot.slane %v4741_v43, 1  ;;  %v4770_v55 = vshll.u32 %v4750_v46, 16  ;;  %v4801_v16 = vld [vmem:[%s4660_s23 + $0x70] sm:$0xff]   ;;  %v4837_v42 = vld [vmem:[%s4660_s23 + $0x88] sm:$0xff]  }
  0x1f   : > { %7346 = vst [vmem:[#allocation7_spill] sm:$0xff] %v4747_v45  ;;  %v4773_v56 = vshrl.u32 %v4734_v39, 16  ;;  %v586_v57 = vrot.slane %v4747_v45, 1  ;;  %v4777_v58 = vshrl.u32 %v4750_v46, 16  ;;  %v4780_v59 = vshll.u32 %v4753_v47, 16 }
  0x20   : > { %7347 = vst [vmem:[#allocation8_spill] sm:$0xff] %v4770_v55  ;;  %v4783_v60 = vshll.u32 %v4756_v48, 16  ;;  %v582_v61 = vor.u32 %v4744_v44, %v578_v54  ;;  %v594_v62 = vrot.slane %v4770_v55, 1  ;;  %v563_v0 = vsel %vm519_vm0, %v558_v50, %v562_v34  ;;  %v4828_v34 = vld [vmem:[%s4660_s23 + $0x80] sm:$0xff]  }
  0x21   : > { %786 = vrot.lane.b32.xlu1 %v555_v41, %s4598_s24  ;;  %7348 = vst [vmem:[#allocation9_spill] sm:$0xff] %v4773_v56  ;;  %7349 = vst [vmem:[#allocation10_spill] sm:$0xff] %v4777_v58  ;;  %v574_v1 = vor.u32 %v4761_v51, %v570_v37  ;;  %v4794_v4 = vshrl.u32 %v4756_v48, 16  ;;  %v4797_v6 = vshll.u32 %v4764_v52, 16  ;;  %v4804_v17 = vshll.u32 %v4789_v63, 16 }
  0x22   : > { %7350 = vst [vmem:[#allocation11_spill] sm:$0xff] %v4780_v59  ;;  %7351 = vst [vmem:[#allocation12_spill] sm:$0xff] %v4783_v60  ;;  %782 = vrot.lane.b32.xlu0 %v539_v49, %s4598_s24  ;;  %v587_v18 = vsel %vm519_vm0, %v582_v61, %v586_v57  ;;  %v598_v19 = vor.u32 %v4777_v58, %v594_v62  ;;  %v602_v20 = vrot.slane %v4780_v59, 1  ;;  %v610_v22 = vrot.slane %v4783_v60, 1  ;;  %v4850_v61 = vld [vmem:[%s4660_s23 + $0x90] sm:$0xff]   ;;  %v4958_v60 = vld [vmem:[%s4660_s23 + $0xd8] sm:$0xff]  }
  0x23   : > { %7352 = vst [vmem:[#allocation13_spill] sm:$0xff] %v4794_v4  ;;  %7353 = vst [vmem:[#allocation14_spill] sm:$0xff] %v4797_v6  ;;  %v590_v24 = vor.u32 %v4773_v56, %v586_v57  ;;  %v579_v26 = vsel %vm519_vm0, %v574_v1, %v578_v54  ;;  %v4817_v28 = vshrl.u32 %v4753_v47, 16  ;;  %v4820_v29 = vshll.u32 %v4801_v16, 16 }
  0x24   : > { %7354 = vst [vmem:[#allocation15_spill] sm:$0xff] %v4804_v17  ;;  %v626_v32 = vrot.slane %v4804_v17, 1  ;;  %v4825_v33 = vshrl.u32 %v4789_v63, 16  ;;  %v603_v36 = vsel %vm519_vm0, %v598_v19, %v602_v20  ;;  %v614_v37 = vor.u32 %v4794_v4, %v610_v22  ;;  %v4906_v17 = vld [vmem:[%s4660_s23 + $0xb0] sm:$0xff]  }
  0x25   : > { %790 = vrot.lane.b32.xlu1 %v571_v53, %s4598_s24  ;;  %7355 = vst [vmem:[#allocation16_spill] sm:$0xff] %v4817_v28  ;;  %7356 = vst [vmem:[#allocation17_spill] sm:$0xff] %v4820_v29  ;;  %v618_v40 = vrot.slane %v4797_v6, 1  ;;  %v4834_v41 = vshll.u32 %v4813_v25, 16  ;;  %v595_v49 = vsel %vm519_vm0, %v590_v24, %v594_v62  ;;  %v606_v50 = vor.u32 %v4817_v28, %v602_v20  ;;  %v4858_v62 = vld [vmem:[%s4660_s23 + $0x98] sm:$0xff]   ;;  %v4924_v6 = vld [vmem:[%s4660_s23 + $0xc0] sm:$0xff]  }
  0x26   : > { %788 = vrot.lane.b32.xlu0 %v563_v0, %s4598_s24  ;;  %7357 = vst [vmem:[#allocation18_spill] sm:$0xff] %v4825_v33  ;;  %v634_v53 = vrot.slane %v4820_v29, 1  ;;  %v4844_v54 = vshrl.u32 %v4764_v52, 16  ;;  %v4847_v57 = vshrl.u32 %v4813_v25, 16  ;;  %v630_v0 = vor.u32 %v4825_v33, %v626_v32 }
  0x27   : > { %7358 = vst [vmem:[#allocation19_spill] sm:$0xff] %v4834_v41  ;;  %v4855_v1 = vshll.u32 %v4828_v34, 16  ;;  %v642_v19 = vrot.slane %v4834_v41, 1  ;;  %v4863_v20 = vshll.u32 %v4837_v42, 16  ;;  %v611_v24 = vsel %vm519_vm0, %v606_v50, %v610_v22  ;;  %v4889_v41 = vld [vmem:[%s4660_s23 + $0xa8] sm:$0xff]  }
  0x28   : > { %7359 = vst [vmem:[#allocation20_spill] sm:$0xff] %v4844_v54  ;;  %7360 = vst [vmem:[#allocation21_spill] sm:$0xff] %v4847_v57  ;;  %v4872_v8 = vshrl.u32 %v4837_v42, 16  ;;  %v4880_v11 = vshll.u32 %v4858_v62, 16  ;;  %v4886_v50 = vshll.u32 %v4850_v61, 16  ;;  %v4895_v29 = vshrl.u32 %v4828_v34, 16 }
  0x29   : > { %794 = vrot.lane.b32.xlu1 %v587_v18, %s4598_s24  ;;  %7361 = vst [vmem:[#allocation22_spill] sm:$0xff] %v4855_v1  ;;  %v619_v18 = vsel %vm519_vm0, %v614_v37, %v618_v40  ;;  %7362 = vst [vmem:[#allocation23_spill] sm:$0xff] %v4863_v20  ;;  %v635_v37 = vsel %vm519_vm0, %v630_v0, %v634_v53  ;;  %v646_v22 = vor.u32 %v4847_v57, %v642_v19 }
  0x2a   : > { %792 = vrot.lane.b32.xlu0 %v579_v26, %s4598_s24  ;;  %v622_v26 = vor.u32 %v4844_v54, %v618_v40  ;;  %7364 = vst [vmem:[#allocation25_spill] sm:$0xff] %v4872_v8  ;;  %7365 = vst [vmem:[#allocation26_spill] sm:$0xff] %v4880_v11  ;;  %v650_v40 = vrot.slane %v4855_v1, 1  ;;  %v4900_v1 = vshrl.u32 %v4858_v62, 16  ;;  %v4903_v57 = vshll.u32 %v4877_v9, 16 }
  0x2b   : > { %7366 = vst [vmem:[#allocation27_spill] sm:$0xff] %v4886_v50  ;;  %7367 = vst [vmem:[#allocation28_spill] sm:$0xff] %v4895_v29  ;;  %v4921_v33 = vshrl.u32 %v4850_v61, 16  ;;  %v4950_v54 = vshll.u32 %v4924_v6, 16 }
  0x2c   : > { %v627_v0 = vsel %vm519_vm0, %v622_v26, %v626_v32  ;;  %7368 = vst [vmem:[#allocation29_spill] sm:$0xff] %v4900_v1  ;;  %7369 = vst [vmem:[#allocation30_spill] sm:$0xff] %v4903_v57  ;;  %v651_v32 = vsel %vm519_vm0, %v646_v22, %v650_v40  ;;  %v4912_v26 = vshll.u32 %v4889_v41, 16 }
  0x2d   : > { %798 = vrot.lane.b32.xlu1 %v603_v36, %s4598_s24  ;;  %v4869_v36 = vshrl.u32 %v4801_v16, 16  ;;  %7371 = vst [vmem:[#allocation32_spill] sm:$0xff] %v4921_v33  ;;  %7376 = vst [vmem:[#allocation37_spill] sm:$0xff] %v4950_v54 }
  0x2e   : > { %796 = vrot.lane.b32.xlu0 %v595_v49, %s4598_s24  ;;  %v658_v49 = vrot.slane %v4863_v20, 1  ;;  %v674_v20 = vrot.slane %v4880_v11, 1  ;;  %7370 = vst [vmem:[#allocation31_spill] sm:$0xff] %v4912_v26 }
  0x2f   : > { %7363 = vst [vmem:[#allocation24_spill] sm:$0xff] %v4869_v36 }
  0x30   : > { %v678_v22 = vor.u32 %v4900_v1, %v674_v20 }
  0x31   : > { %802 = vrot.lane.b32.xlu1 %v619_v18, %s4598_s24  ;;  %v638_v18 = vor.u32 %v4869_v36, %v634_v53  ;;  %v662_v53 = vor.u32 %v4872_v8, %v658_v49  ;;  %v654_v36 = vor.u32 %v4895_v29, %v650_v40  ;;  %v4930_v8 = vshrl.u32 %v4889_v41, 16 }
  0x32   : > { %800 = vrot.lane.b32.xlu0 %v611_v24, %s4598_s24  ;;  %v666_v24 = vrot.slane %v4886_v50, 1  ;;  %v682_v50 = vrot.slane %v4903_v57, 1  ;;  %v4945_v57 = vshrl.u32 %v4877_v9, 16 }
  0x33   : > { %v643_v11 = vsel %vm519_vm0, %v638_v18, %v642_v19  ;;  %7372 = vst [vmem:[#allocation33_spill] sm:$0xff] %v4930_v8  ;;  %v4936_v19 = vld [vmem:[%s4660_s23 + $0xc8] sm:$0xff]   ;;  %v690_v18 = vrot.slane %v4912_v26, 1  ;;  %v659_v1 = vsel %vm519_vm0, %v654_v36, %v658_v49 }
  0x34   : > { %v667_v40 = vsel %vm519_vm0, %v662_v53, %v666_v24  ;;  %7375 = vst [vmem:[#allocation36_spill] sm:$0xff] %v4945_v57  ;;  %v670_v29 = vor.u32 %v4921_v33, %v666_v24  ;;  %v683_v53 = vsel %vm519_vm0, %v678_v22, %v682_v50  ;;  %v4955_v26 = vshll.u32 %v4936_v19, 16  ;;  %v4967_v24 = vld [vmem:[%s4660_s23 + $0xd0] sm:$0xff]  }
  0x35   : > { %806 = vrot.lane.b32.xlu1 %v635_v37, %s4598_s24  ;;  %v4915_v37 = vld [vmem:[%s4660_s23 + $0xb8] sm:$0xff]   ;;  %7379 = vst [vmem:[#allocation40_spill] sm:$0xff] %v4967_v24  ;;  %v686_v22 = vor.u32 %v4945_v57, %v682_v50  ;;  %v714_v33 = vrot.slane %v4950_v54, 1  ;;  %v4990_v50 = vshll.u32 %v4967_v24, 16  ;;  %v4993_v54 = vld [vmem:[%s4660_s23 + $0xe8] sm:$0xff]   ;;  %v4999_v57 = vshrl.u32 %v4924_v6, 16 }
  0x36   : > { %804 = vrot.lane.b32.xlu0 %v627_v0, %s4598_s24  ;;  %v4933_v0 = vshll.u32 %v4906_v17, 16  ;;  %7377 = vst [vmem:[#allocation38_spill] sm:$0xff] %v4955_v26  ;;  %v4964_v49 = vshrl.u32 %v4915_v37, 16  ;;  %v722_v59 = vrot.slane %v4955_v26, 1  ;;  %7385 = vst [vmem:[#allocation46_spill] sm:$0xff] %v4993_v54  ;;  %v5031_v58 = vshrl.u32 %v4993_v54, 16 }
  0x37   : > { %7384 = vst [vmem:[#allocation45_spill] sm:$0xff] %v4990_v50  ;;  %7386 = vst [vmem:[#allocation47_spill] sm:$0xff] %v4999_v57 }
  0x38   : > { %7373 = vst [vmem:[#allocation34_spill] sm:$0xff] %v4933_v0  ;;  %v698_v4 = vrot.slane %v4933_v0, 1  ;;  %7378 = vst [vmem:[#allocation39_spill] sm:$0xff] %v4964_v49  ;;  %v4977_v0 = vshrl.u32 %v4936_v19, 16 }
  0x39   : > { %810 = vrot.lane.b32.xlu1 %v651_v32, %s4598_s24  ;;  %v4941_v32 = vshll.u32 %v4915_v37, 16  ;;  %7393 = vst [vmem:[#allocation54_spill] sm:$0xff] %v5031_v58 }
  0x3a   : > { %808 = vrot.lane.b32.xlu0 %v643_v11, %s4598_s24  ;;  %v694_v11 = vor.u32 %v4930_v8, %v690_v18  ;;  %v4974_v8 = vshrl.u32 %v4906_v17, 16  ;;  %7381 = vst [vmem:[#allocation42_spill] sm:$0xff] %v4977_v0 }
  0x3b   : > { %7374 = vst [vmem:[#allocation35_spill] sm:$0xff] %v4941_v32  ;;  %v706_v36 = vrot.slane %v4941_v32, 1  ;;  %v4980_v32 = vld [vmem:[%s4660_s23 + $0xe0] sm:$0xff]  }
  0x3c   : > { %7380 = vst [vmem:[#allocation41_spill] sm:$0xff] %v4974_v8  ;;  %7382 = vst [vmem:[#allocation43_spill] sm:$0xff] %v4980_v32  ;;  %v702_v26 = vor.u32 %v4974_v8, %v698_v4  ;;  %v5007_v28 = vshll.u32 %v4980_v32, 16  ;;  %v718_v8 = vor.u32 %v4999_v57, %v714_v33 }
  0x3d   : > { %814 = vrot.lane.b32.xlu1 %v667_v40, %s4598_s24  ;;  %v675_v40 = vsel %vm519_vm0, %v670_v29, %v674_v20  ;;  %v699_v29 = vsel %vm519_vm0, %v694_v11, %v698_v4  ;;  %v710_v20 = vor.u32 %v4964_v49, %v706_v36  ;;  %v5004_v49 = vshrl.u32 %v4958_v60, 16 }
  0x3e   : > { %812 = vrot.lane.b32.xlu0 %v659_v1, %s4598_s24  ;;  %v4985_v1 = vshll.u32 %v4958_v60, 16  ;;  %7388 = vst [vmem:[#allocation49_spill] sm:$0xff] %v5007_v28  ;;  %v730_v4 = vrot.slane %v4990_v50, 1 }
  0x3f   : > { %7387 = vst [vmem:[#allocation48_spill] sm:$0xff] %v5004_v49  ;;  %v715_v55 = vsel %vm519_vm0, %v710_v20, %v714_v33  ;;  %v5025_v20 = vshrl.u32 %v4967_v24, 16  ;;  %v5039_v33 = vld [vmem:[%s4660_s23 + $0x100] ss:$0 sps:$4 sm:$0x11]  }
  0x40   : > { %7383 = vst [vmem:[#allocation44_spill] sm:$0xff] %v4985_v1  ;;  %v738_v11 = vrot.slane %v4985_v1, 1  ;;  %v707_v1 = vsel %vm519_vm0, %v702_v26, %v706_v36 }
  0x41   : > { %818 = vrot.lane.b32.xlu1 %v683_v53, %s4598_s24  ;;  %v691_v53 = vsel %vm519_vm0, %v686_v22, %v690_v18  ;;  %v5013_v18 = vld [vmem:[%s4660_s23 + $0xf0] sm:$0xff]   ;;  %v5016_v22 = vshll.u32 %v4993_v54, 16  ;;  %7392 = vst [vmem:[#allocation53_spill] sm:$0xff] %v5025_v20 }
  0x42   : > { %816 = vrot.lane.b32.xlu0 %v675_v40, %s4598_s24  ;;  %v726_v40 = vor.u32 %v4977_v0, %v722_v59  ;;  %7389 = vst [vmem:[#allocation50_spill] sm:$0xff] %v5013_v18  ;;  %v742_v50 = vor.u32 %v5004_v49, %v738_v11  ;;  %v746_v0 = vrot.slane %v5007_v28, 1  ;;  %v5036_v26 = vshll.u32 %v5013_v18, 16 }
  0x43   : > { %7390 = vst [vmem:[#allocation51_spill] sm:$0xff] %v5016_v22  ;;  %v734_v28 = vor.u32 %v5025_v20, %v730_v4  ;;  %v343_v20 = vld [vmem:[%s4660_s23] sm:$0xe] }
  0x44   : > { %v731_v45 = vsel %vm519_vm0, %v726_v40, %v730_v4  ;;  %7394 = vst [vmem:[#allocation55_spill] sm:$0xff] %v5036_v26  ;;  %v5048_v40 = vshrl.u32 %v4980_v32, 16  ;;  %v762_v56 = vrot.slane %v5036_v26, 1 }
  0x45   : > { %822 = vrot.lane.b32.xlu1 %v699_v29, %s4598_s24  ;;  %v5019_v29 = vld [vmem:[%s4660_s23 + $0xf8] sm:$0xff]   ;;  %v739_v4 = vsel %vm519_vm0, %v734_v28, %v738_v11  ;;  %v851_v28 = vrot.slane %v4664_v2, 1 }
  0x46   : > { %7391 = vst [vmem:[#allocation52_spill] sm:$0xff] %v5019_v29  ;;  %820 = vrot.lane.b32.xlu0 %v691_v53, %s4598_s24  ;;  %v754_v53 = vrot.slane %v5016_v22, 1  ;;  %v5042_v36 = vshll.u32 %v5019_v29, 16  ;;  %7396 = vst [vmem:[#allocation57_spill] sm:$0xff] %v5048_v40  ;;  %v747_v22 = vsel %vm519_vm0, %v742_v50, %v746_v0  ;;  %v5053_v49 = vshrl.u32 %v5019_v29, 16 }
  0x47   : > { %v5064_v50 = vshrl.u32 %v5013_v18, 16 }
  0x48   : > { %7395 = vst [vmem:[#allocation56_spill] sm:$0xff] %v5042_v36  ;;  %7397 = vst [vmem:[#allocation58_spill] sm:$0xff] %v5053_v49  ;;  %v758_v57 = vor.u32 %v5031_v58, %v754_v53 }
  0x49   : > { %826 = vrot.lane.b32.xlu1 %v715_v55, %s4598_s24  ;;  %v723_v55 = vsel %vm519_vm0, %v718_v8, %v722_v59  ;;  %v776_v8 = vshll.u32 %v5039_v33, 16  ;;  %v344_v59 = vld [vmem:[%s4660_s23 + $0x8] sm:$0xe]  ;;  %7398 = vst [vmem:[#allocation59_spill] sm:$0xff] %v5064_v50 }
  0x4a   : > { %824 = vrot.lane.b32.xlu0 %v707_v1, %s4598_s24  ;;  %v770_v1 = vrot.slane %v5042_v36, 1  ;;  %v5069_v26 = vcombine.low %v344_v59, %v4675_v7  ;;  %v763_v36 = vsel %vm519_vm0, %v758_v57, %v762_v56  ;;  %v5086_v59 = vld [vmem:[%s4660_s23 + $0x100] sm:$0xff]  }
  0x4b   : > { %v778_v43 = vrot.slane %v776_v8, 1  ;;  %v849_v8 = vrot.slane %v4689_v13, 1  ;;  %7399 = vst [vmem:[#allocation60_spill] sm:$0xff] %v5086_v59 }
  0x4c   : > { %v774_v58 = vor.u32 %v5053_v49, %v770_v1 }
  0x4d   : > { %830 = vrot.lane.b32.xlu1 %v731_v45, %s4598_s24  ;;  %v750_v45 = vor.u32 %v5048_v40, %v746_v0  ;;  %v988_v0 = vrot.slane %v5069_v26, 1 }
  0x4e   : > { %828 = vrot.lane.b32.xlu0 %v723_v55, %s4598_s24  ;;  %v3933_v55 = vcombine.low %v343_v20, %v4671_v5  ;;  %v779_v57 = vsel %vm519_vm0, %v774_v58, %v778_v43  ;;  %v7291_v5 = vrot.slane %v5086_v59, 1  ;;  %v852_v20 = vsel %vm847_vm1, %v849_v8, %v851_v28 }
  0x4f   : > { %v755_v11 = vsel %vm519_vm0, %v750_v45, %v754_v53  ;;  %v5081_v7 = vsel %vm847_vm1, %v988_v0, %v851_v28  ;;  %v853_v43 = vrot.slane %v4667_v3, 1  ;;  %v855_v58 = vrot.slane %v4686_v12, 1 }
  0x50   : > { %v857_v3 = vrot.slane %v4695_v15, 1  ;;  %v859_v12 = vrot.slane %v4708_v23, 1 }
  0x51   : > { %834 = vrot.lane.b32.xlu1 %v747_v22, %s4598_s24  ;;  %v766_v22 = vor.u32 %v5064_v50, %v762_v56  ;;  %v5091_v56 = vrot.slane %v5019_v29, 1  ;;  %v5108_v45 = vsel %vm847_vm1, %v853_v43, %v855_v58  ;;  %v5114_v0 = vsel %vm847_vm1, %v851_v28, %v853_v43 }
  0x52   : > { %832 = vrot.lane.b32.xlu0 %v739_v4, %s4598_s24  ;;  %v848_v4 = vrot.slane %v3933_v55, 1  ;;  %v863_v55 = vrot.slane %v4734_v39, 1  ;;  %v5126_v15 = vsel %vm847_vm1, %v855_v58, %v857_v3  ;;  %v865_v28 = vrot.slane %v4750_v46, 1 }
  0x53   : > { %v771_v53 = vsel %vm519_vm0, %v766_v22, %v770_v1  ;;  %v861_v22 = vrot.slane %v4731_v38, 1  ;;  %v877_v43 = vrot.slane %v4813_v25, 1  ;;  %v879_v58 = vrot.slane %v4828_v34, 1 }
  0x54   : > { %v850_v1 = vsel %vm847_vm1, %v848_v4, %v849_v8  ;;  %v869_v8 = vrot.slane %v4756_v48, 1  ;;  %v5150_v46 = vsel %vm847_vm1, %v863_v55, %v865_v28  ;;  %v873_v4 = vrot.slane %v4789_v63, 1 }
  0x55   : > { %838 = vrot.lane.b32.xlu1 %v763_v36, %s4598_s24  ;;  %v5102_v36 = vsel %vm847_vm1, %v5091_v56, %v7291_v5  ;;  %v5131_v23 = vsel %vm847_vm1, %v861_v22, %v863_v55  ;;  %v5138_v38 = vsel %vm847_vm1, %v859_v12, %v861_v22  ;;  %v885_v22 = vrot.slane %v4858_v62, 1 }
  0x56   : > { %836 = vrot.lane.b32.xlu0 %v755_v11, %s4598_s24  ;;  %v5119_v11 = vsel %vm847_vm1, %v857_v3, %v859_v12  ;;  %v883_v3 = vrot.slane %v4850_v61, 1  ;;  %v887_v55 = vrot.slane %v4877_v9, 1  ;;  %v899_v5 = vrot.slane %v4967_v24, 1 }
  0x57   : > { %v903_v29 = vrot.slane %v4980_v32, 1  ;;  %v907_v50 = vrot.slane %v5013_v18, 1 }
  0x59   : > { %842 = vrot.lane.b32.xlu1 %v779_v57, %s4598_s24  ;;  %v867_v57 = vrot.slane %v4753_v47, 1 }
  0x5a   : > { %840 = vrot.lane.b32.xlu0 %v771_v53, %s4598_s24  ;;  %v871_v53 = vrot.slane %v4764_v52, 1 }
  0x5b   : > { %v5143_v39 = vsel %vm847_vm1, %v865_v28, %v867_v57  ;;  %v5162_v48 = vsel %vm847_vm1, %v867_v57, %v869_v8  ;;  %v5203_v57 = vsel %vm847_vm1, %v885_v22, %v887_v55 }
  0x5c   : > { %v5155_v47 = vsel %vm847_vm1, %v869_v8, %v871_v53  ;;  %v5174_v63 = vsel %vm847_vm1, %v871_v53, %v873_v4  ;;  %v889_v8 = vrot.slane %v4889_v41, 1  ;;  %v891_v53 = vrot.slane %v4906_v17, 1 }
  0x5d   : > { %915 = vrot.lane.b32.xlu1 %v852_v20, %s4599_s25  ;;  %v875_v20 = vrot.slane %v4801_v16, 1  ;;  %v5179_v16 = vsel %vm847_vm1, %v877_v43, %v879_v58 }
  0x5e   : > { %913 = vrot.lane.b32.xlu0 %v850_v1, %s4599_s25  ;;  %v881_v1 = vrot.slane %v4837_v42, 1 }
  0x5f   : > { %v5167_v52 = vsel %vm847_vm1, %v873_v4, %v875_v20  ;;  %v5186_v25 = vsel %vm847_vm1, %v875_v20, %v877_v43  ;;  %v5210_v4 = vsel %vm847_vm1, %v883_v3, %v885_v22  ;;  %v5215_v20 = vsel %vm847_vm1, %v889_v8, %v891_v53 }
  0x60   : > { %v5191_v12 = vsel %vm847_vm1, %v881_v1, %v883_v3  ;;  %v5198_v28 = vsel %vm847_vm1, %v879_v58, %v881_v1  ;;  %v893_v43 = vrot.slane %v4915_v37, 1  ;;  %v895_v58 = vrot.slane %v4924_v6, 1 }
  0x61   : > { %919 = vrot.lane.b32.xlu1 %v5108_v45, %s4599_s25  ;;  %v5222_v1 = vsel %vm847_vm1, %v887_v55, %v889_v8  ;;  %v897_v22 = vrot.slane %v4936_v19, 1  ;;  %v901_v8 = vrot.slane %v4958_v60, 1 }
  0x62   : > { %917 = vrot.lane.b32.xlu0 %v5114_v0, %s4599_s25  ;;  %v5227_v3 = vsel %vm847_vm1, %v893_v43, %v895_v58  ;;  %v5234_v13 = vsel %vm847_vm1, %v891_v53, %v893_v43  ;;  %v905_v43 = vrot.slane %v4993_v54, 1  ;;  %v911_v54 = vrot.slane %v5039_v33, 1 }
  0x63   : > { %v5239_v55 = vsel %vm847_vm1, %v897_v22, %v899_v5  ;;  %v5246_v49 = vsel %vm847_vm1, %v895_v58, %v897_v22  ;;  %v5251_v53 = vsel %vm847_vm1, %v901_v8, %v903_v29  ;;  %v5260_v24 = vsel %vm847_vm1, %v899_v5, %v901_v8 }
  0x64   : > { %v5267_v22 = vsel %vm847_vm1, %v905_v43, %v907_v50  ;;  %v912_v8 = vsel %vm847_vm1, %v5091_v56, %v911_v54 }
  0x65   : > { %923 = vrot.lane.b32.xlu1 %v5119_v11, %s4599_s25 }
  0x66   : > { %921 = vrot.lane.b32.xlu0 %v5126_v15, %s4599_s25 }
  0x69   : > { %927 = vrot.lane.b32.xlu1 %v5131_v23, %s4599_s25 }
  0x6a   : > { %925 = vrot.lane.b32.xlu0 %v5138_v38, %s4599_s25 }
  0x6d   : > { %931 = vrot.lane.b32.xlu1 %v5143_v39, %s4599_s25 }
  0x6e   : > { %929 = vrot.lane.b32.xlu0 %v5150_v46, %s4599_s25 }
  0x71   : > { %935 = vrot.lane.b32.xlu1 %v5155_v47, %s4599_s25 }
  0x72   : > { %933 = vrot.lane.b32.xlu0 %v5162_v48, %s4599_s25 }
  0x75   : > { %939 = vrot.lane.b32.xlu1 %v5167_v52, %s4599_s25 }
  0x76   : > { %937 = vrot.lane.b32.xlu0 %v5174_v63, %s4599_s25 }
  0x79   : > { %943 = vrot.lane.b32.xlu1 %v5179_v16, %s4599_s25 }
  0x7a   : > { %941 = vrot.lane.b32.xlu0 %v5186_v25, %s4599_s25 }
  0x7d   : > { %947 = vrot.lane.b32.xlu1 %v5191_v12, %s4599_s25 }
  0x7e   : > { %945 = vrot.lane.b32.xlu0 %v5198_v28, %s4599_s25 }
  0x81   : > { %951 = vrot.lane.b32.xlu1 %v5203_v57, %s4599_s25 }
  0x82   : > { %949 = vrot.lane.b32.xlu0 %v5210_v4, %s4599_s25 }
  0x85   : > { %955 = vrot.lane.b32.xlu1 %v5215_v20, %s4599_s25 }
  0x86   : > { %953 = vrot.lane.b32.xlu0 %v5222_v1, %s4599_s25 }
  0x89   : > { %959 = vrot.lane.b32.xlu1 %v5227_v3, %s4599_s25 }
  0x8a   : > { %957 = vrot.lane.b32.xlu0 %v5234_v13, %s4599_s25 }
  0x8d   : > { %963 = vrot.lane.b32.xlu1 %v5239_v55, %s4599_s25 }
  0x8e   : > { %961 = vrot.lane.b32.xlu0 %v5246_v49, %s4599_s25 }
  0x8f   : > { %v5257_v32 = vpop.permute.xlu1 %784 }
  0x90   : > { %7400 = vst [vmem:[#allocation61_spill] sm:$0xff] %v5257_v32  ;;  %v5262_v58 = vpop.permute.xlu0 %780  ;;  %v5275_v32 = vsel %vm847_vm1, %v903_v29, %v905_v43 }
  0x91   : > { %7401 = vst [vmem:[#allocation62_spill] sm:$0xff] %v5262_v58  ;;  %967 = vrot.lane.b32.xlu1 %v5251_v53, %s4599_s25  ;;  %v5289_v58 = vsel %vm847_vm1, %v907_v50, %v5091_v56 }
  0x92   : > { %965 = vrot.lane.b32.xlu0 %v5260_v24, %s4599_s25 }
  0x93   : > { %v5272_v18 = vpop.permute.xlu1 %786 }
  0x94   : > { %7402 = vst [vmem:[#allocation63_spill] sm:$0xff] %v5272_v18  ;;  %v5277_v5 = vpop.permute.xlu0 %782 }
  0x95   : > { %7403 = vst [vmem:[#allocation64_spill] sm:$0xff] %v5277_v5  ;;  %971 = vrot.lane.b32.xlu1 %v5267_v22, %s4599_s25 }
  0x96   : > { %969 = vrot.lane.b32.xlu0 %v5275_v32, %s4599_s25 }
  0x97   : > { %v5285_v33 = vpop.permute.xlu1 %790 }
  0x98   : > { %7404 = vst [vmem:[#allocation65_spill] sm:$0xff] %v5285_v33  ;;  %v5291_v18 = vpop.permute.xlu0 %788  ;;  %v1079_v33 = vrot.slane %v4704_v21, 2 }
  0x99   : > { %7405 = vst [vmem:[#allocation66_spill] sm:$0xff] %v5291_v18  ;;  %975 = vrot.lane.b32.xlu1 %v912_v8, %s4599_s25  ;;  %v1087_v18 = vrot.slane %v4721_v31, 2 }
  0x9a   : > { %973 = vrot.lane.b32.xlu0 %v5289_v58, %s4599_s25 }
  0x9b   : > { %v5296_v29 = vpop.permute.xlu1 %794 }
  0x9c   : > { %7406 = vst [vmem:[#allocation67_spill] sm:$0xff] %v5296_v29  ;;  %v5298_v43 = vpop.permute.xlu0 %792 }
  0x9d   : > { %7407 = vst [vmem:[#allocation68_spill] sm:$0xff] %v5298_v43  ;;  %996 = vrot.lane.b32.xlu1 %v5114_v0, %s4600_s26  ;;  %v1078_v43 = vrot.slane %v4726_v35, 1 }
  0x9e   : > { %994 = vrot.lane.b32.xlu0 %v5081_v7, %s4600_s26 }
  0x9f   : > { %v5304_v54 = vpop.permute.xlu1 %798 }
  0xa0   : > { %7408 = vst [vmem:[#allocation69_spill] sm:$0xff] %v5304_v54  ;;  %v5306_v50 = vpop.permute.xlu0 %796 }
  0xa1   : > { %7409 = vst [vmem:[#allocation70_spill] sm:$0xff] %v5306_v50  ;;  %1000 = vrot.lane.b32.xlu1 %v5126_v15, %s4600_s26 }
  0xa2   : > { %998 = vrot.lane.b32.xlu0 %v5108_v45, %s4600_s26 }
  0xa3   : > { %v5312_v56 = vpop.permute.xlu1 %802 }
  0xa4   : > { %7410 = vst [vmem:[#allocation71_spill] sm:$0xff] %v5312_v56  ;;  %v5314_v8 = vpop.permute.xlu0 %800  ;;  %v1074_v56 = vrot.slane %v4692_v14, 1 }
  0xa5   : > { %7411 = vst [vmem:[#allocation72_spill] sm:$0xff] %v5314_v8  ;;  %1004 = vrot.lane.b32.xlu1 %v5138_v38, %s4600_s26 }
  0xa6   : > { %1002 = vrot.lane.b32.xlu0 %v5119_v11, %s4600_s26 }
  0xa7   : > { %v5320_v7 = vpop.permute.xlu1 %806 }
  0xa8   : > { %7412 = vst [vmem:[#allocation73_spill] sm:$0xff] %v5320_v7  ;;  %v5322_v0 = vpop.permute.xlu0 %804  ;;  %v7418_v7 = vshll.u32 %v4664_v2, 16 }
  0xa9   : > { %7413 = vst [vmem:[#allocation74_spill] sm:$0xff] %v5322_v0  ;;  %1008 = vrot.lane.b32.xlu1 %v5150_v46, %s4600_s26 }
  0xaa   : > { %1006 = vrot.lane.b32.xlu0 %v5131_v23, %s4600_s26  ;;  %v1071_v0 = vrot.slane %v7418_v7, 2 }
  0xab   : > { %v5328_v45 = vpop.permute.xlu1 %810 }
  0xac   : > { %7414 = vst [vmem:[#allocation75_spill] sm:$0xff] %v5328_v45  ;;  %v5330_v15 = vpop.permute.xlu0 %808  ;;  %v1063_v45 = vshrl.u32 %v5069_v26, 16 }
  0xad   : > { %7415 = vst [vmem:[#allocation76_spill] sm:$0xff] %v5330_v15  ;;  %1012 = vrot.lane.b32.xlu1 %v5162_v48, %s4600_s26  ;;  %v7417_v15 = vshrl.u32 %v4664_v2, 16 }
  0xae   : > { %1010 = vrot.lane.b32.xlu0 %v5143_v39, %s4600_s26  ;;  %v1065_v54 = vrot.slane %v1063_v45, 1 }
  0xaf   : > { %v5336_v11 = vpop.permute.xlu1 %814 }
  0xb0   : > { %v5338_v38 = vpop.permute.xlu0 %812 }
  0xb1   : > { %1016 = vrot.lane.b32.xlu1 %v5174_v63, %s4600_s26 }
  0xb2   : > { %1014 = vrot.lane.b32.xlu0 %v5155_v47, %s4600_s26 }
  0xb3   : > { %v5344_v23 = vpop.permute.xlu1 %818 }
  0xb4   : > { %v5346_v46 = vpop.permute.xlu0 %816 }
  0xb5   : > { %1020 = vrot.lane.b32.xlu1 %v5186_v25, %s4600_s26 }
  0xb6   : > { %1018 = vrot.lane.b32.xlu0 %v5167_v52, %s4600_s26 }
  0xb7   : > { %v5352_v39 = vpop.permute.xlu1 %822 }
  0xb8   : > { %v5354_v48 = vpop.permute.xlu0 %820 }
  0xb9   : > { %1024 = vrot.lane.b32.xlu1 %v5198_v28, %s4600_s26 }
  0xba   : > { %1022 = vrot.lane.b32.xlu0 %v5179_v16, %s4600_s26 }
  0xbb   : > { %v5360_v47 = vpop.permute.xlu1 %826 }
  0xbc   : > { %v5362_v63 = vpop.permute.xlu0 %824 }
  0xbd   : > { %1028 = vrot.lane.b32.xlu1 %v5210_v4, %s4600_s26 }
  0xbe   : > { %1026 = vrot.lane.b32.xlu0 %v5191_v12, %s4600_s26 }
  0xbf   : > { %v5368_v52 = vpop.permute.xlu1 %830 }
  0xc0   : > { %v5370_v25 = vpop.permute.xlu0 %828 }
  0xc1   : > { %1032 = vrot.lane.b32.xlu1 %v5222_v1, %s4600_s26 }
  0xc2   : > { %1030 = vrot.lane.b32.xlu0 %v5203_v57, %s4600_s26 }
  0xc3   : > { %v5376_v16 = vpop.permute.xlu1 %834 }
  0xc4   : > { %v5378_v28 = vpop.permute.xlu0 %832 }
  0xc5   : > { %1036 = vrot.lane.b32.xlu1 %v5234_v13, %s4600_s26  ;;  %v4513_v13 = vld [vmem:[%s4660_s23 + $0x108] ss:$0 sps:$4 sm:$0x11]  }
  0xc6   : > { %1034 = vrot.lane.b32.xlu0 %v5215_v20, %s4600_s26 }
  0xc7   : > { %v5384_v12 = vpop.permute.xlu1 %838 }
  0xc8   : > { %v5386_v4 = vpop.permute.xlu0 %836 }
  0xc9   : > { %1040 = vrot.lane.b32.xlu1 %v5246_v49, %s4600_s26  ;;  %v1066_v49 = vshll.u32 %v5069_v26, 16 }
  0xca   : > { %1038 = vrot.lane.b32.xlu0 %v5227_v3, %s4600_s26  ;;  %v1070_v3 = vrot.slane %v7417_v15, 1 }
  0xcb   : > { %v5392_v57 = vpop.permute.xlu1 %842  ;;  %v1068_v15 = vrot.slane %v1066_v49, 2 }
  0xcc   : > { %v5394_v1 = vpop.permute.xlu0 %840  ;;  %v1072_v50 = vor.u32 %v1071_v0, %v1070_v3  ;;  %v1080_v3 = vor.u32 %v1079_v33, %v1078_v43  ;;  %v7429_v43 = vld [vmem:[#allocation10_spill] sm:$0xff] }
  0xcd   : > { %1044 = vrot.lane.b32.xlu1 %v5260_v24, %s4600_s26  ;;  %v1075_v24 = vrot.slane %v4680_v10, 2  ;;  %v1069_v0 = vor.u32 %v1068_v15, %v1065_v54  ;;  %v7427_v15 = vld [vmem:[#allocation9_spill] sm:$0xff] }
  0xce   : > { %1042 = vrot.lane.b32.xlu0 %v5239_v55, %s4600_s26  ;;  %v992_v55 = vrot.slane %v4513_v13, 1  ;;  %v1083_v13 = vrot.slane %v4714_v27, 2 }
  0xcf   : > { %v5401_v20 = vpop.permute.xlu1 %915  ;;  %v1076_v29 = vor.u32 %v1075_v24, %v1074_v56  ;;  %v1073_v54 = vsel %vm1061_vm2, %v1069_v0, %v1072_v50 }
  0xd0   : > { %7416 = vst [vmem:[#allocation77_spill] sm:$0xff] %v5401_v20  ;;  %v5411_v8 = vpop.permute.xlu0 %913 }
  0xd1   : > { %7419 = vst [vmem:[#allocation78_spill] sm:$0xff] %v5411_v8  ;;  %1048 = vrot.lane.b32.xlu1 %v5275_v32, %s4600_s26  ;;  %v1082_v32 = vrot.slane %v4718_v30, 1  ;;  %v1077_v49 = vsel %vm1061_vm2, %v1072_v50, %v1076_v29  ;;  %v1081_v0 = vsel %vm1061_vm2, %v1076_v29, %v1080_v3 }
  0xd2   : > { %1046 = vrot.lane.b32.xlu0 %v5251_v53, %s4600_s26  ;;  %v7422_v53 = vrot.slane %v5086_v59, 1 }
  0xd3   : > { %v5417_v26 = vpop.permute.xlu1 %919  ;;  %v1084_v24 = vor.u32 %v1083_v13, %v1082_v32  ;;  %v1098_v32 = vrot.slane %v7429_v43, 1  ;;  %v7430_v13 = vld [vmem:[#allocation8_spill] sm:$0xff] }
  0xd4   : > { %7420 = vst [vmem:[#allocation79_spill] sm:$0xff] %v5417_v26  ;;  %v5419_v7 = vpop.permute.xlu0 %917  ;;  %v993_v45 = vsel %vm847_vm1, %v7422_v53, %v992_v55  ;;  %v1086_v26 = vrot.slane %v4761_v51, 1  ;;  %v1090_v55 = vrot.slane %v4744_v44, 1  ;;  %v7425_v53 = vld [vmem:[#allocation5_spill] sm:$0xff] }
  0xd5   : > { %7421 = vst [vmem:[#allocation80_spill] sm:$0xff] %v5419_v7  ;;  %1052 = vrot.lane.b32.xlu1 %v5289_v58, %s4600_s26  ;;  %v1091_v7 = vrot.slane %v7425_v53, 2  ;;  %v1085_v5 = vsel %vm1061_vm2, %v1080_v3, %v1084_v24  ;;  %v7436_v53 = vld [vmem:[#allocation13_spill] sm:$0xff] }
  0xd6   : > { %1050 = vrot.lane.b32.xlu0 %v5267_v22, %s4600_s26  ;;  %v1106_v44 = vrot.slane %v7436_v53, 1  ;;  %v7443_v53 = vld [vmem:[#allocation15_spill] sm:$0xff] }
  0xd7   : > { %v5432_v56 = vpop.permute.xlu1 %923  ;;  %v1092_v8 = vor.u32 %v1091_v7, %v1090_v55 }
  0xd8   : > { %7423 = vst [vmem:[#allocation81_spill] sm:$0xff] %v5432_v56  ;;  %v5434_v58 = vpop.permute.xlu0 %921  ;;  %v7428_v56 = vld [vmem:[#allocation7_spill] sm:$0xff] }
  0xd9   : > { %7424 = vst [vmem:[#allocation82_spill] sm:$0xff] %v5434_v58  ;;  %1056 = vrot.lane.b32.xlu1 %v993_v45, %s4600_s26  ;;  %v1094_v45 = vrot.slane %v7427_v15, 1  ;;  %v1095_v33 = vrot.slane %v7428_v56, 2  ;;  %v1099_v58 = vrot.slane %v7430_v13, 2  ;;  %v7435_v15 = vld [vmem:[#allocation11_spill] sm:$0xff] }
  0xda   : > { %1054 = vrot.lane.b32.xlu0 %v5102_v36, %s4600_s26  ;;  %v1088_v36 = vor.u32 %v1087_v18, %v1086_v26  ;;  %v7437_v18 = vld [vmem:[#allocation12_spill] sm:$0xff]  ;;  %s4604_s26 = smov 56  }
  0xdb   : > { %v5444_v22 = vpop.permute.xlu1 %927  ;;  %v1100_v56 = vor.u32 %v1099_v58, %v1098_v32  ;;  %v1107_v26 = vrot.slane %v7437_v18, 2  ;;  %v7441_v32 = vld [vmem:[#allocation14_spill] sm:$0xff] }
  0xdc   : > { %7426 = vst [vmem:[#allocation83_spill] sm:$0xff] %v5444_v22  ;;  %v5451_v20 = vpop.permute.xlu0 %925  ;;  %v1096_v22 = vor.u32 %v1095_v33, %v1094_v45  ;;  %v1093_v7 = vsel %vm1061_vm2, %v1088_v36, %v1092_v8  ;;  %v1089_v29 = vsel %vm1061_vm2, %v1084_v24, %v1088_v36  ;;  %v7440_v45 = vld [vmem:[#allocation20_spill] sm:$0xff] }
  0xdd   : > { %7431 = vst [vmem:[#allocation84_spill] sm:$0xff] %v5451_v20  ;;  %1210 = vrot.lane.b32.xlu1 %v1077_v49, %s4601_s27  ;;  %v7434_v20 = vld [vmem:[#allocation16_spill] sm:$0xff]  ;;  %v1103_v49 = vrot.slane %v7435_v15, 2  ;;  %v1110_v33 = vrot.slane %v7440_v45, 1 }
  0xde   : > { %1208 = vrot.lane.b32.xlu0 %v1073_v54, %s4601_s27  ;;  %v1102_v13 = vrot.slane %v7434_v20, 1  ;;  %v1108_v54 = vor.u32 %v1107_v26, %v1106_v44  ;;  %v1097_v24 = vsel %vm1061_vm2, %v1092_v8, %v1096_v22  ;;  %v7445_v36 = vld [vmem:[#allocation24_spill] sm:$0xff] }
  0xdf   : > { %v5456_v50 = vpop.permute.xlu1 %931 }
  0xe0   : > { %7432 = vst [vmem:[#allocation85_spill] sm:$0xff] %v5456_v50  ;;  %v5459_v43 = vpop.permute.xlu0 %929  ;;  %v1104_v3 = vor.u32 %v1103_v49, %v1102_v13  ;;  %v1111_v50 = vrot.slane %v7441_v32, 2  ;;  %v7447_v13 = vld [vmem:[#allocation21_spill] sm:$0xff]  ;;  %v7448_v49 = vld [vmem:[#allocation19_spill] sm:$0xff]  ;;  %v7452_v32 = vld [vmem:[#allocation22_spill] sm:$0xff] }
  0xe1   : > { %7433 = vst [vmem:[#allocation86_spill] sm:$0xff] %v5459_v43  ;;  %1214 = vrot.lane.b32.xlu1 %v1085_v5, %s4601_s27  ;;  %v1101_v5 = vsel %vm1061_vm2, %v1096_v22, %v1100_v56  ;;  %v7442_v43 = vld [vmem:[#allocation18_spill] sm:$0xff]  ;;  %v1122_v44 = vrot.slane %v7447_v13, 1  ;;  %v1123_v26 = vrot.slane %v7448_v49, 2  ;;  %v1127_v49 = vrot.slane %v7452_v32, 2 }
  0xe2   : > { %1212 = vrot.lane.b32.xlu0 %v1081_v0, %s4601_s27  ;;  %v1114_v18 = vrot.slane %v7442_v43, 1  ;;  %v1115_v0 = vrot.slane %v7443_v53, 2  ;;  %v1109_v53 = vsel %vm1061_vm2, %v1104_v3, %v1108_v54  ;;  %v1112_v43 = vor.u32 %v1111_v50, %v1110_v33  ;;  %v7455_v50 = vld [vmem:[#allocation23_spill] sm:$0xff] }
  0xe3   : > { %v5468_v55 = vpop.permute.xlu1 %935  ;;  %v1105_v8 = vsel %vm1061_vm2, %v1100_v56, %v1104_v3  ;;  %v1869_v56 = vsel %vm1833_vm3, %v4837_v42, %v5336_v11  ;;  %v7456_v11 = vld [vmem:[#allocation32_spill] sm:$0xff] }
  0xe4   : > { %7438 = vst [vmem:[#allocation87_spill] sm:$0xff] %v5468_v55  ;;  %v5471_v58 = vpop.permute.xlu0 %933 }
  0xe5   : > { %7439 = vst [vmem:[#allocation88_spill] sm:$0xff] %v5471_v58  ;;  %1218 = vrot.lane.b32.xlu1 %v1093_v7, %s4601_s27  ;;  %v1118_v7 = vrot.slane %v7445_v36, 1  ;;  %v7446_v58 = vld [vmem:[#allocation17_spill] sm:$0xff]  ;;  %v7451_v36 = vld [vmem:[#allocation28_spill] sm:$0xff] }
  0xe6   : > { %1216 = vrot.lane.b32.xlu0 %v1089_v29, %s4601_s27  ;;  %v1119_v15 = vrot.slane %v7446_v58, 2  ;;  %v1116_v29 = vor.u32 %v1115_v0, %v1114_v18  ;;  %v1124_v58 = vor.u32 %v1123_v26, %v1122_v44  ;;  %v1126_v13 = vrot.slane %v7451_v36, 1  ;;  %v5915_v36 = vld [vmem:[%s4660_s23 + $0xb0] sm:$0xff]  }
  0xe7   : > { %v5480_v55 = vpop.permute.xlu1 %939  ;;  %v1131_v18 = vrot.slane %v7455_v50, 2  ;;  %v1134_v26 = vrot.slane %v7456_v11, 1  ;;  %v7463_v11 = vld [vmem:[#allocation31_spill] sm:$0xff]  ;;  %v5863_v50 = vld [vmem:[%s4660_s23 + $0x90] sm:$0xff]   ;;  %7523 = vst [vmem:[#allocation121_spill] sm:$0xff] %v5915_v36 }
  0xe8   : > { %7444 = vst [vmem:[#allocation89_spill] sm:$0xff] %v5480_v55  ;;  %v5487_v45 = vpop.permute.xlu0 %937  ;;  %v1120_v22 = vor.u32 %v1119_v15, %v1118_v7  ;;  %v1117_v33 = vsel %vm1061_vm2, %v1112_v43, %v1116_v29  ;;  %v1867_v7 = vsel %vm1833_vm3, %v4828_v34, %v5338_v38  ;;  %v1873_v34 = vsel %vm1833_vm3, %v4858_v62, %v5344_v23 }
  0xe9   : > { %7449 = vst [vmem:[#allocation90_spill] sm:$0xff] %v5487_v45  ;;  %1222 = vrot.lane.b32.xlu1 %v1101_v5, %s4601_s27  ;;  %v7454_v5 = vld [vmem:[#allocation25_spill] sm:$0xff]  ;;  %7519 = vst [vmem:[#allocation117_spill] sm:$0xff] %v5863_v50 }
  0xea   : > { %1220 = vrot.lane.b32.xlu0 %v1097_v24, %s4601_s27  ;;  %v1130_v45 = vrot.slane %v7454_v5, 1  ;;  %v1125_v0 = vsel %vm1061_vm2, %v1120_v22, %v1124_v58  ;;  %v1128_v24 = vor.u32 %v1127_v49, %v1126_v13  ;;  %v7460_v13 = vld [vmem:[#allocation36_spill] sm:$0xff] }
  0xeb   : > { %v5492_v55 = vpop.permute.xlu1 %943  ;;  %v1142_v49 = vrot.slane %v7460_v13, 1  ;;  %v1871_v13 = vsel %vm1833_vm3, %v4850_v61, %v5346_v46 }
  0xec   : > { %7450 = vst [vmem:[#allocation91_spill] sm:$0xff] %v5492_v55  ;;  %v5497_v20 = vpop.permute.xlu0 %941  ;;  %v1132_v42 = vor.u32 %v1131_v18, %v1130_v45  ;;  %v7461_v45 = vld [vmem:[#allocation30_spill] sm:$0xff]  ;;  %v1129_v62 = vsel %vm1061_vm2, %v1124_v58, %v1128_v24 }
  0xed   : > { %7453 = vst [vmem:[#allocation92_spill] sm:$0xff] %v5497_v20  ;;  %1226 = vrot.lane.b32.xlu1 %v1109_v53, %s4601_s27  ;;  %v1113_v53 = vsel %vm1061_vm2, %v1108_v54, %v1112_v43  ;;  %v7459_v54 = vld [vmem:[#allocation26_spill] sm:$0xff]  ;;  %v1143_v18 = vrot.slane %v7461_v45, 2 }
  0xee   : > { %1224 = vrot.lane.b32.xlu0 %v1105_v8, %s4601_s27  ;;  %v7457_v8 = vld [vmem:[#allocation27_spill] sm:$0xff]  ;;  %v1139_v20 = vrot.slane %v7459_v54, 2  ;;  %v1121_v54 = vsel %vm1061_vm2, %v1116_v29, %v1120_v22  ;;  %v1877_v29 = vsel %vm1833_vm3, %v4889_v41, %v5352_v39  ;;  %v1875_v41 = vsel %vm1833_vm3, %v4877_v9, %v5354_v48  ;;  %v5837_v45 = vld [vmem:[%s4660_s23 + $0x80] sm:$0xff]  }
  0xef   : > { %v948_v15 = vpop.permute.xlu1 %947  ;;  %v1135_v55 = vrot.slane %v7457_v8, 2  ;;  %v1144_v61 = vor.u32 %v1143_v18, %v1142_v49  ;;  %7517 = vst [vmem:[#allocation115_spill] sm:$0xff] %v5837_v45 }
  0xf0   : > { %v5508_v3 = vsel %vm1898_vm4, %v1869_v56, %v948_v15  ;;  %v946_v44 = vpop.permute.xlu0 %945  ;;  %v7458_v15 = vld [vmem:[#allocation29_spill] sm:$0xff] }
  0xf1   : > { %1230 = vrot.lane.b32.xlu1 %v1117_v33, %s4601_s27  ;;  %v5519_v56 = vsel %vm1898_vm4, %v1867_v7, %v946_v44  ;;  %v1138_v43 = vrot.slane %v7458_v15, 1  ;;  %v7462_v33 = vld [vmem:[#allocation33_spill] sm:$0xff]  ;;  %v1147_v7 = vrot.slane %v7463_v11, 2  ;;  %v1136_v11 = vor.u32 %v1135_v55, %v1134_v26  ;;  %v7467_v55 = vld [vmem:[#allocation35_spill] sm:$0xff] }
  0xf2   : > { %1228 = vrot.lane.b32.xlu0 %v1113_v53, %s4601_s27  ;;  %v1146_v8 = vrot.slane %v7462_v33, 1  ;;  %v1133_v53 = vsel %vm1061_vm2, %v1128_v24, %v1132_v42 }
  0xf3   : > { %v952_v38 = vpop.permute.xlu1 %951  ;;  %v1140_v33 = vor.u32 %v1139_v20, %v1138_v43  ;;  %v1155_v20 = vrot.slane %v7467_v55, 2  ;;  %v1881_v43 = vsel %vm1833_vm3, %v4915_v37, %v5360_v47  ;;  %v1137_v49 = vsel %vm1061_vm2, %v1132_v42, %v1136_v11  ;;  %v7468_v37 = vld [vmem:[#allocation47_spill] sm:$0xff]  ;;  %v5815_v55 = vld [vmem:[%s4660_s23 + $0x78] sm:$0xff]  }
  0xf4   : > { %v5532_v44 = vsel %vm1898_vm4, %v1873_v34, %v952_v38  ;;  %v950_v15 = vpop.permute.xlu0 %949  ;;  %v1148_v46 = vor.u32 %v1147_v7, %v1146_v8  ;;  %v7464_v34 = vld [vmem:[#allocation41_spill] sm:$0xff]  ;;  %v7466_v38 = vld [vmem:[#allocation39_spill] sm:$0xff]  ;;  %v1158_v47 = vrot.slane %v7468_v37, 1  ;;  %7516 = vst [vmem:[#allocation114_spill] sm:$0xff] %v5815_v55 }
  0xf5   : > { %1234 = vrot.lane.b32.xlu1 %v1125_v0, %s4601_s27  ;;  %v5541_v23 = vsel %vm1898_vm4, %v1871_v13, %v950_v15  ;;  %v1150_v0 = vrot.slane %v7464_v34, 1  ;;  %v7465_v15 = vld [vmem:[#allocation34_spill] sm:$0xff]  ;;  %v1154_v24 = vrot.slane %v7466_v38, 1  ;;  %v1141_v8 = vsel %vm1061_vm2, %v1136_v11, %v1140_v33 }
  0xf6   : > { %1232 = vrot.lane.b32.xlu0 %v1121_v54, %s4601_s27  ;;  %v1151_v13 = vrot.slane %v7465_v15, 2  ;;  %v1149_v9 = vsel %vm1061_vm2, %v1144_v61, %v1148_v46 }
  0xf7   : > { %v956_v22 = vpop.permute.xlu1 %955  ;;  %v1156_v7 = vor.u32 %v1155_v20, %v1154_v24  ;;  %v7473_v24 = vld [vmem:[#allocation45_spill] sm:$0xff] }
  0xf8   : > { %v5550_v58 = vsel %vm1898_vm4, %v1877_v29, %v956_v22  ;;  %v954_v39 = vpop.permute.xlu0 %953  ;;  %v1152_v48 = vor.u32 %v1151_v13, %v1150_v0  ;;  %v7472_v0 = vld [vmem:[#allocation53_spill] sm:$0xff]  ;;  %v1167_v20 = vrot.slane %v7473_v24, 2  ;;  %v1883_v24 = vsel %vm1833_vm3, %v4924_v6, %v5370_v25 }
  0xf9   : > { %1238 = vrot.lane.b32.xlu1 %v1133_v53, %s4601_s27  ;;  %v5560_v26 = vsel %vm1898_vm4, %v1875_v41, %v954_v39  ;;  %v1879_v53 = vsel %vm1833_vm3, %v4906_v17, %v5362_v63  ;;  %v7470_v41 = vld [vmem:[#allocation42_spill] sm:$0xff]  ;;  %v1166_v13 = vrot.slane %v7472_v0, 1  ;;  %v1885_v17 = vsel %vm1833_vm3, %v4936_v19, %v5368_v52 }
  0xfa   : > { %1236 = vrot.lane.b32.xlu0 %v1129_v62, %s4601_s27  ;;  %v7469_v62 = vld [vmem:[#allocation37_spill] sm:$0xff]  ;;  %v1162_v42 = vrot.slane %v7470_v41, 1  ;;  %v7471_v39 = vld [vmem:[#allocation38_spill] sm:$0xff]  ;;  %v1157_v19 = vsel %vm1061_vm2, %v1152_v48, %v1156_v7  ;;  %v1174_v25 = vrot.slane %v5048_v40, 1 }
  0xfb   : > { %v960_v54 = vpop.permute.xlu1 %959  ;;  %v1159_v22 = vrot.slane %v7469_v62, 2  ;;  %v7475_v62 = vld [vmem:[#allocation44_spill] sm:$0xff] }
  0xfc   : > { %v5569_v18 = vsel %vm1898_vm4, %v1881_v43, %v960_v54  ;;  %v958_v29 = vpop.permute.xlu0 %957  ;;  %v1163_v43 = vrot.slane %v7471_v39, 2  ;;  %v1171_v41 = vrot.slane %v7475_v62, 2  ;;  %v1168_v62 = vor.u32 %v1167_v20, %v1166_v13  ;;  %v7479_v13 = vld [vmem:[#allocation40_spill] sm:$0xff]  ;;  %v5624_v20 = vld [vmem:[%s4660_s23 + $0x108] ss:$0 sps:$4 sm:$0x33]  }
  0xfd   : > { %1242 = vrot.lane.b32.xlu1 %v1141_v8, %s4601_s27  ;;  %v5580_v11 = vsel %vm1898_vm4, %v1879_v53, %v958_v29  ;;  %v7474_v8 = vld [vmem:[#allocation48_spill] sm:$0xff]  ;;  %v1145_v29 = vsel %vm1061_vm2, %v1140_v33, %v1144_v61  ;;  %v1889_v33 = vsel %vm1833_vm3, %v4958_v60, %v5376_v16  ;;  %v1887_v60 = vsel %vm1833_vm3, %v7479_v13, %v5378_v28  ;;  %v7481_v13 = vld [vmem:[#allocation59_spill] sm:$0xff] }
  0xfe   : > { %1240 = vrot.lane.b32.xlu0 %v1137_v49, %s4601_s27  ;;  %v1170_v54 = vrot.slane %v7474_v8, 1  ;;  %v1160_v49 = vor.u32 %v1159_v22, %v1158_v47  ;;  %v1164_v8 = vor.u32 %v1163_v43, %v1162_v42  ;;  %v1153_v47 = vsel %vm1061_vm2, %v1148_v46, %v1152_v48  ;;  %v7477_v22 = vld [vmem:[#allocation54_spill] sm:$0xff]  ;;  %v7478_v43 = vld [vmem:[#allocation51_spill] sm:$0xff]  ;;  %v5811_v39 = vld [vmem:[%s4660_s23 + $0x70] sm:$0xff]  }
  0xff   : > { %v964_v63 = vpop.permute.xlu1 %963  ;;  %v1178_v42 = vrot.slane %v7477_v22, 1  ;;  %v7480_v46 = vld [vmem:[#allocation46_spill] sm:$0xff]  ;;  %v7483_v22 = vld [vmem:[#allocation43_spill] sm:$0xff]  ;;  %7515 = vst [vmem:[#allocation113_spill] sm:$0xff] %v5811_v39  ;;  %v1301_v37 = vrot.slane %v5811_v39, 2 }
 0x100   : > { %v5592_v53 = vsel %vm1898_vm4, %v1885_v17, %v964_v63  ;;  %v962_v0 = vpop.permute.xlu0 %961  ;;  %v1172_v6 = vor.u32 %v1171_v41, %v1170_v54  ;;  %v1893_v48 = vsel %vm1833_vm3, %v7480_v46, %v5384_v12  ;;  %v1891_v12 = vsel %vm1833_vm3, %v7483_v22, %v5386_v4  ;;  %v7486_v4 = vld [vmem:[#allocation52_spill] sm:$0xff]  ;;  %v5889_v39 = vld [vmem:[%s4660_s23 + $0xa0] sm:$0xff]  }
 0x101   : > { %1246 = vrot.lane.b32.xlu1 %v1149_v9, %s4601_s27  ;;  %v5601_v52 = vsel %vm1898_vm4, %v1883_v24, %v962_v0  ;;  %v7476_v9 = vld [vmem:[#allocation49_spill] sm:$0xff]  ;;  %v1179_v0 = vrot.slane %v7478_v43, 2  ;;  %v1165_v24 = vsel %vm1061_vm2, %v1160_v49, %v1164_v8  ;;  %v1897_v22 = vsel %vm1833_vm3, %v7486_v4, %v5392_v57  ;;  %7521 = vst [vmem:[#allocation119_spill] sm:$0xff] %v5889_v39 }
 0x102   : > { %1244 = vrot.lane.b32.xlu0 %v1145_v29, %s4601_s27  ;;  %v1175_v17 = vrot.slane %v7476_v9, 2  ;;  %v1161_v29 = vsel %vm1061_vm2, %v1156_v7, %v1160_v49  ;;  %v1173_v28 = vsel %vm1061_vm2, %v1168_v62, %v1172_v6  ;;  %v7485_v49 = vld [vmem:[#allocation56_spill] sm:$0xff] }
 0x103   : > { %v968_v61 = vpop.permute.xlu1 %967  ;;  %v1187_v9 = vrot.slane %v7485_v49, 2 }
 0x104   : > { %v5610_v63 = vsel %vm1898_vm4, %v1889_v33, %v968_v61  ;;  %v966_v16 = vpop.permute.xlu0 %965  ;;  %v1176_v33 = vor.u32 %v1175_v17, %v1174_v25  ;;  %v1180_v61 = vor.u32 %v1179_v0, %v1178_v42  ;;  %v1200_v0 = vshrl.u32 %v5624_v20, 16 }
 0x105   : > { %1250 = vrot.lane.b32.xlu1 %v1157_v19, %s4601_s27  ;;  %v5620_v41 = vsel %vm1898_vm4, %v1887_v60, %v966_v16  ;;  %v1182_v60 = vrot.slane %v7481_v13, 1  ;;  %v7482_v16 = vld [vmem:[#allocation55_spill] sm:$0xff]  ;;  %v1169_v25 = vsel %vm1061_vm2, %v1164_v8, %v1168_v62  ;;  %v7489_v62 = vshll.u32 %v5086_v59, 16 }
 0x106   : > { %1248 = vrot.lane.b32.xlu0 %v1153_v47, %s4601_s27  ;;  %v1183_v43 = vrot.slane %v7482_v16, 2  ;;  %v7484_v47 = vld [vmem:[#allocation58_spill] sm:$0xff]  ;;  %v5793_v13 = vld [vmem:[%s4660_s23 + $0x68] sm:$0xff]  }
 0x107   : > { %v972_v54 = vpop.permute.xlu1 %971  ;;  %v1186_v7 = vrot.slane %v7484_v47, 1  ;;  %v1196_v8 = vrot.slane %v7489_v62, 2  ;;  %7512 = vst [vmem:[#allocation110_spill] sm:$0xff] %v5793_v13 }
 0x108   : > { %v5633_v19 = vsel %vm1898_vm4, %v1893_v48, %v972_v54  ;;  %v970_v46 = vpop.permute.xlu0 %969  ;;  %v1203_v48 = vshll.u32 %v5624_v20, 16  ;;  %v1184_v47 = vor.u32 %v1183_v43, %v1182_v60  ;;  %v349_v43 = vld [vmem:[%s4660_s23 + $0x8] sm:$0xc] }
 0x109   : > { %1254 = vrot.lane.b32.xlu1 %v1165_v24, %s4601_s27  ;;  %v5645_v17 = vsel %vm1898_vm4, %v1891_v12, %v970_v46  ;;  %v1181_v12 = vsel %vm1061_vm2, %v1176_v33, %v1180_v61  ;;  %v7487_v46 = vld [vmem:[#allocation50_spill] sm:$0xff]  ;;  %v1188_v57 = vor.u32 %v1187_v9, %v1186_v7 }
 0x10a   : > { %1252 = vrot.lane.b32.xlu0 %v1161_v29, %s4601_s27  ;;  %v1895_v42 = vsel %vm1833_vm3, %v7487_v46, %v5394_v1  ;;  %v7488_v29 = vshrl.u32 %v5086_v59, 16  ;;  %v1205_v16 = vrot.slane %v1203_v48, 2  ;;  %v5690_v46 = vld [vmem:[%s4660_s23 + $0x18] sm:$0xff]   ;;  %v5789_v59 = vld [vmem:[%s4660_s23 + $0x60] sm:$0xff]  }
 0x10b   : > { %v976_v24 = vpop.permute.xlu1 %975  ;;  %v1189_v60 = vsel %vm1061_vm2, %v1184_v47, %v1188_v57  ;;  %7511 = vst [vmem:[#allocation109_spill] sm:$0xff] %v5789_v59 }
 0x10c   : > { %v5655_v54 = vsel %vm1898_vm4, %v1897_v22, %v976_v24  ;;  %v974_v49 = vpop.permute.xlu0 %973  ;;  %v1193_v4 = vrot.slane %v7488_v29, 1  ;;  %v1202_v24 = vrot.slane %v1200_v0, 1  ;;  %v4529_v0 = vld [vmem:[%s4660_s23 + $0xc] sm:$0xf] }
 0x10d   : > { %1258 = vrot.lane.b32.xlu1 %v1173_v28, %s4601_s27  ;;  %v5666_v22 = vsel %vm1898_vm4, %v1895_v42, %v974_v49  ;;  %v1177_v28 = vsel %vm1061_vm2, %v1172_v6, %v1176_v33  ;;  %v3938_v48 = vcombine.low %v349_v43, %v4529_v0 }
 0x10e   : > { %1256 = vrot.lane.b32.xlu0 %v1169_v25, %s4601_s27  ;;  %v1197_v7 = vor.u32 %v1196_v8, %v1193_v4  ;;  %v1206_v49 = vor.u32 %v1205_v16, %v1202_v24  ;;  %v1185_v25 = vsel %vm1061_vm2, %v1180_v61, %v1184_v47  ;;  %v5693_v16 = vrot.slane %v5690_v46, 2  ;;  %v5705_v8 = vld [vmem:[%s4660_s23 + $0x20] sm:$0xff]  }
 0x10f   : > { %v5671_v1 = vpop.permute.xlu1 %996  ;;  %v1276_v29 = vrot.slane %v3938_v48, 2  ;;  %v1281_v24 = vrot.slane %v5705_v8, 2  ;;  %v5727_v48 = vld [vmem:[%s4660_s23 + $0x38] sm:$0xff]  }
 0x110   : > { %7490 = vst [vmem:[#allocation40_spill] sm:$0xff] %v5671_v1  ;;  %v5674_v9 = vpop.permute.xlu0 %994  ;;  %v1207_v33 = vsel %vm1061_vm2, %v1197_v7, %v1206_v49  ;;  %v1198_v47 = vsel %vm1061_vm2, %v1188_v57, %v1197_v7  ;;  %7500 = vst [vmem:[#allocation98_spill] sm:$0xff] %v5727_v48  ;;  %v5771_v1 = vld [vmem:[%s4660_s23 + $0x58] sm:$0xff]  }
 0x111   : > { %7491 = vst [vmem:[#allocation46_spill] sm:$0xff] %v5674_v9  ;;  %1262 = vrot.lane.b32.xlu1 %v1181_v12, %s4601_s27  ;;  %v1277_v12 = vrot.slane %v4664_v2, 2  ;;  %7508 = vst [vmem:[#allocation106_spill] sm:$0xff] %v5771_v1  ;;  %v1297_v9 = vrot.slane %v5789_v59, 2  ;;  %v5941_v59 = vld [vmem:[%s4660_s23 + $0xc0] sm:$0xff]  }
 0x112   : > { %1260 = vrot.lane.b32.xlu0 %v1177_v28, %s4601_s27  ;;  %v5709_v28 = vld [vmem:[%s4660_s23 + $0x28] sm:$0xff]   ;;  %7525 = vst [vmem:[#allocation123_spill] sm:$0xff] %v5941_v59 }
 0x113   : > { %v5680_v42 = vpop.permute.xlu1 %1000  ;;  %v1280_v62 = vsel %vm1275_vm5, %v1277_v12, %v5693_v16  ;;  %7496 = vst [vmem:[#allocation94_spill] sm:$0xff] %v5709_v28  ;;  %v1283_v43 = vrot.slane %v5709_v28, 2  ;;  %v6042_v28 = vld [vmem:[%s4660_s23 + $0x100] sm:$0xff]  }
 0x114   : > { %7492 = vst [vmem:[#allocation43_spill] sm:$0xff] %v5680_v42  ;;  %v5684_v6 = vpop.permute.xlu0 %998  ;;  %v5767_v42 = vld [vmem:[%s4660_s23 + $0x50] sm:$0xff]   ;;  %7539 = vst [vmem:[#allocation137_spill] sm:$0xff] %v6042_v28 }
 0x115   : > { %7493 = vst [vmem:[#allocation52_spill] sm:$0xff] %v5684_v6  ;;  %1266 = vrot.lane.b32.xlu1 %v1189_v60, %s4601_s27  ;;  %v1278_v60 = vsel %vm1275_vm5, %v1276_v29, %v1277_v12  ;;  %v5720_v49 = vsel %vm1275_vm5, %v1281_v24, %v1283_v43  ;;  %7507 = vst [vmem:[#allocation105_spill] sm:$0xff] %v5767_v42  ;;  %v1293_v6 = vrot.slane %v5767_v42, 2  ;;  %v5967_v42 = vld [vmem:[%s4660_s23 + $0xd0] sm:$0xff]  }
 0x116   : > { %1264 = vrot.lane.b32.xlu0 %v1185_v25, %s4601_s27  ;;  %v5723_v25 = vld [vmem:[%s4660_s23 + $0x30] sm:$0xff]   ;;  %7527 = vst [vmem:[#allocation125_spill] sm:$0xff] %v5967_v42 }
 0x117   : > { %v5696_v61 = vpop.permute.xlu1 %1004  ;;  %7499 = vst [vmem:[#allocation97_spill] sm:$0xff] %v5723_v25  ;;  %v1285_v0 = vrot.slane %v5723_v25, 2  ;;  %v6019_v25 = vld [vmem:[%s4660_s23 + $0xf0] sm:$0xff]  }
 0x118   : > { %7494 = vst [vmem:[#allocation50_spill] sm:$0xff] %v5696_v61  ;;  %v5699_v4 = vpop.permute.xlu0 %1002  ;;  %7534 = vst [vmem:[#allocation132_spill] sm:$0xff] %v6019_v25 }
 0x119   : > { %7495 = vst [vmem:[#allocation93_spill] sm:$0xff] %v5699_v4  ;;  %1270 = vrot.lane.b32.xlu1 %v1207_v33, %s4601_s27  ;;  %v1287_v33 = vrot.slane %v5727_v48, 2 }
 0x11a   : > { %1268 = vrot.lane.b32.xlu0 %v1198_v47, %s4601_s27  ;;  %v5735_v47 = vsel %vm1275_vm5, %v5693_v16, %v1281_v24  ;;  %s4605_s27 = smov 64  }
 0x11b   : > { %v5713_v57 = vpop.permute.xlu1 %1008 }
 0x11c   : > { %7497 = vst [vmem:[#allocation95_spill] sm:$0xff] %v5713_v57  ;;  %v5716_v7 = vpop.permute.xlu0 %1006  ;;  %v5745_v57 = vld [vmem:[%s4660_s23 + $0x40] sm:$0xff]  }
 0x11d   : > { %7498 = vst [vmem:[#allocation96_spill] sm:$0xff] %v5716_v7  ;;  %1343 = vrot.lane.b32.xlu1 %v1280_v62, %s4602_s28  ;;  %v5742_v62 = vsel %vm1275_vm5, %v1285_v0, %v1287_v33  ;;  %7503 = vst [vmem:[#allocation101_spill] sm:$0xff] %v5745_v57  ;;  %v5749_v7 = vld [vmem:[%s4660_s23 + $0x48] sm:$0xff]  }
 0x11e   : > { %1341 = vrot.lane.b32.xlu0 %v1278_v60, %s4602_s28  ;;  %v1289_v60 = vrot.slane %v5745_v57, 2  ;;  %7504 = vst [vmem:[#allocation102_spill] sm:$0xff] %v5749_v7  ;;  %v5993_v57 = vld [vmem:[%s4660_s23 + $0xe0] sm:$0xff]  }
 0x11f   : > { %v5731_v12 = vpop.permute.xlu1 %1012  ;;  %7530 = vst [vmem:[#allocation128_spill] sm:$0xff] %v5993_v57 }
 0x120   : > { %7501 = vst [vmem:[#allocation99_spill] sm:$0xff] %v5731_v12  ;;  %v5737_v29 = vpop.permute.xlu0 %1010  ;;  %v1291_v12 = vrot.slane %v5749_v7, 2 }
 0x121   : > { %7502 = vst [vmem:[#allocation100_spill] sm:$0xff] %v5737_v29  ;;  %1347 = vrot.lane.b32.xlu1 %v5720_v49, %s4602_s28  ;;  %v5757_v29 = vsel %vm1275_vm5, %v1283_v43, %v1285_v0  ;;  %v5779_v0 = vsel %vm1275_vm5, %v1287_v33, %v1289_v60 }
 0x122   : > { %1345 = vrot.lane.b32.xlu0 %v5735_v47, %s4602_s28  ;;  %v5764_v4 = vsel %vm1275_vm5, %v1289_v60, %v1291_v12  ;;  %v5801_v60 = vsel %vm1275_vm5, %v1291_v12, %v1293_v6 }
 0x123   : > { %v5754_v24 = vpop.permute.xlu1 %1016 }
 0x124   : > { %7505 = vst [vmem:[#allocation103_spill] sm:$0xff] %v5754_v24  ;;  %v5759_v61 = vpop.permute.xlu0 %1014  ;;  %v1295_v24 = vrot.slane %v5771_v1, 2 }
 0x125   : > { %7506 = vst [vmem:[#allocation104_spill] sm:$0xff] %v5759_v61  ;;  %1351 = vrot.lane.b32.xlu1 %v5742_v62, %s4602_s28 }
 0x126   : > { %1349 = vrot.lane.b32.xlu0 %v5757_v29, %s4602_s28  ;;  %v5786_v2 = vsel %vm1275_vm5, %v1293_v6, %v1295_v24 }
 0x127   : > { %v5776_v43 = vpop.permute.xlu1 %1020 }
 0x128   : > { %7509 = vst [vmem:[#allocation107_spill] sm:$0xff] %v5776_v43  ;;  %v5781_v61 = vpop.permute.xlu0 %1018  ;;  %v1299_v43 = vrot.slane %v5793_v13, 2 }
 0x129   : > { %7510 = vst [vmem:[#allocation108_spill] sm:$0xff] %v5781_v61  ;;  %1355 = vrot.lane.b32.xlu1 %v5764_v4, %s4602_s28 }
 0x12a   : > { %1353 = vrot.lane.b32.xlu0 %v5779_v0, %s4602_s28  ;;  %v5808_v40 = vsel %vm1275_vm5, %v1297_v9, %v1299_v43 }
 0x12b   : > { %v5798_v33 = vpop.permute.xlu1 %1024 }
 0x12c   : > { %7513 = vst [vmem:[#allocation111_spill] sm:$0xff] %v5798_v33  ;;  %v5803_v61 = vpop.permute.xlu0 %1022  ;;  %v1303_v33 = vrot.slane %v5815_v55, 2 }
 0x12d   : > { %7514 = vst [vmem:[#allocation112_spill] sm:$0xff] %v5803_v61  ;;  %1359 = vrot.lane.b32.xlu1 %v5786_v2, %s4602_s28  ;;  %v5825_v61 = vsel %vm1275_vm5, %v1295_v24, %v1297_v9 }
 0x12e   : > { %1357 = vrot.lane.b32.xlu0 %v5801_v60, %s4602_s28  ;;  %v5834_v34 = vsel %vm1275_vm5, %v1301_v37, %v1303_v33 }
 0x12f   : > { %v1029_v6 = vpop.permute.xlu1 %1028 }
 0x130   : > { %v5822_v12 = vsel %vm1963_vm6, %v5508_v3, %v1029_v6  ;;  %v1027_v38 = vpop.permute.xlu0 %1026  ;;  %v1305_v3 = vrot.slane %v5837_v45, 2  ;;  %v5841_v6 = vld [vmem:[%s4660_s23 + $0x88] sm:$0xff]  }
 0x131   : > { %1363 = vrot.lane.b32.xlu1 %v5808_v40, %s4602_s28  ;;  %v5831_v15 = vsel %vm1963_vm6, %v5519_v56, %v1027_v38  ;;  %7518 = vst [vmem:[#allocation116_spill] sm:$0xff] %v5841_v6  ;;  %v1307_v9 = vrot.slane %v5841_v6, 2  ;;  %v5851_v38 = vsel %vm1275_vm5, %v1299_v43, %v1301_v37 }
 0x132   : > { %1361 = vrot.lane.b32.xlu0 %v5825_v61, %s4602_s28 }
 0x133   : > { %v1033_v24 = vpop.permute.xlu1 %1032  ;;  %v5860_v6 = vsel %vm1275_vm5, %v1305_v3, %v1307_v9 }
 0x134   : > { %v5848_v56 = vsel %vm1963_vm6, %v5532_v44, %v1033_v24  ;;  %v1031_v55 = vpop.permute.xlu0 %1030  ;;  %v1309_v44 = vrot.slane %v5863_v50, 2  ;;  %v5867_v24 = vld [vmem:[%s4660_s23 + $0x98] sm:$0xff]  }
 0x135   : > { %1367 = vrot.lane.b32.xlu1 %v5834_v34, %s4602_s28  ;;  %v5857_v45 = vsel %vm1963_vm6, %v5541_v23, %v1031_v55  ;;  %7520 = vst [vmem:[#allocation118_spill] sm:$0xff] %v5867_v24  ;;  %v1311_v37 = vrot.slane %v5867_v24, 2  ;;  %v5877_v55 = vsel %vm1275_vm5, %v1303_v33, %v1305_v3 }
 0x136   : > { %1365 = vrot.lane.b32.xlu0 %v5851_v38, %s4602_s28 }
 0x137   : > { %v1037_v43 = vpop.permute.xlu1 %1036  ;;  %v5886_v24 = vsel %vm1275_vm5, %v1309_v44, %v1311_v37 }
 0x138   : > { %v5874_v23 = vsel %vm1963_vm6, %v5550_v58, %v1037_v43  ;;  %v1035_v5 = vpop.permute.xlu0 %1034  ;;  %v1313_v58 = vrot.slane %v5889_v39, 2  ;;  %v5893_v43 = vld [vmem:[%s4660_s23 + $0xa8] sm:$0xff]  }
 0x139   : > { %1371 = vrot.lane.b32.xlu1 %v5860_v6, %s4602_s28  ;;  %v5883_v50 = vsel %vm1963_vm6, %v5560_v26, %v1035_v5  ;;  %7522 = vst [vmem:[#allocation120_spill] sm:$0xff] %v5893_v43  ;;  %v1315_v33 = vrot.slane %v5893_v43, 2  ;;  %v5903_v26 = vsel %vm1275_vm5, %v1307_v9, %v1309_v44 }
 0x13a   : > { %1369 = vrot.lane.b32.xlu0 %v5877_v55, %s4602_s28 }
 0x13b   : > { %v1041_v3 = vpop.permute.xlu1 %1040  ;;  %v5912_v43 = vsel %vm1275_vm5, %v1313_v58, %v1315_v33 }
 0x13c   : > { %v5900_v5 = vsel %vm1963_vm6, %v5569_v18, %v1041_v3  ;;  %v1039_v32 = vpop.permute.xlu0 %1038  ;;  %v1317_v18 = vrot.slane %v5915_v36, 2  ;;  %v5919_v3 = vld [vmem:[%s4660_s23 + $0xb8] sm:$0xff]  }
 0x13d   : > { %1375 = vrot.lane.b32.xlu1 %v5886_v24, %s4602_s28  ;;  %v5909_v39 = vsel %vm1963_vm6, %v5580_v11, %v1039_v32  ;;  %7524 = vst [vmem:[#allocation122_spill] sm:$0xff] %v5919_v3  ;;  %v1319_v9 = vrot.slane %v5919_v3, 2  ;;  %v5929_v11 = vsel %vm1275_vm5, %v1311_v37, %v1313_v58 }
 0x13e   : > { %1373 = vrot.lane.b32.xlu0 %v5903_v26, %s4602_s28 }
 0x13f   : > { %v1045_v44 = vpop.permute.xlu1 %1044  ;;  %v5938_v3 = vsel %vm1275_vm5, %v1317_v18, %v1319_v9 }
 0x140   : > { %v5926_v32 = vsel %vm1963_vm6, %v5592_v53, %v1045_v44  ;;  %v1043_v13 = vpop.permute.xlu0 %1042  ;;  %v1321_v53 = vrot.slane %v5941_v59, 2  ;;  %v5945_v44 = vld [vmem:[%s4660_s23 + $0xc8] sm:$0xff]  }
 0x141   : > { %1379 = vrot.lane.b32.xlu1 %v5912_v43, %s4602_s28  ;;  %v5935_v36 = vsel %vm1963_vm6, %v5601_v52, %v1043_v13  ;;  %7526 = vst [vmem:[#allocation124_spill] sm:$0xff] %v5945_v44  ;;  %v1323_v37 = vrot.slane %v5945_v44, 2  ;;  %v5955_v13 = vsel %vm1275_vm5, %v1315_v33, %v1317_v18 }
 0x142   : > { %1377 = vrot.lane.b32.xlu0 %v5929_v11, %s4602_s28 }
 0x143   : > { %v1049_v58 = vpop.permute.xlu1 %1048  ;;  %v5964_v44 = vsel %vm1275_vm5, %v1321_v53, %v1323_v37 }
 0x144   : > { %v5952_v52 = vsel %vm1963_vm6, %v5610_v63, %v1049_v58  ;;  %v1047_v1 = vpop.permute.xlu0 %1046  ;;  %v1325_v63 = vrot.slane %v5967_v42, 2  ;;  %v5971_v58 = vld [vmem:[%s4660_s23 + $0xd8] sm:$0xff]  }
 0x145   : > { %1383 = vrot.lane.b32.xlu1 %v5938_v3, %s4602_s28  ;;  %v5961_v59 = vsel %vm1963_vm6, %v5620_v41, %v1047_v1  ;;  %7528 = vst [vmem:[#allocation126_spill] sm:$0xff] %v5971_v58  ;;  %v1327_v33 = vrot.slane %v5971_v58, 2  ;;  %v5981_v1 = vsel %vm1275_vm5, %v1319_v9, %v1321_v53 }
 0x146   : > { %1381 = vrot.lane.b32.xlu0 %v5955_v13, %s4602_s28 }
 0x147   : > { %v1053_v18 = vpop.permute.xlu1 %1052  ;;  %v5990_v58 = vsel %vm1275_vm5, %v1325_v63, %v1327_v33 }
 0x148   : > { %v5978_v41 = vsel %vm1963_vm6, %v5633_v19, %v1053_v18  ;;  %v1051_v7 = vpop.permute.xlu0 %1050  ;;  %7529 = vst [vmem:[#allocation127_spill] sm:$0xff] %v5990_v58  ;;  %v1329_v19 = vrot.slane %v5993_v57, 2  ;;  %v5997_v18 = vld [vmem:[%s4660_s23 + $0xe8] sm:$0xff]  }
 0x149   : > { %1387 = vrot.lane.b32.xlu1 %v5964_v44, %s4602_s28  ;;  %v5987_v42 = vsel %vm1963_vm6, %v5645_v17, %v1051_v7  ;;  %7531 = vst [vmem:[#allocation129_spill] sm:$0xff] %v5997_v18  ;;  %v1331_v9 = vrot.slane %v5997_v18, 2  ;;  %v6007_v7 = vsel %vm1275_vm5, %v1323_v37, %v1325_v63 }
 0x14a   : > { %1385 = vrot.lane.b32.xlu0 %v5981_v1, %s4602_s28  ;;  %7532 = vst [vmem:[#allocation130_spill] sm:$0xff] %v6007_v7 }
 0x14b   : > { %v1057_v53 = vpop.permute.xlu1 %1056  ;;  %v6016_v57 = vsel %vm1275_vm5, %v1329_v19, %v1331_v9 }
 0x14c   : > { %v6004_v17 = vsel %vm1963_vm6, %v5655_v54, %v1057_v53  ;;  %v1055_v48 = vpop.permute.xlu0 %1054  ;;  %7533 = vst [vmem:[#allocation131_spill] sm:$0xff] %v6016_v57  ;;  %v1333_v54 = vrot.slane %v6019_v25, 2  ;;  %v6023_v53 = vld [vmem:[%s4660_s23 + $0xf8] sm:$0xff]  }
 0x14d   : > { %1391 = vrot.lane.b32.xlu1 %v5990_v58, %s4602_s28  ;;  %v6013_v18 = vsel %vm1963_vm6, %v5666_v22, %v1055_v48  ;;  %7535 = vst [vmem:[#allocation133_spill] sm:$0xff] %v6023_v53  ;;  %v1335_v37 = vrot.slane %v6023_v53, 2  ;;  %v6031_v22 = vsel %vm1275_vm5, %v1327_v33, %v1329_v19  ;;  %v350_v58 = vld [vmem:[%s4660_s23 + $0x10] sm:$0xc]  ;;  %v6045_v53 = vrot.slane %v6042_v28, 2 }
 0x14e   : > { %1389 = vrot.lane.b32.xlu0 %v6007_v7, %s4602_s28  ;;  %v1339_v7 = vrot.slane %v5624_v20, 2  ;;  %v6053_v19 = vsel %vm1275_vm5, %v1331_v9, %v1333_v54 }
 0x14f   : > { %v6028_v63 = vpop.permute.xlu1 %1210  ;;  %v6039_v25 = vsel %vm1275_vm5, %v1333_v54, %v1335_v37  ;;  %v6073_v9 = vsel %vm1275_vm5, %v1335_v37, %v6045_v53 }
 0x150   : > { %7536 = vst [vmem:[#allocation134_spill] sm:$0xff] %v6028_v63  ;;  %v6033_v48 = vpop.permute.xlu0 %1208  ;;  %7538 = vst [vmem:[#allocation136_spill] sm:$0xff] %v6039_v25  ;;  %v6056_v63 = vld [vmem:[%s4660_s23 + $0x14] sm:$0xf]  ;;  %v1340_v20 = vsel %vm1275_vm5, %v6045_v53, %v1339_v7 }
 0x151   : > { %7537 = vst [vmem:[#allocation135_spill] sm:$0xff] %v6033_v48  ;;  %1395 = vrot.lane.b32.xlu1 %v6016_v57, %s4602_s28  ;;  %v6059_v57 = vcombine.low %v350_v58, %v6056_v63 }
 0x152   : > { %1393 = vrot.lane.b32.xlu0 %v6031_v22, %s4602_s28 }
 0x153   : > { %v6050_v33 = vpop.permute.xlu1 %1214  ;;  %v1416_v58 = vrot.slane %v6059_v57, 2 }
 0x154   : > { %7540 = vst [vmem:[#allocation138_spill] sm:$0xff] %v6050_v33  ;;  %v6061_v48 = vpop.permute.xlu0 %1212 }
 0x155   : > { %1399 = vrot.lane.b32.xlu1 %v6039_v25, %s4602_s28  ;;  %v1417_v7 = vsel %vm1275_vm5, %v1416_v58, %v5693_v16 }
 0x156   : > { %1397 = vrot.lane.b32.xlu0 %v6053_v19, %s4602_s28 }
 0x157   : > { %v6069_v33 = vpop.permute.xlu1 %1218 }
 0x158   : > { %7541 = vst [vmem:[#allocation139_spill] sm:$0xff] %v6069_v33  ;;  %v6076_v54 = vpop.permute.xlu0 %1216 }
 0x159   : > { %1403 = vrot.lane.b32.xlu1 %v1340_v20, %s4602_s28 }
 0x15a   : > { %1401 = vrot.lane.b32.xlu0 %v6073_v9, %s4602_s28  ;;  %s3895_s28 = sshll.u32 %s4588_s15, 6 }
 0x15b   : > { %v6081_v25 = vpop.permute.xlu1 %1222  ;;  %p6704_p5 = scmp.lt.s32.totalorder %s3895_s28, 127 }
 0x15c   : > { %v6085_v28 = vpop.permute.xlu0 %1220 }
 0x15d   : > { %1424 = vrot.lane.b32.xlu1 %v5735_v47, %s4603_s29  ;;  %v4518_v47 = vld [vmem:[%s7192_s1 + $0x38] sm:$0xff]   ;;  %s7746_s28 = smov (!%p6704_p5, %s3895_s28), 127 }
 0x15e   : > { %1422 = vrot.lane.b32.xlu0 %v1417_v7, %s4603_s29  ;;  %4345 = vmatprep.subr.bf16.mxu0 %v4518_v47  ;;  %s3896_s15 = sshll.u32 %s7746_s28, 3 }
 0x15f   : > { %v6090_v37 = vpop.permute.xlu1 %1226  ;;  %4346 = vmatpush3.bf16.msra.mxu0 %v4518_v47  ;;  %4425 = vmatprep.subr.bf16.mxu1 %v4518_v47  ;;  %s6776_s6 = scalar_lea.vmem %s7193_s2, %s3896_s15 }
 0x160   : > { %v6092_v33 = vpop.permute.xlu0 %1224  ;;  %4433 = vmatpush3.bf16.msra.mxu1 %v4518_v47 }
 0x161   : > { %1428 = vrot.lane.b32.xlu1 %v5757_v29, %s4603_s29  ;;  %v4519_v29 = vld [vmem:[%s7192_s1 + $0x30] sm:$0xff]  }
 0x162   : > { %1426 = vrot.lane.b32.xlu0 %v5720_v49, %s4603_s29  ;;  %4347 = vmatprep.subr.bf16.mxu0 %v4519_v29 }
 0x163   : > { %v6098_v20 = vpop.permute.xlu1 %1230  ;;  %4348 = vmatpush3.bf16.msra.mxu0 %v4519_v29  ;;  %4426 = vmatprep.subr.bf16.mxu1 %v4519_v29 }
 0x164   : > { %v6100_v16 = vpop.permute.xlu0 %1228  ;;  %4434 = vmatpush3.bf16.msra.mxu1 %v4519_v29 }
 0x165   : > { %1432 = vrot.lane.b32.xlu1 %v5779_v0, %s4603_s29 }
 0x166   : > { %1430 = vrot.lane.b32.xlu0 %v5742_v62, %s4603_s29 }
 0x167   : > { %v6109_v58 = vpop.permute.xlu1 %1234 }
 0x168   : > { %v6111_v49 = vpop.permute.xlu0 %1232 }
 0x169   : > { %1436 = vrot.lane.b32.xlu1 %v5801_v60, %s4603_s29  ;;  %v4520_v60 = vld [vmem:[%s7192_s1 + $0x28] sm:$0xff]  }
 0x16a   : > { %1434 = vrot.lane.b32.xlu0 %v5764_v4, %s4603_s29  ;;  %4349 = vmatprep.subr.bf16.mxu0 %v4520_v60 }
 0x16b   : > { %v6120_v0 = vpop.permute.xlu1 %1238  ;;  %4350 = vmatpush3.bf16.msra.mxu0 %v4520_v60  ;;  %4427 = vmatprep.subr.bf16.mxu1 %v4520_v60 }
 0x16c   : > { %7542 = vst [vmem:[#allocation140_spill] sm:$0xff] %v6120_v0  ;;  %v6122_v62 = vpop.permute.xlu0 %1236  ;;  %4435 = vmatpush3.bf16.msra.mxu1 %v4520_v60 }
 0x16d   : > { %7543 = vst [vmem:[#allocation141_spill] sm:$0xff] %v6122_v62  ;;  %1440 = vrot.lane.b32.xlu1 %v5825_v61, %s4603_s29  ;;  %v4521_v61 = vld [vmem:[%s7192_s1 + $0x20] sm:$0xff]   ;;  %v7568_v62 = vld [vmem:[#allocation17_spill] sm:$0xff] }
 0x16e   : > { %1438 = vrot.lane.b32.xlu0 %v5786_v2, %s4603_s29  ;;  %4351 = vmatprep.subr.bf16.mxu0 %v4521_v61 }
 0x16f   : > { %v1243_v4 = vpop.permute.xlu1 %1242  ;;  %4352 = vmatpush3.bf16.msra.mxu0 %v4521_v61  ;;  %4428 = vmatprep.subr.bf16.mxu1 %v4521_v61 }
 0x170   : > { %v6133_v7 = vsel %vm2028_vm7, %v5822_v12, %v1243_v4  ;;  %v1241_v47 = vpop.permute.xlu0 %1240  ;;  %4436 = vmatpush3.bf16.msra.mxu1 %v4521_v61  ;;  %v1491_v4 = vshrl.u32 %v6059_v57, 16 }
 0x171   : > { %1444 = vrot.lane.b32.xlu1 %v5851_v38, %s4603_s29  ;;  %v6142_v2 = vsel %vm2028_vm7, %v5831_v15, %v1241_v47  ;;  %v4522_v15 = vld [vmem:[%s7192_s1 + $0x18] sm:$0xff]  }
 0x172   : > { %1442 = vrot.lane.b32.xlu0 %v5808_v40, %s4603_s29  ;;  %4353 = vmatprep.subr.bf16.mxu0 %v4522_v15 }
 0x173   : > { %v1247_v12 = vpop.permute.xlu1 %1246  ;;  %4354 = vmatpush3.bf16.msra.mxu0 %v4522_v15  ;;  %4429 = vmatprep.subr.bf16.mxu1 %v4522_v15 }
 0x174   : > { %v6148_v29 = vsel %vm2028_vm7, %v5848_v56, %v1247_v12  ;;  %v1245_v38 = vpop.permute.xlu0 %1244  ;;  %4437 = vmatpush3.bf16.msra.mxu1 %v4522_v15 }
 0x175   : > { %1448 = vrot.lane.b32.xlu1 %v5877_v55, %s4603_s29  ;;  %v6157_v40 = vsel %vm2028_vm7, %v5857_v45, %v1245_v38  ;;  %v4523_v45 = vld [vmem:[%s7192_s1 + $0x10] sm:$0xff]   ;;  %v1499_v38 = vrot.slane %v4680_v10, 3  ;;  %v4525_v10 = vld [vmem:[%s7192_s1] sm:$0xff]  }
 0x176   : > { %1446 = vrot.lane.b32.xlu0 %v5834_v34, %s4603_s29  ;;  %4355 = vmatprep.subr.bf16.mxu0 %v4523_v45 }
 0x177   : > { %v1251_v56 = vpop.permute.xlu1 %1250  ;;  %4356 = vmatpush3.bf16.msra.mxu0 %v4523_v45  ;;  %4430 = vmatprep.subr.bf16.mxu1 %v4523_v45 }
 0x178   : > { %v6163_v60 = vsel %vm2028_vm7, %v5874_v23, %v1251_v56  ;;  %v1249_v55 = vpop.permute.xlu0 %1248  ;;  %v1494_v23 = vshll.u32 %v6059_v57, 16  ;;  %v4524_v57 = vld [vmem:[%s7192_s1 + $0x8] sm:$0xff]   ;;  %4438 = vmatpush3.bf16.msra.mxu1 %v4523_v45  ;;  %v1503_v45 = vrot.slane %v4704_v21, 3 }
 0x179   : > { %1452 = vrot.lane.b32.xlu1 %v5903_v26, %s4603_s29  ;;  %v6173_v34 = vsel %vm2028_vm7, %v5883_v50, %v1249_v55  ;;  %v1493_v50 = vrot.slane %v1491_v4, 2  ;;  %4357 = vmatprep.subr.bf16.mxu0 %v4524_v57 }
 0x17a   : > { %1450 = vrot.lane.b32.xlu0 %v5860_v6, %s4603_s29  ;;  %v1496_v12 = vrot.slane %v1494_v23, 3  ;;  %4431 = vmatprep.subr.bf16.mxu1 %v4524_v57 }
 0x17b   : > { %v1255_v47 = vpop.permute.xlu1 %1254  ;;  %4358 = vmatpush3.bf16.msra.mxu0 %v4524_v57 }
 0x17c   : > { %v6180_v26 = vsel %vm2028_vm7, %v5900_v5, %v1255_v47  ;;  %v1253_v61 = vpop.permute.xlu0 %1252  ;;  %v1498_v5 = vrot.slane %v4692_v14, 2  ;;  %4439 = vmatpush3.bf16.msra.mxu1 %v4524_v57  ;;  %4359 = vmatprep.subr.bf16.mxu0 %v4525_v10 }
 0x17d   : > { %1456 = vrot.lane.b32.xlu1 %v5929_v11, %s4603_s29  ;;  %v6189_v6 = vsel %vm2028_vm7, %v5909_v39, %v1253_v61  ;;  %v355_v11 = vld [vmem:[%s4660_s23 + $0x10] sm:$0x8]  ;;  %v1497_v39 = vor.u32 %v1496_v12, %v1493_v50  ;;  %4432 = vmatprep.subr.bf16.mxu1 %v4525_v10  ;;  %v1707_v12 = vrot.slane %v5705_v8, 3 }
 0x17e   : > { %1454 = vrot.lane.b32.xlu0 %v5886_v24, %s4603_s29  ;;  %v1500_v24 = vor.u32 %v1499_v38, %v1498_v5  ;;  %v1510_v5 = vrot.slane %v4761_v51, 2  ;;  %v1511_v38 = vrot.slane %v4721_v31, 3 }
 0x17f   : > { %v1259_v15 = vpop.permute.xlu1 %1258  ;;  %4360 = vmatpush3.bf16.msra.mxu0 %v4525_v10 }
 0x180   : > { %v6198_v56 = vsel %vm2028_vm7, %v5926_v32, %v1259_v15  ;;  %v1257_v55 = vpop.permute.xlu0 %1256  ;;  %v3943_v32 = vcombine.low %v355_v11, %v6056_v63  ;;  %v1506_v63 = vrot.slane %v4718_v30, 2  ;;  %4440 = vmatpush3.bf16.msra.mxu1 %v4525_v10  ;;  %v1501_v21 = vsel %vm1489_vm8, %v1497_v39, %v1500_v24  ;;  %v7544_v11 = vld [vmem:[#allocation94_spill] sm:$0xff]  ;;  %v7546_v39 = vld [vmem:[#allocation5_spill] sm:$0xff] }
 0x181   : > { %1460 = vrot.lane.b32.xlu1 %v5955_v13, %s4603_s29  ;;  %v6207_v14 = vsel %vm2028_vm7, %v5935_v36, %v1257_v55  ;;  %v1502_v13 = vrot.slane %v4726_v35, 2  ;;  %v1709_v55 = vrot.slane %v7544_v11, 3  ;;  %v1515_v8 = vrot.slane %v7546_v39, 3 }
 0x182   : > { %1458 = vrot.lane.b32.xlu0 %v5912_v43, %s4603_s29  ;;  %v1507_v43 = vrot.slane %v4714_v27, 3  ;;  %v1704_v47 = vrot.slane %v3943_v32, 3 }
 0x183   : > { %v1263_v4 = vpop.permute.xlu1 %1262 }
 0x184   : > { %v6216_v23 = vsel %vm2028_vm7, %v5952_v52, %v1263_v4  ;;  %v1261_v36 = vpop.permute.xlu0 %1260  ;;  %v1705_v52 = vrot.slane %v5690_v46, 3 }
 0x185   : > { %1464 = vrot.lane.b32.xlu1 %v5981_v1, %s4603_s29  ;;  %v6224_v35 = vsel %vm2028_vm7, %v5961_v59, %v1261_v36  ;;  %v1504_v1 = vor.u32 %v1503_v45, %v1502_v13  ;;  %v1508_v59 = vor.u32 %v1507_v43, %v1506_v63  ;;  %v7547_v36 = vld [vmem:[#allocation97_spill] sm:$0xff] }
 0x186   : > { %1462 = vrot.lane.b32.xlu0 %v5938_v3, %s4603_s29  ;;  %v1706_v46 = vsel %vm1703_vm9, %v1704_v47, %v1705_v52  ;;  %v1708_v31 = vsel %vm1703_vm9, %v1705_v52, %v1707_v12  ;;  %v1711_v63 = vrot.slane %v7547_v36, 3  ;;  %v7548_v43 = vld [vmem:[#allocation9_spill] sm:$0xff]  ;;  %v7549_v47 = vld [vmem:[#allocation7_spill] sm:$0xff] }
 0x187   : > { %v1267_v61 = vpop.permute.xlu1 %1266  ;;  %v1505_v57 = vsel %vm1489_vm8, %v1500_v24, %v1504_v1  ;;  %v1509_v15 = vsel %vm1489_vm8, %v1504_v1, %v1508_v59  ;;  %v1512_v24 = vor.u32 %v1511_v38, %v1510_v5  ;;  %v1519_v52 = vrot.slane %v7549_v47, 3  ;;  %v7557_v47 = vld [vmem:[#allocation13_spill] sm:$0xff] }
 0x188   : > { %v6232_v30 = vsel %vm2028_vm7, %v5978_v41, %v1267_v61  ;;  %v1265_v27 = vpop.permute.xlu0 %1264  ;;  %v1712_v38 = vsel %vm1703_vm9, %v1709_v55, %v1711_v63 }
 0x189   : > { %1636 = vrot.lane.b32.xlu1 %v1501_v21, %s4604_s26  ;;  %v6237_v50 = vsel %vm2028_vm7, %v5987_v42, %v1265_v27  ;;  %v1513_v45 = vsel %vm1489_vm8, %v1508_v59, %v1512_v24  ;;  %v1518_v21 = vrot.slane %v7548_v43, 2  ;;  %v7550_v27 = vld [vmem:[#allocation98_spill] sm:$0xff] }
 0x18a   : > { %1466 = vrot.lane.b32.xlu0 %v5964_v44, %s4603_s29 }
 0x18b   : > { %v1271_v3 = vpop.permute.xlu1 %1270 }
 0x18c   : > { %v6245_v41 = vsel %vm2028_vm7, %v6004_v17, %v1271_v3  ;;  %v1269_v42 = vpop.permute.xlu0 %1268  ;;  %v7545_v17 = vld [vmem:[#allocation6_spill] sm:$0xff] }
 0x18d   : > { %1769 = vrot.lane.b32.xlu1 %v1706_v46, %s4605_s27  ;;  %v6254_v44 = vsel %vm2028_vm7, %v6013_v18, %v1269_v42  ;;  %v1514_v10 = vrot.slane %v7545_v17, 2  ;;  %v1710_v18 = vsel %vm1703_vm9, %v1707_v12, %v1709_v55  ;;  %v1713_v46 = vrot.slane %v7550_v27, 3  ;;  %v7551_v3 = vld [vmem:[#allocation10_spill] sm:$0xff]  ;;  %v7552_v12 = vld [vmem:[#allocation8_spill] sm:$0xff] }
 0x18e   : > { %1638 = vrot.lane.b32.xlu0 %v1505_v57, %s4604_s26  ;;  %v1522_v57 = vrot.slane %v7551_v3, 2  ;;  %v1523_v5 = vrot.slane %v7552_v12, 3  ;;  %v1520_v42 = vor.u32 %v1519_v52, %v1518_v21  ;;  %v1530_v52 = vrot.slane %v7557_v47, 2  ;;  %v7561_v47 = vld [vmem:[#allocation14_spill] sm:$0xff] }
 0x18f   : > { %v6260_v51 = vpop.permute.xlu1 %1343  ;;  %v1516_v4 = vor.u32 %v1515_v8, %v1514_v10  ;;  %v1714_v11 = vsel %vm1703_vm9, %v1711_v63, %v1713_v46  ;;  %v7553_v8 = vld [vmem:[#allocation101_spill] sm:$0xff]  ;;  %v7556_v63 = vld [vmem:[#allocation102_spill] sm:$0xff]  ;;  %v4606_v3 = vmov 0  }
 0x190   : > { %v6263_v32 = vpop.permute.xlu0 %1341  ;;  %v1524_v17 = vor.u32 %v1523_v5, %v1522_v57  ;;  %v1717_v21 = vrot.slane %v7556_v63, 3  ;;  %4476 = vset.pattern.permute.xlu1 %v4606_v3  ;;  %4475 = vset.pattern.permute.xlu0 %v4606_v3 }
 0x191   : > { %1640 = vrot.lane.b32.xlu1 %v1509_v15, %s4604_s26  ;;  %v1517_v1 = vsel %vm1489_vm8, %v1512_v24, %v1516_v4  ;;  %v1521_v39 = vsel %vm1489_vm8, %v1516_v4, %v1520_v42  ;;  %v7554_v24 = vld [vmem:[#allocation16_spill] sm:$0xff] }
 0x192   : > { %1771 = vrot.lane.b32.xlu0 %v1708_v31, %s4605_s27  ;;  %v1715_v31 = vrot.slane %v7553_v8, 3  ;;  %v1525_v43 = vsel %vm1489_vm8, %v1520_v42, %v1524_v17 }
 0x193   : > { %v6268_v13 = vpop.permute.xlu1 %1347 }
 0x194   : > { %v6274_v61 = vpop.permute.xlu0 %1345  ;;  %v1716_v57 = vsel %vm1703_vm9, %v1713_v46, %v1715_v31  ;;  %v1535_v46 = vrot.slane %v7561_v47, 3 }
 0x195   : > { %1773 = vrot.lane.b32.xlu1 %v1710_v18, %s4605_s27  ;;  %v1526_v18 = vrot.slane %v7554_v24, 2  ;;  %v7559_v24 = vld [vmem:[#allocation105_spill] sm:$0xff] }
 0x196   : > { %1642 = vrot.lane.b32.xlu0 %v1513_v45, %s4604_s26  ;;  %v7555_v45 = vld [vmem:[#allocation11_spill] sm:$0xff] }
 0x197   : > { %v6282_v59 = vpop.permute.xlu1 %1351  ;;  %v1527_v55 = vrot.slane %v7555_v45, 3  ;;  %v7560_v45 = vld [vmem:[#allocation20_spill] sm:$0xff] }
 0x198   : > { %v6285_v15 = vpop.permute.xlu0 %1349  ;;  %v1534_v63 = vrot.slane %v7560_v45, 2 }
 0x199   : > { %1644 = vrot.lane.b32.xlu1 %v1517_v1, %s4604_s26  ;;  %v7558_v1 = vld [vmem:[#allocation12_spill] sm:$0xff]  ;;  %v1528_v12 = vor.u32 %v1527_v55, %v1526_v18 }
 0x19a   : > { %1775 = vrot.lane.b32.xlu0 %v1712_v38, %s4605_s27  ;;  %v1531_v27 = vrot.slane %v7558_v1, 3  ;;  %v1718_v38 = vsel %vm1703_vm9, %v1715_v31, %v1717_v21  ;;  %v7562_v31 = vld [vmem:[#allocation106_spill] sm:$0xff] }
 0x19b   : > { %v6290_v10 = vpop.permute.xlu1 %1355  ;;  %v1529_v8 = vsel %vm1489_vm8, %v1524_v17, %v1528_v12 }
 0x19c   : > { %v6296_v36 = vpop.permute.xlu0 %1353  ;;  %v1532_v42 = vor.u32 %v1531_v27, %v1530_v52  ;;  %v7563_v52 = vld [vmem:[#allocation18_spill] sm:$0xff]  ;;  %v7564_v27 = vld [vmem:[#allocation15_spill] sm:$0xff] }
 0x19d   : > { %1777 = vrot.lane.b32.xlu1 %v1714_v11, %s4605_s27  ;;  %v1538_v1 = vrot.slane %v7563_v52, 2  ;;  %v1539_v3 = vrot.slane %v7564_v27, 3  ;;  %v7566_v52 = vld [vmem:[#allocation109_spill] sm:$0xff]  ;;  %v7567_v27 = vld [vmem:[#allocation24_spill] sm:$0xff] }
 0x19e   : > { %1646 = vrot.lane.b32.xlu0 %v1521_v39, %s4604_s26  ;;  %v1719_v39 = vrot.slane %v7559_v24, 3  ;;  %v1533_v55 = vsel %vm1489_vm8, %v1528_v12, %v1532_v42  ;;  %v1536_v24 = vor.u32 %v1535_v46, %v1534_v63  ;;  %v1542_v0 = vrot.slane %v7567_v27, 2 }
 0x19f   : > { %v6304_v4 = vpop.permute.xlu1 %1359  ;;  %v1540_v12 = vor.u32 %v1539_v3, %v1538_v1  ;;  %v7571_v1 = vld [vmem:[#allocation21_spill] sm:$0xff] }
 0x1a0   : > { %v6307_v5 = vpop.permute.xlu0 %1357  ;;  %v1546_v3 = vrot.slane %v7571_v1, 2 }
 0x1a1   : > { %1648 = vrot.lane.b32.xlu1 %v1525_v43, %s4604_s26  ;;  %v1721_v43 = vrot.slane %v7562_v31, 3  ;;  %v1537_v31 = vsel %vm1489_vm8, %v1532_v42, %v1536_v24  ;;  %v1541_v46 = vsel %vm1489_vm8, %v1536_v24, %v1540_v12 }
 0x1a2   : > { %1779 = vrot.lane.b32.xlu0 %v1716_v57, %s4605_s27  ;;  %v1720_v57 = vsel %vm1703_vm9, %v1717_v21, %v1719_v39  ;;  %v1543_v21 = vrot.slane %v7568_v62, 3 }
 0x1a3   : > { %v6312_v11 = vpop.permute.xlu1 %1363 }
 0x1a4   : > { %v6318_v18 = vpop.permute.xlu0 %1361  ;;  %v1544_v27 = vor.u32 %v1543_v21, %v1542_v0  ;;  %v7578_v21 = vld [vmem:[#allocation113_spill] sm:$0xff] }
 0x1a5   : > { %1781 = vrot.lane.b32.xlu1 %v1718_v38, %s4605_s27  ;;  %v1722_v38 = vsel %vm1703_vm9, %v1719_v39, %v1721_v43  ;;  %v7570_v39 = vld [vmem:[#allocation110_spill] sm:$0xff] }
 0x1a6   : > { %1650 = vrot.lane.b32.xlu0 %v1529_v8, %s4604_s26  ;;  %v1723_v8 = vrot.slane %v7566_v52, 3 }
 0x1a7   : > { %v6326_v17 = vpop.permute.xlu1 %1367 }
 0x1a8   : > { %v6329_v45 = vpop.permute.xlu0 %1365  ;;  %v1724_v62 = vsel %vm1703_vm9, %v1721_v43, %v1723_v8  ;;  %v1545_v43 = vsel %vm1489_vm8, %v1540_v12, %v1544_v27 }
 0x1a9   : > { %1652 = vrot.lane.b32.xlu1 %v1533_v55, %s4604_s26  ;;  %v1725_v55 = vrot.slane %v7570_v39, 3 }
 0x1aa   : > { %1783 = vrot.lane.b32.xlu0 %v1720_v57, %s4605_s27  ;;  %v7572_v57 = vld [vmem:[#allocation19_spill] sm:$0xff] }
 0x1ab   : > { %v6334_v47 = vpop.permute.xlu1 %1371  ;;  %v1726_v39 = vsel %vm1703_vm9, %v1723_v8, %v1725_v55  ;;  %v7579_v8 = vld [vmem:[#allocation25_spill] sm:$0xff] }
 0x1ac   : > { %7565 = vst [vmem:[#allocation94_spill] sm:$0xff] %v6334_v47  ;;  %v6340_v63 = vpop.permute.xlu0 %1369  ;;  %v1547_v47 = vrot.slane %v7572_v57, 3  ;;  %v7575_v57 = vld [vmem:[#allocation28_spill] sm:$0xff] }
 0x1ad   : > { %7569 = vst [vmem:[#allocation6_spill] sm:$0xff] %v6340_v63  ;;  %1785 = vrot.lane.b32.xlu1 %v1722_v38, %s4605_s27  ;;  %v1550_v63 = vrot.slane %v7575_v57, 2 }
 0x1ae   : > { %1654 = vrot.lane.b32.xlu0 %v1537_v31, %s4604_s26  ;;  %v1548_v1 = vor.u32 %v1547_v47, %v1546_v3  ;;  %v1554_v47 = vrot.slane %v7579_v8, 2  ;;  %v7580_v3 = vld [vmem:[#allocation23_spill] sm:$0xff] }
 0x1af   : > { %v1376_v42 = vpop.permute.xlu1 %1375 }
 0x1b0   : > { %v6350_v52 = vsel %vm2093_vm10, %v6133_v7, %v1376_v42  ;;  %v1374_v38 = vpop.permute.xlu0 %1373  ;;  %v7576_v7 = vld [vmem:[#allocation22_spill] sm:$0xff]  ;;  %v1549_v57 = vsel %vm1489_vm8, %v1544_v27, %v1548_v1 }
 0x1b1   : > { %7573 = vst [vmem:[#allocation5_spill] sm:$0xff] %v6350_v52  ;;  %1656 = vrot.lane.b32.xlu1 %v1541_v46, %s4604_s26  ;;  %v6356_v24 = vsel %vm2093_vm10, %v6142_v2, %v1374_v38  ;;  %v1551_v42 = vrot.slane %v7576_v7, 3  ;;  %v1727_v46 = vrot.slane %v7578_v21, 3  ;;  %v7582_v7 = vld [vmem:[#allocation114_spill] sm:$0xff] }
 0x1b2   : > { %7574 = vst [vmem:[#allocation97_spill] sm:$0xff] %v6356_v24  ;;  %1787 = vrot.lane.b32.xlu0 %v1724_v62, %s4605_s27  ;;  %v1555_v62 = vrot.slane %v7580_v3, 3 }
 0x1b3   : > { %v1380_v31 = vpop.permute.xlu1 %1379 }
 0x1b4   : > { %v6364_v0 = vsel %vm2093_vm10, %v6148_v29, %v1380_v31  ;;  %v1378_v2 = vpop.permute.xlu0 %1377  ;;  %v1729_v29 = vrot.slane %v7582_v7, 3  ;;  %v1552_v31 = vor.u32 %v1551_v42, %v1550_v63  ;;  %v1556_v3 = vor.u32 %v1555_v62, %v1554_v47  ;;  %v7588_v47 = vld [vmem:[#allocation27_spill] sm:$0xff] }
 0x1b5   : > { %7577 = vst [vmem:[#allocation9_spill] sm:$0xff] %v6364_v0  ;;  %1789 = vrot.lane.b32.xlu1 %v1726_v39, %s4605_s27  ;;  %v6373_v38 = vsel %vm2093_vm10, %v6157_v40, %v1378_v2  ;;  %v1728_v39 = vsel %vm1703_vm9, %v1725_v55, %v1727_v46  ;;  %v7586_v55 = vld [vmem:[#allocation115_spill] sm:$0xff]  ;;  %v7587_v2 = vld [vmem:[#allocation32_spill] sm:$0xff]  ;;  %v1559_v62 = vrot.slane %v7588_v47, 3 }
 0x1b6   : > { %7581 = vst [vmem:[#allocation7_spill] sm:$0xff] %v6373_v38  ;;  %1658 = vrot.lane.b32.xlu0 %v1545_v43, %s4604_s26  ;;  %v1730_v27 = vsel %vm1703_vm9, %v1727_v46, %v1729_v29  ;;  %v1553_v63 = vsel %vm1489_vm8, %v1548_v1, %v1552_v31  ;;  %v1731_v42 = vrot.slane %v7586_v55, 3  ;;  %v7590_v1 = vld [vmem:[#allocation116_spill] sm:$0xff]  ;;  %v7638_v38 = vld [vmem:[#allocation55_spill] sm:$0xff] }
 0x1b7   : > { %v1384_v12 = vpop.permute.xlu1 %1383  ;;  %v1607_v52 = vrot.slane %v7638_v38, 3 }
 0x1b8   : > { %v6380_v21 = vsel %vm2093_vm10, %v6163_v60, %v1384_v12  ;;  %v1382_v8 = vpop.permute.xlu0 %1381  ;;  %v1733_v12 = vrot.slane %v7590_v1, 3 }
 0x1b9   : > { %7583 = vst [vmem:[#allocation98_spill] sm:$0xff] %v6380_v21  ;;  %1660 = vrot.lane.b32.xlu1 %v1549_v57, %s4604_s26  ;;  %v6386_v40 = vsel %vm2093_vm10, %v6173_v34, %v1382_v8  ;;  %v1558_v57 = vrot.slane %v7587_v2, 2  ;;  %v1557_v34 = vsel %vm1489_vm8, %v1552_v31, %v1556_v3  ;;  %v7592_v8 = vld [vmem:[#allocation26_spill] sm:$0xff] }
 0x1ba   : > { %7584 = vst [vmem:[#allocation10_spill] sm:$0xff] %v6386_v40  ;;  %1791 = vrot.lane.b32.xlu0 %v1728_v39, %s4605_s27  ;;  %v7591_v39 = vld [vmem:[#allocation29_spill] sm:$0xff] }
 0x1bb   : > { %v1388_v43 = vpop.permute.xlu1 %1387  ;;  %v1560_v31 = vor.u32 %v1559_v62, %v1558_v57  ;;  %v7598_v62 = vld [vmem:[#allocation117_spill] sm:$0xff] }
 0x1bc   : > { %v6393_v60 = vsel %vm2093_vm10, %v6180_v26, %v1388_v43  ;;  %v1386_v7 = vpop.permute.xlu0 %1385  ;;  %v1562_v26 = vrot.slane %v7591_v39, 2  ;;  %v1563_v43 = vrot.slane %v7592_v8, 3  ;;  %v7595_v39 = vld [vmem:[#allocation36_spill] sm:$0xff] }
 0x1bd   : > { %7585 = vst [vmem:[#allocation8_spill] sm:$0xff] %v6393_v60  ;;  %1793 = vrot.lane.b32.xlu1 %v1730_v27, %s4605_s27  ;;  %v6402_v46 = vsel %vm2093_vm10, %v6189_v6, %v1386_v7  ;;  %v1732_v27 = vsel %vm1703_vm9, %v1729_v29, %v1731_v42  ;;  %v1734_v7 = vsel %vm1703_vm9, %v1731_v42, %v1733_v12  ;;  %v1566_v8 = vrot.slane %v7595_v39, 2  ;;  %v7599_v42 = vld [vmem:[#allocation33_spill] sm:$0xff] }
 0x1be   : > { %7589 = vst [vmem:[#allocation101_spill] sm:$0xff] %v6402_v46  ;;  %1662 = vrot.lane.b32.xlu0 %v1553_v63, %s4604_s26  ;;  %v1564_v1 = vor.u32 %v1563_v43, %v1562_v26  ;;  %v1561_v57 = vsel %vm1489_vm8, %v1556_v3, %v1560_v31  ;;  %v1570_v26 = vrot.slane %v7599_v42, 2  ;;  %v7600_v43 = vld [vmem:[#allocation31_spill] sm:$0xff]  ;;  %v7628_v46 = vld [vmem:[#allocation49_spill] sm:$0xff] }
 0x1bf   : > { %v1392_v55 = vpop.permute.xlu1 %1391  ;;  %v1599_v60 = vrot.slane %v7628_v46, 3  ;;  %v7630_v46 = vld [vmem:[#allocation126_spill] sm:$0xff] }
 0x1c0   : > { %v6410_v2 = vsel %vm2093_vm10, %v6198_v56, %v1392_v55  ;;  %v1390_v47 = vpop.permute.xlu0 %1389  ;;  %v7596_v56 = vld [vmem:[#allocation30_spill] sm:$0xff]  ;;  %v1565_v39 = vsel %vm1489_vm8, %v1560_v31, %v1564_v1 }
 0x1c1   : > { %7593 = vst [vmem:[#allocation16_spill] sm:$0xff] %v6410_v2  ;;  %1664 = vrot.lane.b32.xlu1 %v1557_v34, %s4604_s26  ;;  %v6416_v6 = vsel %vm2093_vm10, %v6207_v14, %v1390_v47  ;;  %v1567_v55 = vrot.slane %v7596_v56, 3  ;;  %v1735_v34 = vrot.slane %v7598_v62, 3  ;;  %v7602_v56 = vld [vmem:[#allocation118_spill] sm:$0xff] }
 0x1c2   : > { %7594 = vst [vmem:[#allocation11_spill] sm:$0xff] %v6416_v6  ;;  %1795 = vrot.lane.b32.xlu0 %v1732_v27, %s4605_s27  ;;  %v1571_v27 = vrot.slane %v7600_v43, 3 }
 0x1c3   : > { %v1396_v63 = vpop.permute.xlu1 %1395 }
 0x1c4   : > { %v6424_v29 = vsel %vm2093_vm10, %v6216_v23, %v1396_v63  ;;  %v1394_v14 = vpop.permute.xlu0 %1393  ;;  %v1737_v23 = vrot.slane %v7602_v56, 3  ;;  %v1568_v63 = vor.u32 %v1567_v55, %v1566_v8  ;;  %v1572_v43 = vor.u32 %v1571_v27, %v1570_v26  ;;  %v7608_v26 = vld [vmem:[#allocation34_spill] sm:$0xff] }
 0x1c5   : > { %7597 = vst [vmem:[#allocation102_spill] sm:$0xff] %v6424_v29  ;;  %1797 = vrot.lane.b32.xlu1 %v1734_v7, %s4605_s27  ;;  %v6433_v47 = vsel %vm2093_vm10, %v6224_v35, %v1394_v14  ;;  %v1736_v7 = vsel %vm1703_vm9, %v1733_v12, %v1735_v34  ;;  %v7606_v12 = vld [vmem:[#allocation119_spill] sm:$0xff]  ;;  %v7607_v14 = vld [vmem:[#allocation41_spill] sm:$0xff]  ;;  %v1575_v27 = vrot.slane %v7608_v26, 3 }
 0x1c6   : > { %7601 = vst [vmem:[#allocation13_spill] sm:$0xff] %v6433_v47  ;;  %1666 = vrot.lane.b32.xlu0 %v1561_v57, %s4604_s26  ;;  %v1738_v31 = vsel %vm1703_vm9, %v1735_v34, %v1737_v23  ;;  %v1569_v8 = vsel %vm1489_vm8, %v1564_v1, %v1568_v63  ;;  %v1739_v55 = vrot.slane %v7606_v12, 3  ;;  %v7610_v1 = vld [vmem:[#allocation120_spill] sm:$0xff] }
 0x1c7   : > { %v1400_v3 = vpop.permute.xlu1 %1399 }
 0x1c8   : > { %v6440_v62 = vsel %vm2093_vm10, %v6232_v30, %v1400_v3  ;;  %v1398_v42 = vpop.permute.xlu0 %1397  ;;  %v1741_v3 = vrot.slane %v7610_v1, 3 }
 0x1c9   : > { %7603 = vst [vmem:[#allocation12_spill] sm:$0xff] %v6440_v62  ;;  %1668 = vrot.lane.b32.xlu1 %v1565_v39, %s4604_s26  ;;  %v6446_v35 = vsel %vm2093_vm10, %v6237_v50, %v1398_v42  ;;  %v1574_v39 = vrot.slane %v7607_v14, 2  ;;  %v1573_v50 = vsel %vm1489_vm8, %v1568_v63, %v1572_v43  ;;  %v7612_v42 = vld [vmem:[#allocation35_spill] sm:$0xff]  ;;  %v1740_v14 = vsel %vm1703_vm9, %v1737_v23, %v1739_v55 }
 0x1ca   : > { %7604 = vst [vmem:[#allocation105_spill] sm:$0xff] %v6446_v35  ;;  %1799 = vrot.lane.b32.xlu0 %v1736_v7, %s4605_s27  ;;  %v7611_v7 = vld [vmem:[#allocation39_spill] sm:$0xff] }
 0x1cb   : > { %v1404_v57 = vpop.permute.xlu1 %1403  ;;  %v1576_v26 = vor.u32 %v1575_v27, %v1574_v39  ;;  %v7616_v27 = vld [vmem:[#allocation122_spill] sm:$0xff] }
 0x1cc   : > { %v6453_v30 = vsel %vm2093_vm10, %v6245_v41, %v1404_v57  ;;  %v1402_v56 = vpop.permute.xlu0 %1401  ;;  %v1578_v41 = vrot.slane %v7611_v7, 2  ;;  %v1579_v57 = vrot.slane %v7612_v42, 3  ;;  %v7613_v7 = vld [vmem:[#allocation121_spill] sm:$0xff]  ;;  %v7614_v42 = vld [vmem:[#allocation47_spill] sm:$0xff] }
 0x1cd   : > { %7605 = vst [vmem:[#allocation20_spill] sm:$0xff] %v6453_v30  ;;  %1801 = vrot.lane.b32.xlu1 %v1738_v31, %s4605_s27  ;;  %v6462_v34 = vsel %vm2093_vm10, %v6254_v44, %v1402_v56  ;;  %v1742_v44 = vsel %vm1703_vm9, %v1739_v55, %v1741_v3  ;;  %v1577_v1 = vsel %vm1489_vm8, %v1572_v43, %v1576_v26  ;;  %v7615_v30 = vld [vmem:[#allocation37_spill] sm:$0xff] }
 0x1ce   : > { %7609 = vst [vmem:[#allocation14_spill] sm:$0xff] %v6462_v34  ;;  %1670 = vrot.lane.b32.xlu0 %v1569_v8, %s4604_s26  ;;  %v1580_v63 = vor.u32 %v1579_v57, %v1578_v41  ;;  %v1743_v8 = vrot.slane %v7613_v7, 3  ;;  %v1582_v34 = vrot.slane %v7614_v42, 2  ;;  %v1583_v23 = vrot.slane %v7615_v30, 3  ;;  %v7617_v7 = vld [vmem:[#allocation42_spill] sm:$0xff] }
 0x1cf   : > { %v6468_v12 = vpop.permute.xlu1 %1424  ;;  %v1586_v42 = vrot.slane %v7617_v7, 2 }
 0x1d0   : > { %v6471_v31 = vpop.permute.xlu0 %1422  ;;  %v1581_v55 = vsel %vm1489_vm8, %v1576_v26, %v1580_v63  ;;  %v1744_v43 = vsel %vm1703_vm9, %v1741_v3, %v1743_v8  ;;  %v1584_v57 = vor.u32 %v1583_v23, %v1582_v34  ;;  %v7620_v26 = vld [vmem:[#allocation45_spill] sm:$0xff]  ;;  %v7621_v3 = vld [vmem:[#allocation123_spill] sm:$0xff] }
 0x1d1   : > { %1672 = vrot.lane.b32.xlu1 %v1573_v50, %s4604_s26  ;;  %v1745_v50 = vrot.slane %v7616_v27, 3  ;;  %v7619_v27 = vld [vmem:[#allocation53_spill] sm:$0xff]  ;;  %v1591_v47 = vrot.slane %v7620_v26, 3  ;;  %v1747_v23 = vrot.slane %v7621_v3, 3 }
 0x1d2   : > { %1803 = vrot.lane.b32.xlu0 %v1740_v14, %s4605_s27  ;;  %v1590_v62 = vrot.slane %v7619_v27, 2  ;;  %v1585_v34 = vsel %vm1489_vm8, %v1580_v63, %v1584_v57  ;;  %v7623_v63 = vld [vmem:[#allocation124_spill] sm:$0xff]  ;;  %v7624_v3 = vld [vmem:[#allocation125_spill] sm:$0xff] }
 0x1d3   : > { %v6476_v56 = vpop.permute.xlu1 %1428  ;;  %v1746_v30 = vsel %vm1703_vm9, %v1743_v8, %v1745_v50  ;;  %v1749_v26 = vrot.slane %v7623_v63, 3  ;;  %v1751_v6 = vrot.slane %v7624_v3, 3  ;;  %v7627_v63 = vld [vmem:[#allocation57_spill] sm:$0xff] }
 0x1d4   : > { %v6482_v39 = vpop.permute.xlu0 %1426  ;;  %v1598_v3 = vrot.slane %v7627_v63, 2  ;;  %v7631_v63 = vld [vmem:[#allocation128_spill] sm:$0xff] }
 0x1d5   : > { %1805 = vrot.lane.b32.xlu1 %v1742_v44, %s4605_s27  ;;  %v7618_v44 = vld [vmem:[#allocation38_spill] sm:$0xff]  ;;  %v1755_v40 = vrot.slane %v7631_v63, 3  ;;  %v7637_v63 = vld [vmem:[#allocation59_spill] sm:$0xff] }
 0x1d6   : > { %1674 = vrot.lane.b32.xlu0 %v1577_v1, %s4604_s26  ;;  %v1587_v35 = vrot.slane %v7618_v44, 3  ;;  %v1748_v44 = vsel %vm1703_vm9, %v1745_v50, %v1747_v23  ;;  %v1752_v50 = vsel %vm1703_vm9, %v1749_v26, %v1751_v6  ;;  %v1600_v21 = vor.u32 %v1599_v60, %v1598_v3 }
 0x1d7   : > { %v6488_v41 = vpop.permute.xlu1 %1432  ;;  %v1606_v0 = vrot.slane %v7637_v63, 2  ;;  %v7643_v63 = vld [vmem:[#allocation3_spill] sm:$0xff] }
 0x1d8   : > { %v6491_v14 = vpop.permute.xlu0 %1430  ;;  %v1588_v8 = vor.u32 %v1587_v35, %v1586_v42 }
 0x1d9   : > { %1676 = vrot.lane.b32.xlu1 %v1581_v55, %s4604_s26  ;;  %v1592_v55 = vor.u32 %v1591_v47, %v1590_v62 }
 0x1da   : > { %1807 = vrot.lane.b32.xlu0 %v1744_v43, %s4605_s27  ;;  %v7622_v43 = vld [vmem:[#allocation130_spill] sm:$0xff]  ;;  %v1589_v62 = vsel %vm1489_vm8, %v1584_v57, %v1588_v8  ;;  %v1750_v57 = vsel %vm1703_vm9, %v1747_v23, %v1749_v26  ;;  %v7632_v26 = vld [vmem:[#allocation127_spill] sm:$0xff] }
 0x1db   : > { %v6500_v1 = vpop.permute.xlu1 %1436  ;;  %v1593_v2 = vsel %vm1489_vm8, %v1588_v8, %v1592_v55 }
 0x1dc   : > { %v6504_v29 = vpop.permute.xlu0 %1434 }
 0x1dd   : > { %1809 = vrot.lane.b32.xlu1 %v1746_v30, %s4605_s27  ;;  %v7625_v30 = vld [vmem:[#allocation48_spill] sm:$0xff] }
 0x1de   : > { %1678 = vrot.lane.b32.xlu0 %v1585_v34, %s4604_s26  ;;  %v1594_v42 = vrot.slane %v7625_v30, 2  ;;  %v7626_v34 = vld [vmem:[#allocation44_spill] sm:$0xff] }
 0x1df   : > { %v6508_v7 = vpop.permute.xlu1 %1440 }
 0x1e0   : > { %v6511_v27 = vpop.permute.xlu0 %1438 }
 0x1e1   : > { %1468 = vrot.lane.b32.xlu1 %v7622_v43, %s4603_s29  ;;  %v1595_v43 = vrot.slane %v7626_v34, 3 }
 0x1e2   : > { %1811 = vrot.lane.b32.xlu0 %v1748_v44, %s4605_s27 }
 0x1e3   : > { %v6519_v47 = vpop.permute.xlu1 %1444 }
 0x1e4   : > { %v6522_v35 = vpop.permute.xlu0 %1442 }
 0x1e5   : > { %1682 = vrot.lane.b32.xlu1 %v1593_v2, %s4604_s26  ;;  %v1596_v2 = vor.u32 %v1595_v43, %v1594_v42 }
 0x1e6   : > { %1680 = vrot.lane.b32.xlu0 %v1589_v62, %s4604_s26  ;;  %v1753_v62 = vrot.slane %v7630_v46, 3 }
 0x1e7   : > { %v6531_v44 = vpop.permute.xlu1 %1448  ;;  %v1601_v23 = vsel %vm1489_vm8, %v1596_v2, %v1600_v21  ;;  %v1597_v60 = vsel %vm1489_vm8, %v1592_v55, %v1596_v2 }
 0x1e8   : > { %v6534_v8 = vpop.permute.xlu0 %1446  ;;  %v1756_v43 = vsel %vm1703_vm9, %v1753_v62, %v1755_v40  ;;  %v1754_v55 = vsel %vm1703_vm9, %v1751_v6, %v1753_v62  ;;  %v7646_v6 = vld [vmem:[#allocation46_spill] sm:$0xff]  ;;  %v7647_v62 = vld [vmem:[#allocation129_spill] sm:$0xff] }
 0x1e9   : > { %1815 = vrot.lane.b32.xlu1 %v1752_v50, %s4605_s27 }
 0x1ea   : > { %1813 = vrot.lane.b32.xlu0 %v1750_v57, %s4605_s27  ;;  %v7636_v57 = vld [vmem:[#allocation51_spill] sm:$0xff] }
 0x1eb   : > { %v6538_v30 = vpop.permute.xlu1 %1452  ;;  %v1603_v46 = vrot.slane %v7636_v57, 3  ;;  %v7642_v57 = vld [vmem:[#allocation62_spill] sm:$0xff] }
 0x1ec   : > { %7629 = vst [vmem:[#allocation106_spill] sm:$0xff] %v6538_v30  ;;  %v6540_v34 = vpop.permute.xlu0 %1450  ;;  %v1835_v38 = vsel %vm1833_vm3, %v7643_v63, %v7642_v57  ;;  %v7650_v63 = vld [vmem:[#allocation131_spill] sm:$0xff]  ;;  %v7663_v30 = vld [vmem:[#allocation80_spill] sm:$0xff] }
 0x1ed   : > { %1472 = vrot.lane.b32.xlu1 %v6031_v22, %s4603_s29  ;;  %v7635_v22 = vld [vmem:[#allocation54_spill] sm:$0xff] }
 0x1ee   : > { %1470 = vrot.lane.b32.xlu0 %v7632_v26, %s4603_s29  ;;  %v1602_v3 = vrot.slane %v7635_v22, 2 }
 0x1ef   : > { %v6549_v50 = vpop.permute.xlu1 %1456 }
 0x1f0   : > { %7633 = vst [vmem:[#allocation18_spill] sm:$0xff] %v6549_v50  ;;  %v6552_v42 = vpop.permute.xlu0 %1454  ;;  %v6567_v50 = vor.u32 %v1607_v52, %v1606_v0 }
 0x1f1   : > { %7634 = vst [vmem:[#allocation15_spill] sm:$0xff] %v6552_v42  ;;  %1686 = vrot.lane.b32.xlu1 %v1601_v23, %s4604_s26  ;;  %v1604_v23 = vor.u32 %v1603_v46, %v1602_v3  ;;  %v7648_v3 = vld [vmem:[#allocation132_spill] sm:$0xff] }
 0x1f2   : > { %1684 = vrot.lane.b32.xlu0 %v1597_v60, %s4604_s26  ;;  %v7644_v60 = vld [vmem:[#allocation78_spill] sm:$0xff] }
 0x1f3   : > { %v6561_v26 = vpop.permute.xlu1 %1460  ;;  %v1609_v0 = vsel %vm1489_vm8, %v1604_v23, %v6567_v50 }
 0x1f4   : > { %7639 = vst [vmem:[#allocation109_spill] sm:$0xff] %v6561_v26  ;;  %v6564_v2 = vpop.permute.xlu0 %1458  ;;  %v1900_v26 = vsel %vm1898_vm4, %v1835_v38, %v7644_v60  ;;  %v7651_v60 = vld [vmem:[#allocation58_spill] sm:$0xff] }
 0x1f5   : > { %7640 = vst [vmem:[#allocation24_spill] sm:$0xff] %v6564_v2  ;;  %1819 = vrot.lane.b32.xlu1 %v1756_v43, %s4605_s27  ;;  %v1965_v52 = vsel %vm1963_vm6, %v1900_v26, %v7646_v6  ;;  %v1757_v43 = vrot.slane %v7647_v62, 3  ;;  %v1610_v26 = vrot.slane %v7651_v60, 2  ;;  %v7652_v6 = vld [vmem:[#allocation56_spill] sm:$0xff] }
 0x1f6   : > { %1817 = vrot.lane.b32.xlu0 %v1754_v55, %s4605_s27  ;;  %v7649_v55 = vld [vmem:[#allocation135_spill] sm:$0xff] }
 0x1f7   : > { %v6570_v22 = vpop.permute.xlu1 %1464  ;;  %v2030_v57 = vsel %vm2028_vm7, %v1965_v52, %v7649_v55 }
 0x1f8   : > { %7641 = vst [vmem:[#allocation17_spill] sm:$0xff] %v6570_v22  ;;  %v6577_v24 = vpop.permute.xlu0 %1462  ;;  %v1611_v22 = vrot.slane %v7652_v6, 3  ;;  %v2095_v52 = vsel %vm2093_vm10, %v2030_v57, %v6263_v32  ;;  %v7661_v32 = vld [vmem:[#allocation2_spill] sm:$0xff]  ;;  %v7662_v6 = vld [vmem:[#allocation77_spill] sm:$0xff] }
 0x1f9   : > { %7645 = vst [vmem:[#allocation110_spill] sm:$0xff] %v6577_v24  ;;  %1476 = vrot.lane.b32.xlu1 %v6053_v19, %s4603_s29  ;;  %v1605_v19 = vsel %vm1489_vm8, %v1600_v21, %v1604_v23  ;;  %v7653_v24 = vld [vmem:[#allocation60_spill] sm:$0xff]  ;;  %v2160_v60 = vsel %vm2158_vm11, %v2095_v52, %v6471_v31  ;;  %v1758_v52 = vsel %vm1703_vm9, %v1755_v40, %v1757_v43 }
 0x1fa   : > { %1474 = vrot.lane.b32.xlu0 %v7650_v63, %s4603_s29  ;;  %v7654_v2 = vshrl.u32 %v7653_v24, 16  ;;  %v7655_v46 = vshll.u32 %v7653_v24, 16  ;;  %v7657_v63 = vld [vmem:[#allocation64_spill] sm:$0xff] }
 0x1fb   : > { %v1637_v38 = vpop.permute.xlu1 %1636  ;;  %v7658_v21 = vld [vmem:[#allocation4_spill] sm:$0xff] }
 0x1fc   : > { %v1614_v62 = vrot.slane %v7654_v2, 2  ;;  %v1615_v42 = vrot.slane %v7655_v46, 3  ;;  %v6600_v55 = vpop.permute.xlu0 %1466  ;;  %v1837_v23 = vsel %vm1833_vm3, %v7658_v21, %v7657_v63  ;;  %v7659_v2 = vrot.slane %v7648_v3, 3  ;;  %v7660_v46 = vld [vmem:[#allocation61_spill] sm:$0xff] }
 0x1fd   : > { %7656 = vst [vmem:[#allocation21_spill] sm:$0xff] %v6600_v55  ;;  %1690 = vrot.lane.b32.xlu1 %v1609_v0, %s4604_s26  ;;  %v1839_v57 = vsel %vm1833_vm3, %v7661_v32, %v7660_v46  ;;  %v1902_v0 = vsel %vm1898_vm4, %v1837_v23, %v7662_v6  ;;  %v2225_v55 = vsel %vm2223_vm12, %v2160_v60, %v1637_v38  ;;  %v7664_v32 = vld [vmem:[#allocation40_spill] sm:$0xff]  ;;  %v6629_v38 = vld [vmem:[%s4660_s23 + $0x108] sm:$0xff]  }
 0x1fe   : > { %v1760_v24 = vsel %vm1703_vm9, %v1757_v43, %v7659_v2  ;;  %1688 = vrot.lane.b32.xlu0 %v1605_v19, %s4604_s26  ;;  %v1612_v21 = vor.u32 %v1611_v22, %v1610_v26  ;;  %v6620_v2 = vor.u32 %v1615_v42, %v1614_v62  ;;  %v1904_v46 = vsel %vm1898_vm4, %v1839_v57, %v7663_v30  ;;  %v7665_v19 = vld [vmem:[#allocation52_spill] sm:$0xff]  ;;  %v7666_v43 = vld [vmem:[#allocation134_spill] sm:$0xff]  ;;  %v4561_v30 = vld [vmem:[%s4660_s23 + $0x18] sm:$0xff]  }
 0x1ff   : > { %v1770_v31 = vpop.permute.xlu1 %1769  ;;  %v1967_v23 = vsel %vm1963_vm6, %v1902_v0, %v7664_v32  ;;  %v1969_v40 = vsel %vm1963_vm6, %v1904_v46, %v7665_v19  ;;  %v6636_v22 = vld [vmem:[%s4660_s23 + $0x110] ss:$0 sps:$4 sm:$0x77]   ;;  %v7667_v26 = vld [vmem:[#allocation63_spill] sm:$0xff]  ;;  %v7669_v46 = vld [vmem:[#allocation137_spill] sm:$0xff]  ;;  %v1619_v19 = vshrl.u32 %v6629_v38, 16 }
 0x200   : > { %v2290_v63 = vsel %vm2288_vm13, %v2225_v55, %v1770_v31  ;;  %v1639_v6 = vpop.permute.xlu0 %1638  ;;  %v2032_v42 = vsel %vm2028_vm7, %v1967_v23, %v7666_v43  ;;  %v1841_v62 = vsel %vm1833_vm3, %v4561_v30, %v7667_v26  ;;  %v2034_v55 = vsel %vm2028_vm7, %v1969_v40, %v6061_v48  ;;  %v7668_v31 = vld [vmem:[#allocation133_spill] sm:$0xff]  ;;  %v4562_v30 = vld [vmem:[%s4660_s23 + $0x20] sm:$0xff]  }
 0x201   : > { %1823 = vrot.lane.b32.xlu1 %v1760_v24, %s4605_s27  ;;  %4361 = vmatprep.mubr.msk.bf16.mxu0 %vm2353_vm14, %v2290_v63  ;;  %v2097_v60 = vsel %vm2093_vm10, %v2032_v42, %v6260_v51  ;;  %v1617_v0 = vsel %vm1489_vm8, %v1612_v21, %v6620_v2  ;;  %v1761_v63 = vrot.slane %v7668_v31, 3  ;;  %v1763_v32 = vrot.slane %v7669_v46, 3  ;;  %v7673_v31 = vld [vmem:[#allocation82_spill] sm:$0xff] }
 0x202   : > { %1821 = vrot.lane.b32.xlu0 %v1758_v52, %s4605_s27  ;;  %v2162_v57 = vsel %vm2158_vm11, %v2097_v60, %v6468_v12  ;;  %v2099_v48 = vsel %vm2093_vm10, %v2034_v55, %v6274_v61  ;;  %v4527_v52 = vld [vmem:[%s4660_s23 + $0x110] ss:$0 sps:$4 sm:$0x33]   ;;  %v1622_v12 = vshll.u32 %v6629_v38, 16  ;;  %v1628_v42 = vshrl.u32 %v6636_v22, 16  ;;  %v7671_v55 = vld [vmem:[#allocation79_spill] sm:$0xff] }
 0x203   : > { %v1641_v24 = vpop.permute.xlu1 %1640  ;;  %v2227_v23 = vsel %vm2223_vm12, %v2162_v57, %v1639_v6  ;;  %v2164_v40 = vsel %vm2158_vm11, %v2099_v48, %v6482_v39  ;;  %v1631_v61 = vshll.u32 %v6636_v22, 16  ;;  %v7670_v6 = vld [vmem:[#allocation66_spill] sm:$0xff]  ;;  %v7672_v57 = vld [vmem:[#allocation136_spill] sm:$0xff] }
 0x204   : > { %v1772_v51 = vpop.permute.xlu0 %1771  ;;  %v1843_v26 = vsel %vm1833_vm3, %v4562_v30, %v7670_v6  ;;  %v2229_v60 = vsel %vm2223_vm12, %v2164_v40, %v1641_v24  ;;  %v7675_v6 = vld [vmem:[#allocation138_spill] sm:$0xff] }
 0x205   : > { %1480 = vrot.lane.b32.xlu1 %v6073_v9, %s4603_s29  ;;  %v2292_v43 = vsel %vm2288_vm13, %v2227_v23, %v1772_v51  ;;  %v1906_v9 = vsel %vm1898_vm4, %v1841_v62, %v7671_v55  ;;  %v1908_v48 = vsel %vm1898_vm4, %v1843_v26, %v7673_v31  ;;  %v7674_v23 = vld [vmem:[#allocation43_spill] sm:$0xff]  ;;  %v1613_v62 = vsel %vm1489_vm8, %v6567_v50, %v1612_v21 }
 0x206   : > { %1478 = vrot.lane.b32.xlu0 %v7672_v57, %s4603_s29  ;;  %4362 = vmatmul.mubr.msk.bf16.vlgmr.msra.gmra.mxu0 %vm2353_vm14, %v2292_v43  ;;  %v1971_v51 = vsel %vm1963_vm6, %v1906_v9, %v7674_v23  ;;  %v1764_v43 = vsel %vm1703_vm9, %v1761_v63, %v1763_v32  ;;  %v1418_v26 = vrot.slane %v6629_v38, 2  ;;  %v1420_v55 = vrot.slane %v4527_v52, 2  ;;  %v7676_v57 = vld [vmem:[#allocation93_spill] sm:$0xff] }
 0x207   : > { %v1774_v39 = vpop.permute.xlu1 %1773  ;;  %v2036_v24 = vsel %vm2028_vm7, %v1971_v51, %v7675_v6  ;;  %v1621_v9 = vrot.slane %v1619_v19, 2  ;;  %v1630_v50 = vrot.slane %v1628_v42, 2  ;;  %v1633_v21 = vrot.slane %v1631_v61, 3  ;;  %v4563_v51 = vld [vmem:[%s4660_s23 + $0x28] sm:$0xff]  }
 0x208   : > { %v2294_v30 = vsel %vm2288_vm13, %v2229_v60, %v1774_v39  ;;  %v1643_v40 = vpop.permute.xlu0 %1642  ;;  %v1624_v60 = vrot.slane %v1622_v12, 3  ;;  %v1973_v39 = vsel %vm1963_vm6, %v1908_v48, %v7676_v57  ;;  %v7677_v19 = vrot.slane %v7648_v3, 3  ;;  %v7683_v57 = vld [vmem:[#allocation50_spill] sm:$0xff] }
 0x209   : > { %1694 = vrot.lane.b32.xlu1 %v1617_v0, %s4604_s26  ;;  %4365 = vmatprep.mubr.msk.bf16.mxu0 %vm2353_vm14, %v2294_v30  ;;  %v2101_v0 = vsel %vm2093_vm10, %v2036_v24, %v6268_v13  ;;  %v2038_v23 = vsel %vm2028_vm7, %v1973_v39, %v6076_v54  ;;  %v1421_v54 = vsel %vm1275_vm5, %v1418_v26, %v1420_v55  ;;  %v7679_v30 = vld [vmem:[#allocation65_spill] sm:$0xff]  ;;  %v4564_v24 = vld [vmem:[%s4660_s23 + $0x30] sm:$0xff]  }
 0x20a   : > { %1692 = vrot.lane.b32.xlu0 %v1613_v62, %s4604_s26  ;;  %v2166_v52 = vsel %vm2158_vm11, %v2101_v0, %v6476_v56  ;;  %v1762_v12 = vsel %vm1703_vm9, %v7677_v19, %v1761_v63  ;;  %v2103_v13 = vsel %vm2093_vm10, %v2038_v23, %v6285_v15  ;;  %v1625_v63 = vor.u32 %v1624_v60, %v1621_v9  ;;  %v7685_v19 = vld [vmem:[#allocation96_spill] sm:$0xff] }
 0x20b   : > { %v1645_v31 = vpop.permute.xlu1 %1644  ;;  %v2231_v42 = vsel %vm2223_vm12, %v2166_v52, %v1643_v40  ;;  %v2168_v56 = vsel %vm2158_vm11, %v2103_v13, %v6491_v14  ;;  %v1634_v48 = vor.u32 %v1633_v21, %v1630_v50  ;;  %v1845_v15 = vsel %vm1833_vm3, %v4563_v51, %v7679_v30  ;;  %v7680_v40 = vld [vmem:[#allocation68_spill] sm:$0xff]  ;;  %v7681_v14 = vld [vmem:[#allocation81_spill] sm:$0xff]  ;;  %v7686_v51 = vld [vmem:[#allocation67_spill] sm:$0xff] }
 0x20c   : > { %v1776_v61 = vpop.permute.xlu0 %1775  ;;  %v2233_v62 = vsel %vm2223_vm12, %v2168_v56, %v1645_v31  ;;  %v1910_v55 = vsel %vm1898_vm4, %v1845_v15, %v7681_v14  ;;  %v1419_v60 = vsel %vm1275_vm5, %v6045_v53, %v1418_v26  ;;  %v7682_v50 = vld [vmem:[#allocation84_spill] sm:$0xff]  ;;  %v7684_v31 = vld [vmem:[#allocation139_spill] sm:$0xff]  ;;  %v1765_v26 = vrot.slane %v6629_v38, 3 }
 0x20d   : > { %1827 = vrot.lane.b32.xlu1 %v1764_v43, %s4605_s27  ;;  %v2296_v3 = vsel %vm2288_vm13, %v2231_v42, %v1776_v61  ;;  %v1847_v43 = vsel %vm1833_vm3, %v4564_v24, %v7680_v40  ;;  %v1975_v39 = vsel %vm1963_vm6, %v1910_v55, %v7683_v57  ;;  %v1635_v53 = vsel %vm1489_vm8, %v1625_v63, %v1634_v48  ;;  %v4565_v48 = vld [vmem:[%s4660_s23 + $0x38] sm:$0xff]   ;;  %v7688_v24 = vld [vmem:[#allocation70_spill] sm:$0xff] }
 0x20e   : > { %1825 = vrot.lane.b32.xlu0 %v1762_v12, %s4605_s27  ;;  %4366 = vmatmul.mubr.msk.bf16.gmra.mxu0 %vm2353_vm14, %v2296_v3  ;;  %v1912_v21 = vsel %vm1898_vm4, %v1847_v43, %v7682_v50  ;;  %v2040_v23 = vsel %vm2028_vm7, %v1975_v39, %v7684_v31  ;;  %v1767_v52 = vrot.slane %v6636_v22, 3  ;;  %v1626_v38 = vsel %vm1489_vm8, %v6620_v2, %v1625_v63  ;;  %v7689_v43 = vld [vmem:[#allocation95_spill] sm:$0xff]  ;;  %v7691_v50 = vld [vmem:[#allocation100_spill] sm:$0xff] }
 0x20f   : > { %v1778_v6 = vpop.permute.xlu1 %1777  ;;  %v1977_v12 = vsel %vm1963_vm6, %v1912_v21, %v7685_v19  ;;  %v2105_v13 = vsel %vm2093_vm10, %v2040_v23, %v6282_v59  ;;  %v1849_v2 = vsel %vm1833_vm3, %v4565_v48, %v7686_v51  ;;  %v3092_v23 = vld [vmem:[%s6776_s6] sm:$0xff]  ;;  %v3094_v19 = vld [vmem:[%s6776_s6 + $0x10] sm:$0xff] }
 0x210   : > { %v2298_v9 = vsel %vm2288_vm13, %v2233_v62, %v1778_v6  ;;  %v1647_v0 = vpop.permute.xlu0 %1646  ;;  %v2042_v61 = vsel %vm2028_vm7, %v1977_v12, %v6085_v28  ;;  %v1766_v62 = vsel %vm1703_vm9, %v1763_v32, %v1765_v26  ;;  %v4566_v6 = vld [vmem:[%s4660_s23 + $0x40] sm:$0xff]   ;;  %v3093_v32 = vld [vmem:[%s6776_s6 + $0x8] sm:$0xff]  ;;  %v7692_v12 = vld [vmem:[#allocation69_spill] sm:$0xff] }
 0x211   : > { %1484 = vrot.lane.b32.xlu1 %v1421_v54, %s4603_s29  ;;  %4369 = vmatprep.mubr.msk.bf16.mxu0 %vm2353_vm14, %v2298_v9  ;;  %v2170_v54 = vsel %vm2158_vm11, %v2105_v13, %v6488_v41  ;;  %v2107_v22 = vsel %vm2093_vm10, %v2042_v61, %v6296_v36  ;;  %v1768_v41 = vsel %vm1703_vm9, %v1765_v26, %v1767_v52  ;;  %v7690_v9 = vld [vmem:[#allocation86_spill] sm:$0xff] }
 0x212   : > { %1482 = vrot.lane.b32.xlu0 %v1419_v60, %s4603_s29  ;;  %v2235_v56 = vsel %vm2223_vm12, %v2170_v54, %v1647_v0  ;;  %v2172_v3 = vsel %vm2158_vm11, %v2107_v22, %v6504_v29  ;;  %v7687_v29 = vld [vmem:[#allocation83_spill] sm:$0xff]  ;;  %v1851_v40 = vsel %vm1833_vm3, %v4566_v6, %v7688_v24  ;;  %v7694_v22 = vld [vmem:[#allocation72_spill] sm:$0xff] }
 0x213   : > { %v1649_v42 = vpop.permute.xlu1 %1648  ;;  %v1914_v30 = vsel %vm1898_vm4, %v1849_v2, %v7687_v29  ;;  %v1916_v60 = vsel %vm1898_vm4, %v1851_v40, %v7690_v9  ;;  %v3096_v2 = vld [vmem:[%s6776_s6 + $0x20] sm:$0xff]  ;;  %v3097_v6 = vld [vmem:[%s6776_s6 + $0x28] sm:$0xff] }
 0x214   : > { %v1780_v59 = vpop.permute.xlu0 %1779  ;;  %v2237_v63 = vsel %vm2223_vm12, %v2172_v3, %v1649_v42  ;;  %v1979_v14 = vsel %vm1963_vm6, %v1914_v30, %v7689_v43  ;;  %v1981_v21 = vsel %vm1963_vm6, %v1916_v60, %v7691_v50  ;;  %v7693_v42 = vld [vmem:[#allocation85_spill] sm:$0xff]  ;;  %v7699_v60 = vld [vmem:[#allocation87_spill] sm:$0xff]  ;;  %v4570_v50 = vld [vmem:[%s4660_s23 + $0x60] sm:$0xff]  }
 0x215   : > { %1698 = vrot.lane.b32.xlu1 %v1635_v53, %s4604_s26  ;;  %v2300_v28 = vsel %vm2288_vm13, %v2235_v56, %v1780_v59  ;;  %v2044_v46 = vsel %vm2028_vm7, %v1979_v14, %v6081_v25  ;;  %v2046_v0 = vsel %vm2028_vm7, %v1981_v21, %v6092_v33  ;;  %v4567_v33 = vld [vmem:[%s4660_s23 + $0x48] sm:$0xff]   ;;  %v3098_v14 = vld [vmem:[%s6776_s6 + $0x30] sm:$0xff]  ;;  %v7700_v21 = vld [vmem:[#allocation74_spill] sm:$0xff] }
 0x216   : > { %1696 = vrot.lane.b32.xlu0 %v1626_v38, %s4604_s26  ;;  %4370 = vmatmul.mubr.msk.bf16.gmra.mxu0 %vm2353_vm14, %v2300_v28  ;;  %v2109_v57 = vsel %vm2093_vm10, %v2044_v46, %v6290_v10  ;;  %v2111_v25 = vsel %vm2093_vm10, %v2046_v0, %v6307_v5  ;;  %v4568_v38 = vld [vmem:[%s4660_s23 + $0x50] sm:$0xff]   ;;  %v7695_v59 = vld [vmem:[#allocation99_spill] sm:$0xff] }
 0x217   : > { %v1782_v36 = vpop.permute.xlu1 %1781  ;;  %v2174_v31 = vsel %vm2158_vm11, %v2109_v57, %v6500_v1  ;;  %v2176_v10 = vsel %vm2158_vm11, %v2111_v25, %v6511_v27  ;;  %v1853_v1 = vsel %vm1833_vm3, %v4567_v33, %v7692_v12  ;;  %v3095_v27 = vld [vmem:[%s6776_s6 + $0x18] sm:$0xff]  ;;  %v1855_v56 = vsel %vm1833_vm3, %v4568_v38, %v7694_v22 }
 0x218   : > { %v2302_v15 = vsel %vm2288_vm13, %v2237_v63, %v1782_v36  ;;  %v1651_v55 = vpop.permute.xlu0 %1650  ;;  %v1918_v61 = vsel %vm1898_vm4, %v1853_v1, %v7693_v42  ;;  %v7697_v63 = vld [vmem:[#allocation104_spill] sm:$0xff]  ;;  %v1859_v57 = vsel %vm1833_vm3, %v4570_v50, %v7700_v21  ;;  %v7705_v22 = vld [vmem:[#allocation89_spill] sm:$0xff] }
 0x219   : > { %1831 = vrot.lane.b32.xlu1 %v1768_v41, %s4605_s27  ;;  %4373 = vmatprep.mubr.msk.bf16.mxu0 %vm2353_vm14, %v2302_v15  ;;  %v2239_v53 = vsel %vm2223_vm12, %v2174_v31, %v1651_v55  ;;  %v1983_v3 = vsel %vm1963_vm6, %v1918_v61, %v7695_v59  ;;  %v7696_v41 = vld [vmem:[#allocation88_spill] sm:$0xff]  ;;  %v7698_v55 = vld [vmem:[#allocation71_spill] sm:$0xff]  ;;  %v3107_v21 = vld [vmem:[%s6776_s6 + $0x78] sm:$0xff] }
 0x21a   : > { %1829 = vrot.lane.b32.xlu0 %v1766_v62, %s4605_s27  ;;  %v1920_v48 = vsel %vm1898_vm4, %v1855_v56, %v7696_v41  ;;  %v2048_v51 = vsel %vm2028_vm7, %v1983_v3, %v6090_v37  ;;  %v4572_v3 = vld [vmem:[%s4660_s23 + $0x70] sm:$0xff]  }
 0x21b   : > { %v1653_v39 = vpop.permute.xlu1 %1652  ;;  %v1985_v36 = vsel %vm1963_vm6, %v1920_v48, %v7697_v63  ;;  %v2113_v29 = vsel %vm2093_vm10, %v2048_v51, %v6304_v4  ;;  %v7707_v48 = vld [vmem:[#allocation107_spill] sm:$0xff]  ;;  %v7708_v63 = vld [vmem:[#allocation92_spill] sm:$0xff] }
 0x21c   : > { %v1784_v26 = vpop.permute.xlu0 %1783  ;;  %v2241_v13 = vsel %vm2223_vm12, %v2176_v10, %v1653_v39  ;;  %v2050_v15 = vsel %vm2028_vm7, %v1985_v36, %v6100_v16  ;;  %v2178_v62 = vsel %vm2158_vm11, %v2113_v29, %v6508_v7  ;;  %v4569_v16 = vld [vmem:[%s4660_s23 + $0x58] sm:$0xff]   ;;  %v7701_v39 = vld [vmem:[#allocation103_spill] sm:$0xff]  ;;  %v7703_v10 = vld [vmem:[#allocation108_spill] sm:$0xff] }
 0x21d   : > { %3163 = vperm.xlu1 %4476, %v3093_v32   ;;  %v2304_v52 = vsel %vm2288_vm13, %v2239_v53, %v1784_v26  ;;  %v2115_v37 = vsel %vm2093_vm10, %v2050_v15, %v6318_v18  ;;  %v1857_v7 = vsel %vm1833_vm3, %v4569_v16, %v7698_v55  ;;  %v3100_v26 = vld [vmem:[%s6776_s6 + $0x40] sm:$0xff]  ;;  %v7709_v15 = vld [vmem:[#allocation112_spill] sm:$0xff] }
 0x21e   : > { %3158 = vperm.xlu0 %4475, %v3092_v23   ;;  %4374 = vmatmul.mubr.msk.bf16.gmra.mxu0 %vm2353_vm14, %v2304_v52  ;;  %v2180_v4 = vsel %vm2158_vm11, %v2115_v37, %v6522_v35  ;;  %v1922_v46 = vsel %vm1898_vm4, %v1857_v7, %v7699_v60  ;;  %v3099_v35 = vld [vmem:[%s6776_s6 + $0x38] sm:$0xff]  ;;  %v7702_v23 = vld [vmem:[#allocation90_spill] sm:$0xff]  ;;  %v7712_v60 = vld [vmem:[#allocation75_spill] sm:$0xff] }
 0x21f   : > { %v1786_v5 = vpop.permute.xlu1 %1785  ;;  %v1987_v0 = vsel %vm1963_vm6, %v1922_v46, %v7701_v39  ;;  %v1924_v25 = vsel %vm1898_vm4, %v1859_v57, %v7702_v23  ;;  %v7714_v57 = vld [vmem:[#allocation111_spill] sm:$0xff] }
 0x220   : > { %v2306_v54 = vsel %vm2288_vm13, %v2241_v13, %v1786_v5  ;;  %v1655_v28 = vpop.permute.xlu0 %1654  ;;  %v2052_v53 = vsel %vm2028_vm7, %v1987_v0, %v6098_v20  ;;  %v1989_v52 = vsel %vm1963_vm6, %v1924_v25, %v7703_v10  ;;  %v3101_v13 = vld [vmem:[%s6776_s6 + $0x48] sm:$0xff]  ;;  %v3108_v25 = vld [vmem:[%s6776_s6 + $0x80] sm:$0xff] }
 0x221   : > { %3168 = vperm.xlu1 %4476, %v3094_v19   ;;  %4377 = vmatprep.mubr.msk.bf16.mxu0 %vm2353_vm14, %v2306_v54  ;;  %v2243_v24 = vsel %vm2223_vm12, %v2178_v62, %v1655_v28  ;;  %v2117_v19 = vsel %vm2093_vm10, %v2052_v53, %v6312_v11  ;;  %v2054_v12 = vsel %vm2028_vm7, %v1989_v52, %v6111_v49  ;;  %v3102_v54 = vld [vmem:[%s6776_s6 + $0x50] sm:$0xff]  ;;  %v4571_v49 = vld [vmem:[%s4660_s23 + $0x68] sm:$0xff]   ;;  %v7716_v53 = vld [vmem:[#allocation94_spill] sm:$0xff] }
 0x222   : > { %3173 = vperm.xlu0 %4475, %v3095_v27   ;;  %v2182_v1 = vsel %vm2158_vm11, %v2117_v19, %v6519_v47  ;;  %v2119_v20 = vsel %vm2093_vm10, %v2054_v12, %v6329_v45  ;;  %v7704_v27 = vld [vmem:[#allocation73_spill] sm:$0xff]  ;;  %v7706_v28 = vld [vmem:[#allocation76_spill] sm:$0xff]  ;;  %v7717_v52 = vld [vmem:[#allocation106_spill] sm:$0xff] }
 0x223   : > { %v1657_v30 = vpop.permute.xlu1 %1656  ;;  %v2184_v11 = vsel %vm2158_vm11, %v2119_v20, %v6534_v8  ;;  %v1861_v47 = vsel %vm1833_vm3, %v4571_v49, %v7704_v27  ;;  %v3103_v8 = vld [vmem:[%s6776_s6 + $0x58] sm:$0xff]  ;;  %v1863_v41 = vsel %vm1833_vm3, %v4572_v3, %v7706_v28 }
 0x224   : > { %v1788_v40 = vpop.permute.xlu0 %1787  ;;  %v2245_v9 = vsel %vm2223_vm12, %v2180_v4, %v1657_v30  ;;  %v1926_v56 = vsel %vm1898_vm4, %v1861_v47, %v7705_v22  ;;  %v1928_v36 = vsel %vm1898_vm4, %v1863_v41, %v7708_v63  ;;  %v3104_v30 = vld [vmem:[%s6776_s6 + $0x60] sm:$0xff]  ;;  %v7719_v20 = vld [vmem:[#allocation97_spill] sm:$0xff]  ;;  %v7722_v41 = vld [vmem:[#allocation24_spill] sm:$0xff] }
 0x225   : > { %3178 = vperm.xlu1 %4476, %v3096_v2   ;;  %v2308_v43 = vsel %vm2288_vm13, %v2243_v24, %v1788_v40  ;;  %v1991_v51 = vsel %vm1963_vm6, %v1926_v56, %v7707_v48  ;;  %v1993_v62 = vsel %vm1963_vm6, %v1928_v36, %v7709_v15  ;;  %v7710_v24 = vld [vmem:[#allocation141_spill] sm:$0xff]  ;;  %v7720_v22 = vld [vmem:[#allocation18_spill] sm:$0xff]  ;;  %v7723_v48 = vld [vmem:[#allocation7_spill] sm:$0xff] }
 0x226   : > { %3183 = vperm.xlu0 %4475, %v3097_v6   ;;  %4378 = vmatmul.mubr.msk.bf16.gmra.mxu0 %vm2353_vm14, %v2308_v43  ;;  %v2056_v29 = vsel %vm2028_vm7, %v1991_v51, %v6109_v58  ;;  %v2058_v40 = vsel %vm2028_vm7, %v1993_v62, %v7710_v24  ;;  %v3105_v43 = vld [vmem:[%s6776_s6 + $0x68] sm:$0xff]  ;;  %v3111_v27 = vld [vmem:[%s6776_s6 + $0x98] sm:$0xff]  ;;  %v2196_v51 = vsel %vm2158_vm11, %v7723_v48, %v7722_v41  ;;  %v3114_v63 = vld [vmem:[%s6776_s6 + $0xb0] sm:$0xff] }
 0x227   : > { %v1790_v18 = vpop.permute.xlu1 %1789  ;;  %v2121_v6 = vsel %vm2093_vm10, %v2056_v29, %v6326_v17  ;;  %v7721_v56 = vld [vmem:[#allocation5_spill] sm:$0xff] }
 0x228   : > { %v2310_v32 = vsel %vm2288_vm13, %v2245_v9, %v1790_v18  ;;  %v1659_v31 = vpop.permute.xlu0 %1658  ;;  %v2186_v4 = vsel %vm2158_vm11, %v2121_v6, %v6531_v44  ;;  %v3106_v9 = vld [vmem:[%s6776_s6 + $0x70] sm:$0xff]  ;;  %v4573_v18 = vld [vmem:[%s4660_s23 + $0x78] sm:$0xff]   ;;  %v3116_v6 = vld [vmem:[%s6776_s6 + $0xc0] sm:$0xff]  ;;  %s3898_s23 = sshll.u32 %s7746_s28, 2 }
 0x229   : > { %3188 = vperm.xlu1 %4476, %v3098_v14   ;;  %4381 = vmatprep.mubr.msk.bf16.mxu0 %vm2353_vm14, %v2310_v32  ;;  %v2247_v5 = vsel %vm2223_vm12, %v2182_v1, %v1659_v31  ;;  %v7711_v14 = vld [vmem:[#allocation6_spill] sm:$0xff]  ;;  %v1865_v44 = vsel %vm1833_vm3, %v4573_v18, %v7712_v60  ;;  %v7715_v31 = vld [vmem:[#allocation140_spill] sm:$0xff]  ;;  %v3115_v15 = vld [vmem:[%s6776_s6 + $0xb8] sm:$0xff]  ;;  %s7097_s9 = scalar_lea.vmem %s7194_s3, %s3898_s23 }
 0x22a   : > { %3193 = vperm.xlu0 %4475, %v3099_v35   ;;  %v2123_v58 = vsel %vm2093_vm10, %v2058_v40, %v7711_v14  ;;  %v7713_v35 = vld [vmem:[#allocation91_spill] sm:$0xff]  ;;  %v7724_v24 = vld [vmem:[#allocation109_spill] sm:$0xff] }
 0x22b   : > { %v1661_v33 = vpop.permute.xlu1 %1660  ;;  %v2188_v17 = vsel %vm2158_vm11, %v2123_v58, %v6540_v34  ;;  %v1930_v50 = vsel %vm1898_vm4, %v1865_v44, %v7713_v35  ;;  %v7725_v40 = vld [vmem:[#allocation9_spill] sm:$0xff]  ;;  %v3120_v35 = vld [vmem:[%s6776_s6 + $0xe0] sm:$0xff] }
 0x22c   : > { %v1792_v42 = vpop.permute.xlu0 %1791  ;;  %v2249_v38 = vsel %vm2223_vm12, %v2184_v11, %v1661_v33  ;;  %v1995_v39 = vsel %vm1963_vm6, %v1930_v50, %v7714_v57  ;;  %v3109_v33 = vld [vmem:[%s6776_s6 + $0x88] sm:$0xff]  ;;  %v3110_v11 = vld [vmem:[%s6776_s6 + $0x90] sm:$0xff] }
 0x22d   : > { %3198 = vperm.xlu1 %4476, %v3100_v26   ;;  %v2312_v61 = vsel %vm2288_vm13, %v2247_v5, %v1792_v42  ;;  %v2060_v23 = vsel %vm2028_vm7, %v1995_v39, %v7715_v31  ;;  %v3121_v39 = vld [vmem:[%s6776_s6 + $0xe8] sm:$0xff] }
 0x22e   : > { %3203 = vperm.xlu0 %4475, %v3101_v13   ;;  %4382 = vmatmul.mubr.msk.bf16.gmra.mxu0 %vm2353_vm14, %v2312_v61  ;;  %v2125_v26 = vsel %vm2093_vm10, %v2060_v23, %v7716_v53  ;;  %v7718_v13 = vld [vmem:[#allocation15_spill] sm:$0xff] }
 0x22f   : > { %v1794_v45 = vpop.permute.xlu1 %1793  ;;  %v2190_v19 = vsel %vm2158_vm11, %v2125_v26, %v7717_v52  ;;  %v2192_v5 = vsel %vm2158_vm11, %v7719_v20, %v7718_v13  ;;  %v3123_v26 = vld [vmem:[%s6776_s6 + $0xf8] sm:$0xff]  ;;  %v3124_v52 = vld [vmem:[%s6776_s6 + $0x100] sm:$0xff] }
 0x230   : > { %v2314_v59 = vsel %vm2288_vm13, %v2249_v38, %v1794_v45  ;;  %v1663_v2 = vpop.permute.xlu0 %1662  ;;  %v3112_v38 = vld [vmem:[%s6776_s6 + $0xa0] sm:$0xff]  ;;  %v7732_v13 = vld [vmem:[#allocation101_spill] sm:$0xff] }
 0x231   : > { %3208 = vperm.xlu1 %4476, %v3102_v54   ;;  %4385 = vmatprep.mubr.msk.bf16.mxu0 %vm2353_vm14, %v2314_v59  ;;  %v2251_v16 = vsel %vm2223_vm12, %v2186_v4, %v1663_v2  ;;  %v2194_v59 = vsel %vm2158_vm11, %v7721_v56, %v7720_v22  ;;  %v2198_v4 = vsel %vm2158_vm11, %v7725_v40, %v7724_v24  ;;  %v3128_v22 = vld [vmem:[%s6776_s6 + $0x120] sm:$0xff]  ;;  %v3133_v24 = vld [vmem:[%s6776_s6 + $0x148] sm:$0xff] }
 0x232   : > { %3213 = vperm.xlu0 %4475, %v3103_v8   ;;  %v3113_v8 = vld [vmem:[%s6776_s6 + $0xa8] sm:$0xff] }
 0x233   : > { %v1665_v37 = vpop.permute.xlu1 %1664 }
 0x234   : > { %v1796_v55 = vpop.permute.xlu0 %1795  ;;  %v2253_v46 = vsel %vm2223_vm12, %v2188_v17, %v1665_v37 }
 0x235   : > { %3218 = vperm.xlu1 %4476, %v3104_v30   ;;  %v2316_v7 = vsel %vm2288_vm13, %v2251_v16, %v1796_v55  ;;  %v7726_v16 = vld [vmem:[#allocation110_spill] sm:$0xff] }
 0x236   : > { %3223 = vperm.xlu0 %4475, %v3105_v43   ;;  %4386 = vmatmul.mubr.msk.bf16.gmra.mxu0 %vm2353_vm14, %v2316_v7  ;;  %v3117_v43 = vld [vmem:[%s6776_s6 + $0xc8] sm:$0xff]  ;;  %v7727_v55 = vld [vmem:[#allocation10_spill] sm:$0xff] }
 0x237   : > { %v1798_v32 = vpop.permute.xlu1 %1797  ;;  %v2200_v17 = vsel %vm2158_vm11, %v7727_v55, %v7726_v16  ;;  %v3136_v16 = vld [vmem:[%s6776_s6 + $0x160] sm:$0xff] }
 0x238   : > { %v2318_v34 = vsel %vm2288_vm13, %v2253_v46, %v1798_v32  ;;  %v1667_v0 = vpop.permute.xlu0 %1666  ;;  %v3119_v46 = vld [vmem:[%s6776_s6 + $0xd8] sm:$0xff]  ;;  %v7735_v55 = vld [vmem:[#allocation102_spill] sm:$0xff] }
 0x239   : > { %3228 = vperm.xlu1 %4476, %v3106_v9   ;;  %4389 = vmatprep.mubr.msk.bf16.mxu0 %vm2353_vm14, %v2318_v34  ;;  %v2255_v12 = vsel %vm2223_vm12, %v2190_v19, %v1667_v0  ;;  %v3118_v9 = vld [vmem:[%s6776_s6 + $0xd0] sm:$0xff]  ;;  %v7728_v34 = vld [vmem:[#allocation17_spill] sm:$0xff] }
 0x23a   : > { %3233 = vperm.xlu0 %4475, %v3107_v21   ;;  %v7729_v21 = vld [vmem:[#allocation98_spill] sm:$0xff]  ;;  %v7730_v19 = vld [vmem:[#allocation8_spill] sm:$0xff] }
 0x23b   : > { %v1669_v10 = vpop.permute.xlu1 %1668  ;;  %v2202_v57 = vsel %vm2158_vm11, %v7729_v21, %v7728_v34  ;;  %v3138_v34 = vld [vmem:[%s6776_s6 + $0x170] sm:$0xff] }
 0x23c   : > { %v1800_v1 = vpop.permute.xlu0 %1799  ;;  %v2257_v61 = vsel %vm2223_vm12, %v2192_v5, %v1669_v10 }
 0x23d   : > { %3238 = vperm.xlu1 %4476, %v3108_v25   ;;  %v2320_v42 = vsel %vm2288_vm13, %v2255_v12, %v1800_v1  ;;  %v3122_v25 = vld [vmem:[%s6776_s6 + $0xf0] sm:$0xff]  ;;  %v7731_v1 = vld [vmem:[#allocation21_spill] sm:$0xff] }
 0x23e   : > { %3243 = vperm.xlu0 %4475, %v3109_v33   ;;  %4390 = vmatmul.mubr.msk.bf16.gmra.mxu0 %vm2353_vm14, %v2320_v42  ;;  %v2204_v20 = vsel %vm2158_vm11, %v7732_v13, %v7731_v1  ;;  %v3125_v42 = vld [vmem:[%s6776_s6 + $0x108] sm:$0xff]  ;;  %v3143_v1 = vld [vmem:[%s6776_s6 + $0x198] sm:$0xff] }
 0x23f   : > { %v1802_v54 = vpop.permute.xlu1 %1801 }
 0x240   : > { %v2322_v49 = vsel %vm2288_vm13, %v2257_v61, %v1802_v54  ;;  %v1671_v47 = vpop.permute.xlu0 %1670 }
 0x241   : > { %3248 = vperm.xlu1 %4476, %v3110_v11   ;;  %4393 = vmatprep.mubr.msk.bf16.mxu1 %vm2353_vm14, %v2322_v49  ;;  %v2259_v3 = vsel %vm2223_vm12, %v2194_v59, %v1671_v47  ;;  %v3129_v59 = vld [vmem:[%s6776_s6 + $0x128] sm:$0xff] }
 0x242   : > { %3253 = vperm.xlu0 %4475, %v3111_v27   ;;  %v3126_v27 = vld [vmem:[%s6776_s6 + $0x110] sm:$0xff] }
 0x243   : > { %v1673_v45 = vpop.permute.xlu1 %1672 }
 0x244   : > { %v1804_v28 = vpop.permute.xlu0 %1803  ;;  %v2261_v36 = vsel %vm2223_vm12, %v2196_v51, %v1673_v45  ;;  %v7734_v51 = vld [vmem:[#allocation11_spill] sm:$0xff] }
 0x245   : > { %3258 = vperm.xlu1 %4476, %v3112_v38   ;;  %v2324_v2 = vsel %vm2288_vm13, %v2259_v3, %v1804_v28  ;;  %v3127_v38 = vld [vmem:[%s6776_s6 + $0x118] sm:$0xff]  ;;  %v3130_v3 = vld [vmem:[%s6776_s6 + $0x130] sm:$0xff] }
 0x246   : > { %3263 = vperm.xlu0 %4475, %v3113_v8   ;;  %4394 = vmatmul.mubr.msk.bf16.vlgmr.msra.gmra.mxu1 %vm2353_vm14, %v2324_v2  ;;  %v7733_v28 = vld [vmem:[#allocation16_spill] sm:$0xff] }
 0x247   : > { %v1806_v29 = vpop.permute.xlu1 %1805 }
 0x248   : > { %v2326_v30 = vsel %vm2288_vm13, %v2261_v36, %v1806_v29  ;;  %v1675_v62 = vpop.permute.xlu0 %1674  ;;  %v3131_v36 = vld [vmem:[%s6776_s6 + $0x138] sm:$0xff] }
 0x249   : > { %3268 = vperm.xlu1 %4476, %v3114_v63   ;;  %4397 = vmatprep.mubr.msk.bf16.mxu1 %vm2353_vm14, %v2326_v30  ;;  %v2263_v14 = vsel %vm2223_vm12, %v2198_v4, %v1675_v62  ;;  %v3134_v4 = vld [vmem:[%s6776_s6 + $0x150] sm:$0xff] }
 0x24a   : > { %3273 = vperm.xlu0 %4475, %v3115_v15  }
 0x24b   : > { %v1677_v37 = vpop.permute.xlu1 %1676 }
 0x24c   : > { %v1808_v58 = vpop.permute.xlu0 %1807  ;;  %v2265_v18 = vsel %vm2223_vm12, %v2200_v17, %v1677_v37 }
 0x24d   : > { %3278 = vperm.xlu1 %4476, %v3116_v6   ;;  %v2328_v7 = vsel %vm2288_vm13, %v2263_v14, %v1808_v58  ;;  %v3132_v6 = vld [vmem:[%s6776_s6 + $0x140] sm:$0xff]  ;;  %v3135_v14 = vld [vmem:[%s6776_s6 + $0x158] sm:$0xff] }
 0x24e   : > { %3283 = vperm.xlu0 %4475, %v3117_v43   ;;  %4398 = vmatmul.mubr.msk.bf16.gmra.mxu1 %vm2353_vm14, %v2328_v7 }
 0x24f   : > { %v1810_v60 = vpop.permute.xlu1 %1809 }
 0x250   : > { %v2330_v44 = vsel %vm2288_vm13, %v2265_v18, %v1810_v60  ;;  %v1679_v32 = vpop.permute.xlu0 %1678 }
 0x251   : > { %3288 = vperm.xlu1 %4476, %v3118_v9   ;;  %4401 = vmatprep.mubr.msk.bf16.mxu1 %vm2353_vm14, %v2330_v44  ;;  %v2267_v0 = vsel %vm2223_vm12, %v2202_v57, %v1679_v32  ;;  %v7736_v9 = vld [vmem:[#allocation13_spill] sm:$0xff]  ;;  %v3137_v44 = vld [vmem:[%s6776_s6 + $0x168] sm:$0xff] }
 0x252   : > { %3293 = vperm.xlu0 %4475, %v3119_v46   ;;  %v3139_v57 = vld [vmem:[%s6776_s6 + $0x178] sm:$0xff] }
 0x253   : > { %v1469_v50 = vpop.permute.xlu1 %1468 }
 0x254   : > { %v1812_v31 = vpop.permute.xlu0 %1811  ;;  %v2206_v33 = vsel %vm2158_vm11, %v7730_v19, %v1469_v50  ;;  %v7738_v19 = vld [vmem:[#allocation105_spill] sm:$0xff] }
 0x255   : > { %3298 = vperm.xlu1 %4476, %v3120_v35   ;;  %v2332_v23 = vsel %vm2288_vm13, %v2267_v0, %v1812_v31  ;;  %v3140_v0 = vld [vmem:[%s6776_s6 + $0x180] sm:$0xff] }
 0x256   : > { %3303 = vperm.xlu0 %4475, %v3121_v39   ;;  %4402 = vmatmul.mubr.msk.bf16.gmra.mxu1 %vm2353_vm14, %v2332_v23  ;;  %v3141_v23 = vld [vmem:[%s6776_s6 + $0x188] sm:$0xff] }
 0x257   : > { %v1683_v53 = vpop.permute.xlu1 %1682 }
 0x258   : > { %v1681_v10 = vpop.permute.xlu0 %1680  ;;  %v2271_v5 = vsel %vm2223_vm12, %v2206_v33, %v1683_v53  ;;  %v3142_v53 = vld [vmem:[%s6776_s6 + $0x190] sm:$0xff] }
 0x259   : > { %3308 = vperm.xlu1 %4476, %v3122_v25   ;;  %v2269_v11 = vsel %vm2223_vm12, %v2204_v20, %v1681_v10 }
 0x25a   : > { %3313 = vperm.xlu0 %4475, %v3123_v26   ;;  %v7737_v26 = vld [vmem:[#allocation12_spill] sm:$0xff] }
 0x25b   : > { %v1816_v12 = vpop.permute.xlu1 %1815 }
 0x25c   : > { %v2336_v61 = vsel %vm2288_vm13, %v2271_v5, %v1816_v12  ;;  %v1814_v54 = vpop.permute.xlu0 %1813 }
 0x25d   : > { %3318 = vperm.xlu1 %4476, %v3124_v52   ;;  %v2334_v49 = vsel %vm2288_vm13, %v2269_v11, %v1814_v54  ;;  %v3144_v11 = vld [vmem:[%s6776_s6 + $0x1a0] sm:$0xff]  ;;  %v3145_v54 = vld [vmem:[%s6776_s6 + $0x1a8] sm:$0xff] }
 0x25e   : > { %3323 = vperm.xlu0 %4475, %v3125_v42   ;;  %4405 = vmatprep.mubr.msk.bf16.mxu1 %vm2353_vm14, %v2334_v49 }
 0x25f   : > { %v1473_v47 = vpop.permute.xlu1 %1472  ;;  %4406 = vmatmul.mubr.msk.bf16.gmra.mxu1 %vm2353_vm14, %v2336_v61 }
 0x260   : > { %v1471_v45 = vpop.permute.xlu0 %1470  ;;  %v2210_v41 = vsel %vm2158_vm11, %v7733_v28, %v1473_v47 }
 0x261   : > { %3328 = vperm.xlu1 %4476, %v3126_v27   ;;  %v2208_v2 = vsel %vm2158_vm11, %v7734_v51, %v1471_v45  ;;  %v3146_v27 = vld [vmem:[%s6776_s6 + $0x1b0] sm:$0xff] }
 0x262   : > { %3333 = vperm.xlu0 %4475, %v3127_v38   ;;  %v3147_v38 = vld [vmem:[%s6776_s6 + $0x1b8] sm:$0xff] }
 0x263   : > { %v1687_v56 = vpop.permute.xlu1 %1686 }
 0x264   : > { %v1685_v8 = vpop.permute.xlu0 %1684  ;;  %v2275_v63 = vsel %vm2223_vm12, %v2210_v41, %v1687_v56  ;;  %v7739_v56 = vld [vmem:[#allocation20_spill] sm:$0xff] }
 0x265   : > { %3338 = vperm.xlu1 %4476, %v3128_v22   ;;  %v2273_v29 = vsel %vm2223_vm12, %v2208_v2, %v1685_v8  ;;  %v3148_v22 = vld [vmem:[%s6776_s6 + $0x1c0] sm:$0xff] }
 0x266   : > { %3343 = vperm.xlu0 %4475, %v3129_v59  }
 0x267   : > { %v1820_v48 = vpop.permute.xlu1 %1819 }
 0x268   : > { %v2340_v30 = vsel %vm2288_vm13, %v2275_v63, %v1820_v48  ;;  %v1818_v15 = vpop.permute.xlu0 %1817  ;;  %v3149_v48 = vld [vmem:[%s6776_s6 + $0x1c8] sm:$0xff] }
 0x269   : > { %3348 = vperm.xlu1 %4476, %v3130_v3   ;;  %v2338_v62 = vsel %vm2288_vm13, %v2273_v29, %v1818_v15  ;;  %v7740_v3 = vld [vmem:[#allocation14_spill] sm:$0xff]  ;;  %v3150_v29 = vld [vmem:[%s6776_s6 + $0x1d0] sm:$0xff] }
 0x26a   : > { %3353 = vperm.xlu0 %4475, %v3131_v36   ;;  %4409 = vmatprep.mubr.msk.bf16.mxu1 %vm2353_vm14, %v2338_v62  ;;  %v3152_v15 = vld [vmem:[%s6776_s6 + $0x1e0] sm:$0xff]  ;;  %v3153_v62 = vld [vmem:[%s6776_s6 + $0x1e8] sm:$0xff] }
 0x26b   : > { %v1477_v37 = vpop.permute.xlu1 %1476  ;;  %4410 = vmatmul.mubr.msk.bf16.gmra.mxu1 %vm2353_vm14, %v2340_v30  ;;  %v3151_v30 = vld [vmem:[%s6776_s6 + $0x1d8] sm:$0xff] }
 0x26c   : > { %v1475_v40 = vpop.permute.xlu0 %1474  ;;  %v2214_v17 = vsel %vm2158_vm11, %v7735_v55, %v1477_v37  ;;  %v3155_v37 = vld [vmem:[%s6776_s6 + $0x1f8] sm:$0xff] }
 0x26d   : > { %3358 = vperm.xlu1 %4476, %v3132_v6   ;;  %v2212_v18 = vsel %vm2158_vm11, %v7736_v9, %v1475_v40  ;;  %v3154_v6 = vld [vmem:[%s6776_s6 + $0x1f0] sm:$0xff] }
 0x26e   : > { %3363 = vperm.xlu0 %4475, %v3133_v24  }
 0x26f   : > { %v1691_v43 = vpop.permute.xlu1 %1690 }
 0x270   : > { %v1689_v58 = vpop.permute.xlu0 %1688  ;;  %v2279_v60 = vsel %vm2223_vm12, %v2214_v17, %v1691_v43 }
 0x271   : > { %3368 = vperm.xlu1 %4476, %v3134_v4   ;;  %v2277_v46 = vsel %vm2223_vm12, %v2212_v18, %v1689_v58 }
 0x272   : > { %3373 = vperm.xlu0 %4475, %v3135_v14  }
 0x273   : > { %v1824_v7 = vpop.permute.xlu1 %1823 }
 0x274   : > { %v2344_v32 = vsel %vm2288_vm13, %v2279_v60, %v1824_v7  ;;  %v1822_v35 = vpop.permute.xlu0 %1821 }
 0x275   : > { %3378 = vperm.xlu1 %4476, %v3136_v16   ;;  %v2342_v50 = vsel %vm2288_vm13, %v2277_v46, %v1822_v35 }
 0x276   : > { %3383 = vperm.xlu0 %4475, %v3137_v44   ;;  %4413 = vmatprep.mubr.msk.bf16.mxu1 %vm2353_vm14, %v2342_v50 }
 0x277   : > { %v1481_v21 = vpop.permute.xlu1 %1480  ;;  %4414 = vmatmul.mubr.msk.bf16.gmra.mxu1 %vm2353_vm14, %v2344_v32 }
 0x278   : > { %v1479_v39 = vpop.permute.xlu0 %1478  ;;  %v2218_v10 = vsel %vm2158_vm11, %v7737_v26, %v1481_v21 }
 0x279   : > { %3388 = vperm.xlu1 %4476, %v3138_v34   ;;  %v2216_v33 = vsel %vm2158_vm11, %v7738_v19, %v1479_v39 }
 0x27a   : > { %3393 = vperm.xlu0 %4475, %v3139_v57  }
 0x27b   : > { %v1695_v31 = vpop.permute.xlu1 %1694 }
 0x27c   : > { %v1693_v25 = vpop.permute.xlu0 %1692  ;;  %v2283_v12 = vsel %vm2223_vm12, %v2218_v10, %v1695_v31 }
 0x27d   : > { %3398 = vperm.xlu1 %4476, %v3140_v0   ;;  %v2281_v13 = vsel %vm2223_vm12, %v2216_v33, %v1693_v25 }
 0x27e   : > { %3403 = vperm.xlu0 %4475, %v3141_v23  }
 0x27f   : > { %v1828_v52 = vpop.permute.xlu1 %1827 }
 0x280   : > { %v2348_v20 = vsel %vm2288_vm13, %v2283_v12, %v1828_v52  ;;  %v1826_v5 = vpop.permute.xlu0 %1825 }
 0x281   : > { %3408 = vperm.xlu1 %4476, %v3142_v53   ;;  %v2346_v42 = vsel %vm2288_vm13, %v2281_v13, %v1826_v5 }
 0x282   : > { %3413 = vperm.xlu0 %4475, %v3143_v1   ;;  %4417 = vmatprep.mubr.msk.bf16.mxu1 %vm2353_vm14, %v2346_v42 }
 0x283   : > { %v1485_v61 = vpop.permute.xlu1 %1484  ;;  %4418 = vmatmul.mubr.msk.bf16.gmra.mxu1 %vm2353_vm14, %v2348_v20 }
 0x284   : > { %v1483_v49 = vpop.permute.xlu0 %1482  ;;  %v2222_v59 = vsel %vm2158_vm11, %v7739_v56, %v1485_v61 }
 0x285   : > { %3418 = vperm.xlu1 %4476, %v3144_v11   ;;  %v2220_v28 = vsel %vm2158_vm11, %v7740_v3, %v1483_v49 }
 0x286   : > { %3423 = vperm.xlu0 %4475, %v3145_v54  }
 0x287   : > { %v1699_v47 = vpop.permute.xlu1 %1698 }
 0x288   : > { %v1697_v45 = vpop.permute.xlu0 %1696  ;;  %v2287_v41 = vsel %vm2223_vm12, %v2222_v59, %v1699_v47 }
 0x289   : > { %3428 = vperm.xlu1 %4476, %v3146_v27   ;;  %v2285_v51 = vsel %vm2223_vm12, %v2220_v28, %v1697_v45 }
 0x28a   : > { %3433 = vperm.xlu0 %4475, %v3147_v38  }
 0x28b   : > { %v1832_v8 = vpop.permute.xlu1 %1831 }
 0x28c   : > { %v2352_v2 = vsel %vm2288_vm13, %v2287_v41, %v1832_v8  ;;  %v1830_v63 = vpop.permute.xlu0 %1829 }
 0x28d   : > { %3438 = vperm.xlu1 %4476, %v3148_v22   ;;  %v2350_v36 = vsel %vm2288_vm13, %v2285_v51, %v1830_v63 }
 0x28e   : > { %3443 = vperm.xlu0 %4475, %v3149_v48   ;;  %4421 = vmatprep.mubr.msk.bf16.mxu1 %vm2353_vm14, %v2350_v36 }
 0x28f   : > { %4422 = vmatmul.mubr.msk.bf16.gmra.mxu1 %vm2353_vm14, %v2352_v2 }
 0x291   : > { %3448 = vperm.xlu1 %4476, %v3150_v29  }
 0x292   : > { %3453 = vperm.xlu0 %4475, %v3151_v30  }
 0x295   : > { %3458 = vperm.xlu1 %4476, %v3152_v15  }
 0x296   : > { %3463 = vperm.xlu0 %4475, %v3153_v62  }
 0x298   : > { %v3164_v24 = vpop.permute.xlu1 %3163 }
 0x299   : > { %3468 = vperm.xlu1 %4476, %v3154_v6   ;;  %v3159_v40 = vpop.permute.xlu0 %3158 }
 0x29a   : > { %3473 = vperm.xlu0 %4475, %v3155_v37  }
 0x29c   : > { %v3169_v4 = vpop.permute.xlu1 %3168 }
 0x29d   : > { %v3174_v43 = vpop.permute.xlu0 %3173 }
 0x2a0   : > { %v3179_v14 = vpop.permute.xlu1 %3178 }
 0x2a1   : > { %v3184_v58 = vpop.permute.xlu0 %3183 }
 0x2a4   : > { %v3189_v16 = vpop.permute.xlu1 %3188 }
 0x2a5   : > { %v3194_v55 = vpop.permute.xlu0 %3193 }
 0x2a8   : > { %v3199_v17 = vpop.permute.xlu1 %3198 }
 0x2a9   : > { %v7077_v7 = vpop.permute.xlu0 %3203 }
 0x2ac   : > { %v7079_v9 = vpop.permute.xlu1 %3208 }
 0x2ad   : > { %v7081_v18 = vpop.permute.xlu0 %3213 }
 0x2b0   : > { %v7083_v60 = vpop.permute.xlu1 %3218 }
 0x2b1   : > { %v7085_v44 = vpop.permute.xlu0 %3223 }
 0x2b4   : > { %v7087_v46 = vpop.permute.xlu1 %3228 }
 0x2b5   : > { %v7089_v35 = vpop.permute.xlu0 %3233 }
 0x2b8   : > { %v7092_v34 = vpop.permute.xlu1 %3238 }
 0x2b9   : > { %v7099_v31 = vpop.permute.xlu0 %3243 }
 0x2bc   : > { %v7103_v12 = vpop.permute.xlu1 %3248 }
 0x2bd   : > { %v7105_v61 = vpop.permute.xlu0 %3253 }
 0x2c0   : > { %v7108_v28 = vpop.permute.xlu1 %3258 }
 0x2c1   : > { %v7111_v29 = vpop.permute.xlu0 %3263 }
 0x2c6   : > { %v4363_v32 = vpop.f32.mrf.mxu0 }
 0x2c7   : > { %v3478_v23 = vmul.f32 %v4363_v32, %v3169_v4 }
 0x2c8   : > { %v2517_v50 = vpop.f32.mrf.mxu0 }
 0x2c9   : > { %v3476_v57 = vmul.f32 %v3159_v40, %v2517_v50  ;;  %v3611_v13 = vmul.f32 %v4363_v32, %v3478_v23 }
 0x2ca   : > { %v4364_v21 = vpop.f32.mrf.mxu0 }
 0x2cb   : > { %v4122_v39 = vpack.c.bf16 %v4364_v21, %v4363_v32  ;;  %v3609_v10 = vmul.f32 %v3476_v57, %v2517_v50  ;;  %v3479_v52 = vmul.f32 %v4364_v21, %v3174_v43 }
 0x2cc   : > { %v2520_v0 = vpop.f32.mrf.mxu0 }
 0x2cd   : > { %4274 = vst [vmem:[%s7097_s9 + $0x8] sm:$0xff] %v4122_v39   ;;  %v4117_v25 = vpack.c.bf16 %v2520_v0, %v2517_v50  ;;  %v3477_v53 = vmul.f32 %v3164_v24, %v2520_v0  ;;  %v3612_v54 = vmul.f32 %v4364_v21, %v3479_v52 }
 0x2ce   : > { %v4367_v26 = vpop.f32.mrf.mxu0 }
 0x2cf   : > { %4118 = vst [vmem:[%s7097_s9] sm:$0xff] %v4117_v25   ;;  %v3540_v19 = vadd.f32 %v3477_v53, %v3476_v57  ;;  %v3610_v33 = vmul.f32 %v3477_v53, %v2520_v0  ;;  %v3482_v38 = vmul.f32 %v4367_v26, %v3189_v16 }
 0x2d0   : > { %v2533_v1 = vpop.f32.mrf.mxu0 }
 0x2d1   : > { %v3541_v20 = vadd.f32 %v3540_v19, %v3478_v23  ;;  %v3673_v5 = vadd.f32 %v3610_v33, %v3609_v10  ;;  %v3480_v42 = vmul.f32 %v3179_v14, %v2533_v1  ;;  %v3615_v30 = vmul.f32 %v4367_v26, %v3482_v38  ;;  %v7113_v14 = vpop.permute.xlu1 %3268 }
 0x2d2   : > { %v4368_v11 = vpop.f32.mrf.mxu0 }
 0x2d3   : > { %v3674_v49 = vadd.f32 %v3673_v5, %v3611_v13  ;;  %v3542_v27 = vadd.f32 %v3541_v20, %v3479_v52  ;;  %v4132_v47 = vpack.c.bf16 %v4368_v11, %v4367_v26  ;;  %v3613_v45 = vmul.f32 %v3480_v42, %v2533_v1 }
 0x2d4   : > { %v2536_v22 = vpop.f32.mrf.mxu0  ;;  %v3483_v51 = vmul.f32 %v4368_v11, %v3194_v55 }
 0x2d5   : > { %v3543_v56 = vadd.f32 %v3542_v27, %v3480_v42  ;;  %v3675_v59 = vadd.f32 %v3674_v49, %v3612_v54  ;;  %4276 = vst [vmem:[%s7097_s9 + $0x18] sm:$0xff] %v4132_v47   ;;  %v4127_v8 = vpack.c.bf16 %v2536_v22, %v2533_v1  ;;  %v3481_v3 = vmul.f32 %v3184_v58, %v2536_v22  ;;  %v7123_v33 = vpop.permute.xlu1 %3278 }
 0x2d6   : > { %v4371_v41 = vpop.f32.mrf.mxu0  ;;  %v3616_v24 = vmul.f32 %v4368_v11, %v3483_v51 }
 0x2d7   : > { %v3676_v48 = vadd.f32 %v3675_v59, %v3613_v45  ;;  %4275 = vst [vmem:[%s7097_s9 + $0x10] sm:$0xff] %v4127_v8   ;;  %v3544_v2 = vadd.f32 %v3543_v56, %v3481_v3  ;;  %v3614_v63 = vmul.f32 %v3481_v3, %v2536_v22  ;;  %v3486_v58 = vmul.f32 %v4371_v41, %v7079_v9 }
 0x2d8   : > { %v2549_v36 = vpop.f32.mrf.mxu0 }
 0x2d9   : > { %v3545_v15 = vadd.f32 %v3544_v2, %v3482_v38  ;;  %v3677_v62 = vadd.f32 %v3676_v48, %v3614_v63  ;;  %v3484_v6 = vmul.f32 %v3199_v17, %v2549_v36  ;;  %v7118_v17 = vpop.permute.xlu0 %3273  ;;  %v3619_v10 = vmul.f32 %v4371_v41, %v3486_v58  ;;  %v7132_v8 = vpop.permute.xlu1 %3288 }
 0x2da   : > { %v4372_v37 = vpop.f32.mrf.mxu0 }
 0x2db   : > { %v3678_v40 = vadd.f32 %v3677_v62, %v3615_v30  ;;  %v3546_v4 = vadd.f32 %v3545_v15, %v3483_v51  ;;  %v4142_v43 = vpack.c.bf16 %v4372_v37, %v4371_v41  ;;  %v3617_v16 = vmul.f32 %v3484_v6, %v2549_v36 }
 0x2dc   : > { %v2552_v55 = vpop.f32.mrf.mxu0  ;;  %v3487_v23 = vmul.f32 %v4372_v37, %v7081_v18 }
 0x2dd   : > { %v3547_v32 = vadd.f32 %v3546_v4, %v3484_v6  ;;  %v3679_v50 = vadd.f32 %v3678_v40, %v3616_v24  ;;  %4278 = vst [vmem:[%s7097_s9 + $0x28] sm:$0xff] %v4142_v43   ;;  %v4137_v21 = vpack.c.bf16 %v2552_v55, %v2549_v36  ;;  %v3485_v57 = vmul.f32 %v7077_v7, %v2552_v55  ;;  %v7126_v54 = vpop.permute.xlu0 %3283  ;;  %v7140_v43 = vpop.permute.xlu1 %3298 }
 0x2de   : > { %v4375_v39 = vpop.f32.mrf.mxu0  ;;  %v3620_v7 = vmul.f32 %v4372_v37, %v3487_v23 }
 0x2df   : > { %v3680_v0 = vadd.f32 %v3679_v50, %v3617_v16  ;;  %4277 = vst [vmem:[%s7097_s9 + $0x20] sm:$0xff] %v4137_v21   ;;  %v3548_v25 = vadd.f32 %v3547_v32, %v3485_v57  ;;  %v3618_v53 = vmul.f32 %v3485_v57, %v2552_v55  ;;  %v3490_v18 = vmul.f32 %v4375_v39, %v7087_v46 }
 0x2e0   : > { %v2565_v26 = vpop.f32.mrf.mxu0 }
 0x2e1   : > { %v3549_v9 = vadd.f32 %v3548_v25, %v3486_v58  ;;  %v3681_v52 = vadd.f32 %v3680_v0, %v3618_v53  ;;  %v3488_v19 = vmul.f32 %v7083_v60, %v2565_v26  ;;  %v3623_v3 = vmul.f32 %v4375_v39, %v3490_v18  ;;  %v7135_v63 = vpop.permute.xlu0 %3293 }
 0x2e2   : > { %v4376_v1 = vpop.f32.mrf.mxu0 }
 0x2e3   : > { %v3682_v13 = vadd.f32 %v3681_v52, %v3619_v10  ;;  %v3550_v20 = vadd.f32 %v3549_v9, %v3487_v23  ;;  %v4152_v5 = vpack.c.bf16 %v4376_v1, %v4375_v39  ;;  %v3621_v42 = vmul.f32 %v3488_v19, %v2565_v26  ;;  %v3309_v10 = vpop.permute.xlu1 %3308 }
 0x2e4   : > { %v2568_v11 = vpop.f32.mrf.mxu0  ;;  %v3491_v22 = vmul.f32 %v4376_v1, %v7089_v35 }
 0x2e5   : > { %v3551_v49 = vadd.f32 %v3550_v20, %v3488_v19  ;;  %v3683_v27 = vadd.f32 %v3682_v13, %v3620_v7  ;;  %4280 = vst [vmem:[%s7097_s9 + $0x38] sm:$0xff] %v4152_v5   ;;  %v4147_v47 = vpack.c.bf16 %v2568_v11, %v2565_v26  ;;  %v3489_v60 = vmul.f32 %v7085_v44, %v2568_v11  ;;  %v7144_v21 = vpop.permute.xlu0 %3303 }
 0x2e6   : > { %v4379_v38 = vpop.f32.mrf.mxu0  ;;  %v3624_v44 = vmul.f32 %v4376_v1, %v3491_v22 }
 0x2e7   : > { %v3684_v45 = vadd.f32 %v3683_v27, %v3621_v42  ;;  %4279 = vst [vmem:[%s7097_s9 + $0x30] sm:$0xff] %v4147_v47   ;;  %v3552_v56 = vadd.f32 %v3551_v49, %v3489_v60  ;;  %v3622_v59 = vmul.f32 %v3489_v60, %v2568_v11  ;;  %v3494_v15 = vmul.f32 %v4379_v38, %v7103_v12 }
 0x2e8   : > { %v2581_v46 = vpop.f32.mrf.mxu0 }
 0x2e9   : > { %v3553_v41 = vadd.f32 %v3552_v56, %v3490_v18  ;;  %v3685_v48 = vadd.f32 %v3684_v45, %v3622_v59  ;;  %v3492_v51 = vmul.f32 %v7092_v34, %v2581_v46  ;;  %v3627_v12 = vmul.f32 %v4379_v38, %v3494_v15  ;;  %v3314_v5 = vpop.permute.xlu0 %3313 }
 0x2ea   : > { %v4380_v2 = vpop.f32.mrf.mxu0 }
 0x2eb   : > { %v3686_v36 = vadd.f32 %v3685_v48, %v3623_v3  ;;  %v3554_v30 = vadd.f32 %v3553_v41, %v3491_v22  ;;  %v4162_v35 = vpack.c.bf16 %v4380_v2, %v4379_v38  ;;  %v3625_v62 = vmul.f32 %v3492_v51, %v2581_v46  ;;  %v3319_v38 = vpop.permute.xlu1 %3318 }
 0x2ec   : > { %v2584_v6 = vpop.f32.mrf.mxu0  ;;  %v3495_v16 = vmul.f32 %v4380_v2, %v7105_v61 }
 0x2ed   : > { %v3555_v37 = vadd.f32 %v3554_v30, %v3492_v51  ;;  %v3687_v24 = vadd.f32 %v3686_v36, %v3624_v44  ;;  %4282 = vst [vmem:[%s7097_s9 + $0x48] sm:$0xff] %v4162_v35   ;;  %v4157_v40 = vpack.c.bf16 %v2584_v6, %v2581_v46  ;;  %v3493_v4 = vmul.f32 %v7099_v31, %v2584_v6  ;;  %v3324_v41 = vpop.permute.xlu0 %3323 }
 0x2ee   : > { %v4383_v34 = vpop.f32.mrf.mxu0  ;;  %v3628_v31 = vmul.f32 %v4380_v2, %v3495_v16 }
 0x2ef   : > { %v3688_v58 = vadd.f32 %v3687_v24, %v3625_v62  ;;  %4281 = vst [vmem:[%s7097_s9 + $0x40] sm:$0xff] %v4157_v40   ;;  %v3556_v55 = vadd.f32 %v3555_v37, %v3493_v4  ;;  %v3626_v32 = vmul.f32 %v3493_v4, %v2584_v6  ;;  %v3498_v61 = vmul.f32 %v4383_v34, %v7113_v14  ;;  %v3329_v62 = vpop.permute.xlu1 %3328 }
 0x2f0   : > { %v2597_v50 = vpop.f32.mrf.mxu0 }
 0x2f1   : > { %v3557_v57 = vadd.f32 %v3556_v55, %v3494_v15  ;;  %v3689_v39 = vadd.f32 %v3688_v58, %v3626_v32  ;;  %v3496_v0 = vmul.f32 %v7108_v28, %v2597_v50  ;;  %v3631_v27 = vmul.f32 %v4383_v34, %v3498_v61 }
 0x2f2   : > { %v4384_v23 = vpop.f32.mrf.mxu0 }
 0x2f3   : > { %v3690_v25 = vadd.f32 %v3689_v39, %v3627_v12  ;;  %v3558_v53 = vadd.f32 %v3557_v57, %v3495_v16  ;;  %v4172_v26 = vpack.c.bf16 %v4384_v23, %v4383_v34  ;;  %v3629_v9 = vmul.f32 %v3496_v0, %v2597_v50  ;;  %v3334_v34 = vpop.permute.xlu0 %3333 }
 0x2f4   : > { %v2600_v52 = vpop.f32.mrf.mxu0  ;;  %v3499_v18 = vmul.f32 %v4384_v23, %v7118_v17 }
 0x2f5   : > { %v3559_v19 = vadd.f32 %v3558_v53, %v3496_v0  ;;  %v3691_v1 = vadd.f32 %v3690_v25, %v3628_v31  ;;  %4284 = vst [vmem:[%s7097_s9 + $0x58] sm:$0xff] %v4172_v26   ;;  %v4167_v7 = vpack.c.bf16 %v2600_v52, %v2597_v50  ;;  %v3497_v13 = vmul.f32 %v7111_v29, %v2600_v52 }
 0x2f6   : > { %v4387_v20 = vpop.f32.mrf.mxu0  ;;  %v3632_v22 = vmul.f32 %v4384_v23, %v3499_v18  ;;  %v3339_v23 = vpop.permute.xlu1 %3338 }
 0x2f7   : > { %v3692_v28 = vadd.f32 %v3691_v1, %v3629_v9  ;;  %4283 = vst [vmem:[%s7097_s9 + $0x50] sm:$0xff] %v4167_v7   ;;  %v3560_v42 = vadd.f32 %v3559_v19, %v3497_v13  ;;  %v3630_v11 = vmul.f32 %v3497_v13, %v2600_v52  ;;  %v3502_v46 = vmul.f32 %v4387_v20, %v7132_v8  ;;  %v3344_v9 = vpop.permute.xlu0 %3343 }
 0x2f8   : > { %v2613_v49 = vpop.f32.mrf.mxu0 }
 0x2f9   : > { %v3561_v14 = vadd.f32 %v3560_v42, %v3498_v61  ;;  %v3693_v47 = vadd.f32 %v3692_v28, %v3630_v11  ;;  %v3500_v60 = vmul.f32 %v7123_v33, %v2613_v49  ;;  %v3635_v8 = vmul.f32 %v4387_v20, %v3502_v46 }
 0x2fa   : > { %v4388_v45 = vpop.f32.mrf.mxu0 }
 0x2fb   : > { %v3694_v29 = vadd.f32 %v3693_v47, %v3631_v27  ;;  %v3562_v56 = vadd.f32 %v3561_v14, %v3499_v18  ;;  %v4182_v59 = vpack.c.bf16 %v4388_v45, %v4387_v20  ;;  %v3633_v17 = vmul.f32 %v3500_v60, %v2613_v49  ;;  %v3349_v18 = vpop.permute.xlu1 %3348 }
 0x2fc   : > { %v2616_v3 = vpop.f32.mrf.mxu0  ;;  %v3503_v30 = vmul.f32 %v4388_v45, %v7135_v63 }
 0x2fd   : > { %v3563_v48 = vadd.f32 %v3562_v56, %v3500_v60  ;;  %v3695_v51 = vadd.f32 %v3694_v29, %v3632_v22  ;;  %4286 = vst [vmem:[%s7097_s9 + $0x68] sm:$0xff] %v4182_v59   ;;  %v4177_v2 = vpack.c.bf16 %v2616_v3, %v2613_v49  ;;  %v3501_v44 = vmul.f32 %v7126_v54, %v2616_v3 }
 0x2fe   : > { %v4391_v36 = vpop.f32.mrf.mxu0  ;;  %v3636_v58 = vmul.f32 %v4388_v45, %v3503_v30  ;;  %v3354_v45 = vpop.permute.xlu0 %3353 }
 0x2ff   : > { %v3696_v33 = vadd.f32 %v3695_v51, %v3633_v17  ;;  %4285 = vst [vmem:[%s7097_s9 + $0x60] sm:$0xff] %v4177_v2   ;;  %v3564_v35 = vadd.f32 %v3563_v48, %v3501_v44  ;;  %v3634_v15 = vmul.f32 %v3501_v44, %v2616_v3  ;;  %v3506_v32 = vmul.f32 %v4391_v36, %v3309_v10  ;;  %v3359_v51 = vpop.permute.xlu1 %3358 }
 0x300   : > { %v2629_v6 = vpop.f32.mrf.mxu0 }
 0x301   : > { %v3565_v37 = vadd.f32 %v3564_v35, %v3502_v46  ;;  %v3697_v24 = vadd.f32 %v3696_v33, %v3634_v15  ;;  %v3504_v40 = vmul.f32 %v7140_v43, %v2629_v6  ;;  %v3639_v52 = vmul.f32 %v4391_v36, %v3506_v32 }
 0x302   : > { %v4392_v4 = vpop.f32.mrf.mxu0 }
 0x303   : > { %v3698_v54 = vadd.f32 %v3697_v24, %v3635_v8  ;;  %v3566_v16 = vadd.f32 %v3565_v37, %v3503_v30  ;;  %v4192_v55 = vpack.c.bf16 %v4392_v4, %v4391_v36  ;;  %v3637_v63 = vmul.f32 %v3504_v40, %v2629_v6 }
 0x304   : > { %v2632_v50 = vpop.f32.mrf.mxu0  ;;  %v3507_v43 = vmul.f32 %v4392_v4, %v3314_v5 }
 0x305   : > { %v3567_v12 = vadd.f32 %v3566_v16, %v3504_v40  ;;  %v3699_v57 = vadd.f32 %v3698_v54, %v3636_v58  ;;  %4288 = vst [vmem:[%s7097_s9 + $0x78] sm:$0xff] %v4192_v55   ;;  %v4187_v39 = vpack.c.bf16 %v2632_v50, %v2629_v6  ;;  %v3505_v0 = vmul.f32 %v7144_v21, %v2632_v50  ;;  %v3369_v16 = vpop.permute.xlu1 %3368 }
 0x306   : > { %v4395_v31 = vpop.f32.mrf.mxu1  ;;  %v3640_v13 = vmul.f32 %v4392_v4, %v3507_v43 }
 0x307   : > { %v3700_v25 = vadd.f32 %v3699_v57, %v3637_v63  ;;  %4287 = vst [vmem:[%s7097_s9 + $0x70] sm:$0xff] %v4187_v39   ;;  %v3568_v53 = vadd.f32 %v3567_v12, %v3505_v0  ;;  %v3638_v26 = vmul.f32 %v3505_v0, %v2632_v50  ;;  %v3510_v42 = vmul.f32 %v4395_v31, %v3329_v62  ;;  %v3364_v62 = vpop.permute.xlu0 %3363 }
 0x308   : > { %v2645_v61 = vpop.f32.mrf.mxu1 }
 0x309   : > { %v3569_v10 = vadd.f32 %v3568_v53, %v3506_v32  ;;  %v3701_v19 = vadd.f32 %v3700_v25, %v3638_v26  ;;  %v3508_v1 = vmul.f32 %v3319_v38, %v2645_v61  ;;  %v3643_v46 = vmul.f32 %v4395_v31, %v3510_v42 }
 0x30a   : > { %v4396_v7 = vpop.f32.mrf.mxu1 }
 0x30b   : > { %v3702_v20 = vadd.f32 %v3701_v19, %v3639_v52  ;;  %v3570_v28 = vadd.f32 %v3569_v10, %v3507_v43  ;;  %v4202_v21 = vpack.c.bf16 %v4396_v7, %v4395_v31  ;;  %v3641_v11 = vmul.f32 %v3508_v1, %v2645_v61  ;;  %v3374_v39 = vpop.permute.xlu0 %3373  ;;  %v3379_v19 = vpop.permute.xlu1 %3378 }
 0x30c   : > { %v2648_v5 = vpop.f32.mrf.mxu1  ;;  %v3511_v29 = vmul.f32 %v4396_v7, %v3334_v34 }
 0x30d   : > { %v3571_v49 = vadd.f32 %v3570_v28, %v3508_v1  ;;  %v3703_v27 = vadd.f32 %v3702_v20, %v3640_v13  ;;  %4290 = vst [vmem:[%s7097_s9 + $0x88] sm:$0xff] %v4202_v21   ;;  %v4197_v14 = vpack.c.bf16 %v2648_v5, %v2645_v61  ;;  %v3509_v47 = vmul.f32 %v3324_v41, %v2648_v5 }
 0x30e   : > { %v4399_v60 = vpop.f32.mrf.mxu1  ;;  %v3644_v44 = vmul.f32 %v4396_v7, %v3511_v29 }
 0x30f   : > { %v3704_v22 = vadd.f32 %v3703_v27, %v3641_v11  ;;  %4289 = vst [vmem:[%s7097_s9 + $0x80] sm:$0xff] %v4197_v14   ;;  %v3572_v38 = vadd.f32 %v3571_v49, %v3509_v47  ;;  %v3642_v56 = vmul.f32 %v3509_v47, %v2648_v5  ;;  %v3514_v30 = vmul.f32 %v4399_v60, %v3349_v18  ;;  %v3384_v21 = vpop.permute.xlu0 %3383 }
 0x310   : > { %v2661_v59 = vpop.f32.mrf.mxu1 }
 0x311   : > { %v3573_v17 = vadd.f32 %v3572_v38, %v3510_v42  ;;  %v3705_v3 = vadd.f32 %v3704_v22, %v3642_v56  ;;  %v3512_v48 = vmul.f32 %v3339_v23, %v2661_v59  ;;  %v3647_v32 = vmul.f32 %v4399_v60, %v3514_v30 }
 0x312   : > { %v4400_v2 = vpop.f32.mrf.mxu1 }
 0x313   : > { %v3706_v36 = vadd.f32 %v3705_v3, %v3643_v46  ;;  %v3574_v33 = vadd.f32 %v3573_v17, %v3511_v29  ;;  %v4212_v41 = vpack.c.bf16 %v4400_v2, %v4399_v60  ;;  %v3645_v35 = vmul.f32 %v3512_v48, %v2661_v59  ;;  %v3394_v3 = vpop.permute.xlu0 %3393 }
 0x314   : > { %v2664_v15 = vpop.f32.mrf.mxu1  ;;  %v3515_v34 = vmul.f32 %v4400_v2, %v3354_v45  ;;  %v3389_v45 = vpop.permute.xlu1 %3388 }
 0x315   : > { %v3575_v6 = vadd.f32 %v3574_v33, %v3512_v48  ;;  %v3707_v8 = vadd.f32 %v3706_v36, %v3644_v44  ;;  %4292 = vst [vmem:[%s7097_s9 + $0x98] sm:$0xff] %v4212_v41   ;;  %v4207_v37 = vpack.c.bf16 %v2664_v15, %v2661_v59  ;;  %v3513_v24 = vmul.f32 %v3344_v9, %v2664_v15 }
 0x316   : > { %v4403_v40 = vpop.f32.mrf.mxu1  ;;  %v3648_v0 = vmul.f32 %v4400_v2, %v3515_v34 }
 0x317   : > { %v3708_v4 = vadd.f32 %v3707_v8, %v3645_v35  ;;  %4291 = vst [vmem:[%s7097_s9 + $0x90] sm:$0xff] %v4207_v37   ;;  %v3576_v58 = vadd.f32 %v3575_v6, %v3513_v24  ;;  %v3646_v54 = vmul.f32 %v3513_v24, %v2664_v15  ;;  %v3518_v43 = vmul.f32 %v4403_v40, %v3369_v16 }
 0x318   : > { %v2677_v55 = vpop.f32.mrf.mxu1  ;;  %v3399_v36 = vpop.permute.xlu1 %3398 }
 0x319   : > { %v3577_v63 = vadd.f32 %v3576_v58, %v3514_v30  ;;  %v3709_v50 = vadd.f32 %v3708_v4, %v3646_v54  ;;  %v3516_v12 = vmul.f32 %v3359_v51, %v2677_v55  ;;  %v3651_v18 = vmul.f32 %v4403_v40, %v3518_v43 }
 0x31a   : > { %v4404_v57 = vpop.f32.mrf.mxu1 }
 0x31b   : > { %v3710_v23 = vadd.f32 %v3709_v50, %v3647_v32  ;;  %v3578_v31 = vadd.f32 %v3577_v63, %v3515_v34  ;;  %v4222_v25 = vpack.c.bf16 %v4404_v57, %v4403_v40  ;;  %v3649_v53 = vmul.f32 %v3516_v12, %v2677_v55 }
 0x31c   : > { %v2680_v26 = vpop.f32.mrf.mxu1  ;;  %v3519_v7 = vmul.f32 %v4404_v57, %v3374_v39  ;;  %v3409_v40 = vpop.permute.xlu1 %3408 }
 0x31d   : > { %v3579_v61 = vadd.f32 %v3578_v31, %v3516_v12  ;;  %v3711_v9 = vadd.f32 %v3710_v23, %v3648_v0  ;;  %4294 = vst [vmem:[%s7097_s9 + $0xa8] sm:$0xff] %v4222_v25   ;;  %v4217_v52 = vpack.c.bf16 %v2680_v26, %v2677_v55  ;;  %v3517_v10 = vmul.f32 %v3364_v62, %v2680_v26  ;;  %v3404_v62 = vpop.permute.xlu0 %3403 }
 0x31e   : > { %v3652_v27 = vmul.f32 %v4404_v57, %v3519_v7 }
 0x31f   : > { %v3712_v1 = vadd.f32 %v3711_v9, %v3649_v53  ;;  %4293 = vst [vmem:[%s7097_s9 + $0xa0] sm:$0xff] %v4217_v52   ;;  %v3580_v13 = vadd.f32 %v3579_v61, %v3517_v10  ;;  %v3650_v20 = vmul.f32 %v3517_v10, %v2680_v26  ;;  %v4407_v28 = vpop.f32.mrf.mxu1 }
 0x320   : > { %v3522_v51 = vmul.f32 %v4407_v28, %v3389_v45  ;;  %v3419_v31 = vpop.permute.xlu1 %3418 }
 0x321   : > { %v3581_v42 = vadd.f32 %v3580_v13, %v3518_v43  ;;  %v3713_v11 = vadd.f32 %v3712_v1, %v3650_v20  ;;  %v2693_v5 = vpop.f32.mrf.mxu1  ;;  %v3414_v12 = vpop.permute.xlu0 %3413 }
 0x322   : > { %v3520_v49 = vmul.f32 %v3379_v19, %v2693_v5  ;;  %v3655_v30 = vmul.f32 %v4407_v28, %v3522_v51 }
 0x323   : > { %v3714_v14 = vadd.f32 %v3713_v11, %v3651_v18  ;;  %v3582_v47 = vadd.f32 %v3581_v42, %v3519_v7  ;;  %v4408_v60 = vpop.f32.mrf.mxu1 }
 0x324   : > { %v3653_v22 = vmul.f32 %v3520_v49, %v2693_v5  ;;  %v4232_v29 = vpack.c.bf16 %v4408_v60, %v4407_v28  ;;  %v3523_v35 = vmul.f32 %v4408_v60, %v3394_v3  ;;  %v3429_v7 = vpop.permute.xlu1 %3428 }
 0x325   : > { %v3583_v38 = vadd.f32 %v3582_v47, %v3520_v49  ;;  %v3715_v56 = vadd.f32 %v3714_v14, %v3652_v27  ;;  %v2696_v59 = vpop.f32.mrf.mxu1  ;;  %v3424_v9 = vpop.permute.xlu0 %3423 }
 0x326   : > { %4296 = vst [vmem:[%s7097_s9 + $0xb8] sm:$0xff] %v4232_v29   ;;  %v4227_v46 = vpack.c.bf16 %v2696_v59, %v2693_v5  ;;  %v3521_v17 = vmul.f32 %v3384_v21, %v2696_v59  ;;  %v3656_v4 = vmul.f32 %v4408_v60, %v3523_v35 }
 0x327   : > { %v3716_v48 = vadd.f32 %v3715_v56, %v3653_v22 }
 0x328   : > { %4295 = vst [vmem:[%s7097_s9 + $0xb0] sm:$0xff] %v4227_v46   ;;  %v3584_v2 = vadd.f32 %v3583_v38, %v3521_v17  ;;  %v3654_v44 = vmul.f32 %v3521_v17, %v2696_v59  ;;  %v3439_v22 = vpop.permute.xlu1 %3438 }
 0x329   : > { %v3434_v27 = vpop.permute.xlu0 %3433 }
 0x32a   : > { %v3717_v33 = vadd.f32 %v3716_v48, %v3654_v44  ;;  %v3585_v15 = vadd.f32 %v3584_v2, %v3522_v51 }
 0x32b   : > { %v4411_v41 = vpop.f32.mrf.mxu1 }
 0x32c   : > { %v3718_v8 = vadd.f32 %v3717_v33, %v3655_v30  ;;  %v3586_v34 = vadd.f32 %v3585_v15, %v3523_v35  ;;  %v3526_v57 = vmul.f32 %v4411_v41, %v3409_v40  ;;  %v3449_v44 = vpop.permute.xlu1 %3448 }
 0x32d   : > { %v2709_v6 = vpop.f32.mrf.mxu1  ;;  %v3444_v17 = vpop.permute.xlu0 %3443 }
 0x32e   : > { %v3524_v37 = vmul.f32 %v3399_v36, %v2709_v6  ;;  %v3719_v32 = vadd.f32 %v3718_v8, %v3656_v4  ;;  %v3659_v53 = vmul.f32 %v4411_v41, %v3526_v57 }
 0x32f   : > { %v4412_v24 = vpop.f32.mrf.mxu1 }
 0x330   : > { %v3657_v58 = vmul.f32 %v3524_v37, %v2709_v6  ;;  %v4242_v54 = vpack.c.bf16 %v4412_v24, %v4411_v41  ;;  %v3587_v55 = vadd.f32 %v3586_v34, %v3524_v37  ;;  %v3527_v26 = vmul.f32 %v4412_v24, %v3414_v12 }
 0x331   : > { %v2712_v16 = vpop.f32.mrf.mxu1  ;;  %v3454_v37 = vpop.permute.xlu0 %3453 }
 0x332   : > { %4298 = vst [vmem:[%s7097_s9 + $0xc8] sm:$0xff] %v4242_v54   ;;  %v4237_v63 = vpack.c.bf16 %v2712_v16, %v2709_v6  ;;  %v3525_v50 = vmul.f32 %v3404_v62, %v2712_v16  ;;  %v3720_v39 = vadd.f32 %v3719_v32, %v3657_v58  ;;  %v3660_v13 = vmul.f32 %v4412_v24, %v3527_v26  ;;  %v3459_v58 = vpop.permute.xlu1 %3458 }
 0x334   : > { %4297 = vst [vmem:[%s7097_s9 + $0xc0] sm:$0xff] %v4237_v63   ;;  %v3588_v0 = vadd.f32 %v3587_v55, %v3525_v50  ;;  %v3658_v23 = vmul.f32 %v3525_v50, %v2712_v16 }
 0x335   : > { %v3464_v50 = vpop.permute.xlu0 %3463 }
 0x336   : > { %v3721_v25 = vadd.f32 %v3720_v39, %v3658_v23  ;;  %v3589_v61 = vadd.f32 %v3588_v0, %v3526_v57  ;;  %v3469_v23 = vpop.permute.xlu1 %3468 }
 0x337   : > { %v4415_v43 = vpop.f32.mrf.mxu1 }
 0x338   : > { %v3722_v10 = vadd.f32 %v3721_v25, %v3659_v53  ;;  %v3590_v20 = vadd.f32 %v3589_v61, %v3527_v26  ;;  %v3530_v14 = vmul.f32 %v4415_v43, %v3429_v7 }
 0x339   : > { %v2725_v52 = vpop.f32.mrf.mxu1 }
 0x33a   : > { %v3528_v19 = vmul.f32 %v3419_v31, %v2725_v52  ;;  %v3723_v11 = vadd.f32 %v3722_v10, %v3660_v13  ;;  %v3663_v56 = vmul.f32 %v4415_v43, %v3530_v14 }
 0x33b   : > { %v4416_v1 = vpop.f32.mrf.mxu1 }
 0x33c   : > { %v3661_v28 = vmul.f32 %v3528_v19, %v2725_v52  ;;  %v4252_v21 = vpack.c.bf16 %v4416_v1, %v4415_v43  ;;  %v3591_v42 = vadd.f32 %v3590_v20, %v3528_v19  ;;  %v3531_v59 = vmul.f32 %v4416_v1, %v3434_v27 }
 0x33d   : > { %v2728_v18 = vpop.f32.mrf.mxu1 }
 0x33e   : > { %4300 = vst [vmem:[%s7097_s9 + $0xd8] sm:$0xff] %v4252_v21   ;;  %v4247_v5 = vpack.c.bf16 %v2728_v18, %v2725_v52  ;;  %v3529_v49 = vmul.f32 %v3424_v9, %v2728_v18  ;;  %v3724_v47 = vadd.f32 %v3723_v11, %v3661_v28  ;;  %v3664_v36 = vmul.f32 %v4416_v1, %v3531_v59  ;;  %v3474_v1 = vpop.permute.xlu0 %3473 }
 0x340   : > { %4299 = vst [vmem:[%s7097_s9 + $0xd0] sm:$0xff] %v4247_v5   ;;  %v3592_v60 = vadd.f32 %v3591_v42, %v3529_v49  ;;  %v3662_v45 = vmul.f32 %v3529_v49, %v2728_v18 }
 0x342   : > { %v3725_v29 = vadd.f32 %v3724_v47, %v3662_v45  ;;  %v3593_v46 = vadd.f32 %v3592_v60, %v3530_v14 }
 0x343   : > { %v4419_v38 = vpop.f32.mrf.mxu1 }
 0x344   : > { %v3726_v48 = vadd.f32 %v3725_v29, %v3663_v56  ;;  %v3594_v33 = vadd.f32 %v3593_v46, %v3531_v59  ;;  %v3534_v24 = vmul.f32 %v4419_v38, %v3449_v44 }
 0x345   : > { %v2741_v3 = vpop.f32.mrf.mxu1 }
 0x346   : > { %v3532_v51 = vmul.f32 %v3439_v22, %v2741_v3  ;;  %v3727_v62 = vadd.f32 %v3726_v48, %v3664_v36  ;;  %v3667_v55 = vmul.f32 %v4419_v38, %v3534_v24 }
 0x347   : > { %v4420_v2 = vpop.f32.mrf.mxu1 }
 0x348   : > { %v3665_v41 = vmul.f32 %v3532_v51, %v2741_v3  ;;  %v4262_v30 = vpack.c.bf16 %v4420_v2, %v4419_v38  ;;  %v3595_v15 = vadd.f32 %v3594_v33, %v3532_v51  ;;  %v3535_v32 = vmul.f32 %v4420_v2, %v3454_v37 }
 0x349   : > { %v2744_v35 = vpop.f32.mrf.mxu1 }
 0x34a   : > { %4302 = vst [vmem:[%s7097_s9 + $0xe8] sm:$0xff] %v4262_v30   ;;  %v4257_v6 = vpack.c.bf16 %v2744_v35, %v2741_v3  ;;  %v3533_v8 = vmul.f32 %v3444_v17, %v2744_v35  ;;  %v3728_v40 = vadd.f32 %v3727_v62, %v3665_v41  ;;  %v3668_v31 = vmul.f32 %v4420_v2, %v3535_v32 }
 0x34c   : > { %4301 = vst [vmem:[%s7097_s9 + $0xe0] sm:$0xff] %v4257_v6   ;;  %v3596_v4 = vadd.f32 %v3595_v15, %v3533_v8  ;;  %v3666_v34 = vmul.f32 %v3533_v8, %v2744_v35 }
 0x34e   : > { %v3729_v54 = vadd.f32 %v3728_v40, %v3666_v34  ;;  %v3597_v63 = vadd.f32 %v3596_v4, %v3534_v24 }
 0x34f   : > { %v4423_v16 = vpop.f32.mrf.mxu1 }
 0x350   : > { %v3730_v57 = vadd.f32 %v3729_v54, %v3667_v55  ;;  %v3598_v25 = vadd.f32 %v3597_v63, %v3535_v32  ;;  %v3538_v26 = vmul.f32 %v4423_v16, %v3469_v23 }
 0x351   : > { %v2757_v12 = vpop.f32.mrf.mxu1 }
 0x352   : > { %v3536_v39 = vmul.f32 %v3459_v58, %v2757_v12  ;;  %v3731_v52 = vadd.f32 %v3730_v57, %v3668_v31  ;;  %v3671_v21 = vmul.f32 %v4423_v16, %v3538_v26 }
 0x353   : > { %v4424_v0 = vpop.f32.mrf.mxu1 }
 0x354   : > { %v3669_v43 = vmul.f32 %v3536_v39, %v2757_v12  ;;  %v4272_v53 = vpack.c.bf16 %v4424_v0, %v4423_v16  ;;  %v3599_v9 = vadd.f32 %v3598_v25, %v3536_v39  ;;  %v3539_v13 = vmul.f32 %v4424_v0, %v3474_v1 }
 0x355   : > { %v2760_v61 = vpop.f32.mrf.mxu1 }
 0x356   : > { %4304 = vst [vmem:[%s7097_s9 + $0xf8] sm:$0xff] %v4272_v53   ;;  %v4267_v10 = vpack.c.bf16 %v2760_v61, %v2757_v12  ;;  %v3537_v19 = vmul.f32 %v3464_v50, %v2760_v61  ;;  %v3732_v7 = vadd.f32 %v3731_v52, %v3669_v43  ;;  %v3672_v11 = vmul.f32 %v4424_v0, %v3539_v13 }
 0x358   : > { %4303 = vst [vmem:[%s7097_s9 + $0xf0] sm:$0xff] %v4267_v10   ;;  %v3600_v20 = vadd.f32 %v3599_v9, %v3537_v19  ;;  %v3670_v28 = vmul.f32 %v3537_v19, %v2760_v61 }
 0x35a   : > { %v3601_v18 = vadd.f32 %v3600_v20, %v3538_v26  ;;  %v3733_v42 = vadd.f32 %v3732_v7, %v3670_v28 }
 0x35c   : > { %v3602_v5 = vadd.f32 %v3601_v18, %v3539_v13  ;;  %v3734_v49 = vadd.f32 %v3733_v42, %v3671_v21 }
 0x35e   : > { %v3603_v27 = vrot.slane %v3602_v5, 4  ;;  %v3735_v14 = vadd.f32 %v3734_v49, %v3672_v11 }
 0x360   : > { %v3604_v47 = vadd.f32 %v3603_v27, %v3602_v5  ;;  %v3736_v60 = vrot.slane %v3735_v14, 4 }
 0x362   : > { %v3605_v45 = vrot.slane %v3604_v47, 2  ;;  %v3737_v22 = vadd.f32 %v3736_v60, %v3735_v14 }
 0x364   : > { %v3606_v29 = vadd.f32 %v3605_v45, %v3604_v47  ;;  %v3738_v38 = vrot.slane %v3737_v22, 2 }
 0x366   : > { %v3607_v56 = vrot.slane %v3606_v29, 1  ;;  %v3739_v59 = vadd.f32 %v3738_v38, %v3737_v22 }
 0x368   : > { %v3740_v46 = vrot.slane %v3739_v59, 1  ;;  %v3608_v17 = vadd.f32 %v3607_v56, %v3606_v29 }
 0x36a   : > { %v3741_v3 = vadd.f32 %v3740_v46, %v3739_v59 }
 0x36c   : > { %v3743_v48 = vsel %vm3742_vm15, %v3608_v17, %v3741_v3 }
 0x36d   : > { %3744 = vst [vmem:[%s276_s13] sm:$0x3] %v3743_v48 }
 0x36e PF: > { %s15_s17 = sadd.s32 1, %s4596_s17   ;;  %s7741_s15 = smov %s4592_s16 }
 0x36f   : > { %p12_p6 = scmp.ge.s32.totalorder %s15_s17, 4   ;;  %s7742_s16 = smov %s7744_s18 }
 0x371   :  { %14 = sbr.rel (!%p12_p6) target bundleno = 2 (0x2), region = 80 }

</bundles_post_ra>
